<compile_context>
chip_gen: v7x
topology: tpu7x:2x2x1
jax: 0.10.0
libtpu: 0.0.40
codegen_flags: <defaults>
</compile_context>

<pallas_src>
import numpy as np
import jax
import jax.numpy as jnp
from jax import lax
from jax.experimental import pallas as pl
from jax.experimental.pallas import tpu as pltpu

# ---------------- configuration (small, consistent with the module) ----------------
D_MODEL = 32      # d_model
D_K = 8           # d_k
D_V = 8           # d_v (== d_k here)
H = 4             # heads
D_FF = 64         # d_ff
B = 2             # batch
S = 8             # decoder sequence length
N = 16            # encoder positions / regions
NL = 3            # encoder levels (meshed memory)
EPS = 1e-5        # nn.LayerNorm default eps
NEG = -1e30       # additive mask value (stands in for masked_fill(-inf))

HD = H * D_K      # packed head width (d_k == d_v)
LANE = 128        # lane-tile width: every packed-parameter slot starts at a multiple of this

# ---------------- 128-lane-aligned packed parameter slots (static layout) ----------------
(W_WQ_S, W_WK_S, W_WV_S, W_WO_S,
 W_WQ_E, W_WK_E, W_WV_E, W_WO_E,
 W_WA_S0, W_WA_S1, W_WA_S2,
 W_WA_E0, W_WA_E1, W_WA_E2,
 W_W1) = range(15)
N_WSLOTS = 15

(V_BQ_S, V_BK_S, V_BV_S, V_BO_S, V_G1, V_BE1,
 V_BQ_E, V_BK_E, V_BV_E, V_BO_E, V_G2, V_BE2,
 V_BA0, V_BA1, V_BA2,
 V_B1, V_B2, V_G3, V_BE3) = range(19)
N_VSLOTS = 19


# ---------------- Pallas kernel ----------------
def meshed_decoder_kernel(x_ref, enc_ref, pad_ref, mself_ref, menc_ref,
                          wp_ref, w2_ref, vp_ref, out_ref):
    f32 = jnp.float32
    BS = B * S
    BN = B * N

    def mat(slot, rows=D_MODEL, cols=D_MODEL):
        c = slot * LANE                      # 128-aligned start -> clean (8,128)-tile loads
        return wp_ref[0:rows, c:c + cols]

    def vec(slot, cols=D_MODEL):
        c = slot * LANE
        return vp_ref[:, c:c + cols]

    def ln(t, g, beta):
        mu = jnp.mean(t, axis=-1, keepdims=True)
        var = jnp.mean((t - mu) ** 2, axis=-1, keepdims=True)
        return (t - mu) / jnp.sqrt(var + EPS) * g + beta

    def attention(q, k, v, bias, wo):
        # q: (n_q, HD) pre-scaled by 1/sqrt(d_k); k, v: (n_k, HD); bias: (n_q, n_k) additive.
        # Per-head exact softmax; each head's PV result folds directly into the Wo projection
        # accumulation -> no sublane/lane concatenates.
        out = None
        for h in range(H):
            lo, hi = h * D_K, (h + 1) * D_K
            s = lax.dot_general(q[:, lo:hi], k[:, lo:hi], (((1,), (1,)), ((), ())),
                                preferred_element_type=f32) + bias
            m = jnp.max(s, axis=-1, keepdims=True)
            e = jnp.exp(s - m)
            p = e / jnp.sum(e, axis=-1, keepdims=True)            # exact divide (correctness fix)
            oh = jnp.dot(p, v[:, lo:hi], preferred_element_type=f32)       # (n_q, D_V)
            proj = jnp.dot(oh, wo[lo:hi, :], preferred_element_type=f32)   # (n_q, D)
            out = proj if out is None else out + proj
        return out

    X = x_ref[...]                       # (BS, D)   rows = (b, s)
    pad = pad_ref[...]                   # (BS, 1)

    # ---- block-diagonal additive masks built in-kernel (folded batch rows stay independent) ----
    neg_ss = jnp.full((S, S), NEG, f32)
    blocks = []
    for bb in range(B):
        blk = mself_ref[bb * S:(bb + 1) * S, :]                   # (S, S)
        blocks.append(jnp.concatenate(
            [blk if cc == bb else neg_ss for cc in range(B)], axis=1))
    mself_big = jnp.concatenate(blocks, axis=0)                   # (BS, BS)

    neg_n = jnp.full((1, N), NEG, f32)
    blocks = []
    for bb in range(B):
        row = jnp.concatenate(
            [menc_ref[bb:bb + 1, :] if cc == bb else neg_n for cc in range(B)], axis=1)
        blocks.append(jnp.broadcast_to(row, (S, BN)))
    menc_big = jnp.concatenate(blocks, axis=0)                    # (BS, BN), shared by all levels

    # ---------------- self attention (whole batch folded into one row dim) ----------------
    q_s = jnp.dot(X, mat(W_WQ_S), preferred_element_type=f32) + vec(V_BQ_S)
    k_s = jnp.dot(X, mat(W_WK_S), preferred_element_type=f32) + vec(V_BK_S)
    v_s = jnp.dot(X, mat(W_WV_S), preferred_element_type=f32) + vec(V_BV_S)
    o = attention(q_s, k_s, v_s, mself_big, mat(W_WO_S)) + vec(V_BO_S)
    sa = ln(X + o, vec(V_G1), vec(V_BE1)) * pad                   # (BS, D)

    # -------- cross attention: Q hoisted once, K/V for all 3 levels in one matmul each --------
    E = enc_ref[...]                                              # (NL*BN, D) rows = (level, b, n)
    q_e = jnp.dot(sa, mat(W_WQ_E), preferred_element_type=f32) + vec(V_BQ_E)
    k_e = jnp.dot(E, mat(W_WK_E), preferred_element_type=f32) + vec(V_BK_E)
    v_e = jnp.dot(E, mat(W_WV_E), preferred_element_type=f32) + vec(V_BV_E)

    wo_e = mat(W_WO_E)
    bo_e, g2, be2 = vec(V_BO_E), vec(V_G2), vec(V_BE2)
    acc = None
    for l in range(NL):                                           # per-level (BS, BN) tiles
        k_l = k_e[l * BN:(l + 1) * BN]                            # sublane-aligned value slices
        v_l = v_e[l * BN:(l + 1) * BN]
        o = attention(q_e, k_l, v_l, menc_big, wo_e) + bo_e
        ea = ln(sa + o, g2, be2) * pad                            # enc_att for this level (BS, D)
        # sigmoid alpha gating, fused per level (== fc_alpha(cat([sa, ea], -1)))
        logits = (jnp.dot(sa, mat(W_WA_S0 + l), preferred_element_type=f32)
                  + jnp.dot(ea, mat(W_WA_E0 + l), preferred_element_type=f32)
                  + vec(V_BA0 + l))
        g = ea * jax.nn.sigmoid(logits)
        acc = g if acc is None else acc + g
    enc_att = acc * (1.0 / float(np.sqrt(3.0))) * pad             # (BS, D)

    # ---------------- position-wise feed forward ----------------
    h1 = jnp.maximum(
        jnp.dot(enc_att, mat(W_W1, D_MODEL, D_FF), preferred_element_type=f32)
        + vec(V_B1, D_FF), 0.0)
    ffo = jnp.dot(h1, w2_ref[...], preferred_element_type=f32) + vec(V_B2)
    out_ref[...] = ln(enc_att + ffo, vec(V_G3), vec(V_BE3)) * pad   # 2-D output; reshape outside


# ---------------- wrapper (only free reshapes + the pallas_call on the per-step path) ----------------
@jax.jit
def meshed_decoder_layer(x, enc_lvl_major, mask_pad, mask_self, mask_enc_rows, WP, W2, VP):
    b, s, d = x.shape
    vmem = pl.BlockSpec(memory_space=pltpu.MemorySpace.VMEM)       # whole-array VMEM blocks
    out2d = pl.pallas_call(
        meshed_decoder_kernel,
        out_shape=jax.ShapeDtypeStruct((b * s, d), jnp.float32),
        in_specs=[vmem] * 8,
        out_specs=vmem,
    )(x.reshape(b * s, d),               # contiguous (free) reshapes only
      enc_lvl_major,                     # (NL*B*N, D), precomputed once (cacheable per sequence)
      mask_pad.reshape(b * s, 1),
      mask_self.reshape(b * s, s),
      mask_enc_rows,                     # (B, N)
      WP, W2, VP)
    return out2d.reshape(b, s, d)        # free metadata reshape in the wrapper


# ---------------- one-time parameter packing (hoisted off the per-call dispatch path) ----------------
def pack_params(p):
    """Pack the 26 parameter tensors into 128-lane-aligned slots. Runs ONCE per model."""
    scale = 1.0 / float(np.sqrt(D_K))
    WP = np.zeros((D_MODEL, N_WSLOTS * LANE), np.float32)
    VP = np.zeros((1, N_VSLOTS * LANE), np.float32)

    def put_w(slot, w):
        w = np.asarray(w, np.float32)
        WP[:w.shape[0], slot * LANE: slot * LANE + w.shape[1]] = w

    def put_v(slot, v):
        v = np.asarray(v, np.float32).reshape(1, -1)
        VP[:, slot * LANE: slot * LANE + v.shape[1]] = v

    put_w(W_WQ_S, p["wqkv_s"][:, 0:HD] * scale)      # 1/sqrt(d_k) folded into Q projection
    put_w(W_WK_S, p["wqkv_s"][:, HD:2 * HD])
    put_w(W_WV_S, p["wqkv_s"][:, 2 * HD:3 * HD])
    put_w(W_WO_S, p["wo_s"])
    put_w(W_WQ_E, p["wqkv_e"][:, 0:HD] * scale)
    put_w(W_WK_E, p["wqkv_e"][:, HD:2 * HD])
    put_w(W_WV_E, p["wqkv_e"][:, 2 * HD:3 * HD])
    put_w(W_WO_E, p["wo_e"])
    for l in range(NL):
        put_w(W_WA_S0 + l, p["wa_s"][l])
        put_w(W_WA_E0 + l, p["wa_e"][l])
    put_w(W_W1, p["w1"])

    put_v(V_BQ_S, p["bqkv_s"][:, 0:HD] * scale)
    put_v(V_BK_S, p["bqkv_s"][:, HD:2 * HD])
    put_v(V_BV_S, p["bqkv_s"][:, 2 * HD:3 * HD])
    put_v(V_BO_S, p["bo_s"])
    put_v(V_G1, p["g1"]); put_v(V_BE1, p["be1"])
    put_v(V_BQ_E, p["bqkv_e"][:, 0:HD] * scale)
    put_v(V_BK_E, p["bqkv_e"][:, HD:2 * HD])
    put_v(V_BV_E, p["bqkv_e"][:, 2 * HD:3 * HD])
    put_v(V_BO_E, p["bo_e"])
    put_v(V_G2, p["g2"]); put_v(V_BE2, p["be2"])
    for l in range(NL):
        put_v(V_BA0 + l, p["ba"][l])
    put_v(V_B1, p["b1"]); put_v(V_B2, p["b2"])
    put_v(V_G3, p["g3"]); put_v(V_BE3, p["be3"])

    return jnp.asarray(WP), jnp.asarray(p["w2"], dtype=jnp.float32), jnp.asarray(VP)


# ---------------- pure-JAX reference (for correctness check) ----------------
def _ref_ln(x, g, b):
    mu = x.mean(-1, keepdims=True)
    var = ((x - mu) ** 2).mean(-1, keepdims=True)
    return (x - mu) / jnp.sqrt(var + EPS) * g + b


def _ref_mha(q_in, kv_in, bias, wqkv, bqkv, wo, bo, g, beta):
    bq, sq, _ = q_in.shape
    nk = kv_in.shape[1]
    q = q_in @ wqkv[:, 0:HD] + bqkv[:, 0:HD]
    k = kv_in @ wqkv[:, HD:2 * HD] + bqkv[:, HD:2 * HD]
    v = kv_in @ wqkv[:, 2 * HD:3 * HD] + bqkv[:, 2 * HD:3 * HD]
    q = q.reshape(bq, sq, H, D_K).transpose(0, 2, 1, 3)
    k = k.reshape(bq, nk, H, D_K).transpose(0, 2, 1, 3)
    v = v.reshape(bq, nk, H, D_V).transpose(0, 2, 1, 3)
    att = jnp.einsum("bhqd,bhkd->bhqk", q, k) / np.sqrt(D_K) + bias[:, None]
    p = jax.nn.softmax(att, axis=-1)
    o = jnp.einsum("bhqk,bhkd->bhqd", p, v).transpose(0, 2, 1, 3).reshape(bq, sq, HD)
    o = o @ wo + bo
    return _ref_ln(q_in + o, g, beta)


def ref_forward(x, enc_out, pad, mself, menc, p):
    sa = _ref_mha(x, x, mself, p["wqkv_s"], p["bqkv_s"], p["wo_s"], p["bo_s"],
                  p["g1"], p["be1"]) * pad
    eas = []
    for i in range(NL):
        ea = _ref_mha(sa, enc_out[:, i], menc, p["wqkv_e"], p["bqkv_e"], p["wo_e"],
                      p["bo_e"], p["g2"], p["be2"]) * pad
        eas.append(ea)
    acc = 0.0
    for i in range(NL):
        logits = sa @ p["wa_s"][i] + eas[i] @ p["wa_e"][i] + p["ba"][i]
        acc = acc + eas[i] * jax.nn.sigmoid(logits)
    enc_att = acc / np.sqrt(3.0) * pad
    h1 = jax.nn.relu(enc_att @ p["w1"] + p["b1"])
    ffo = h1 @ p["w2"] + p["b2"]
    ff = _ref_ln(enc_att + ffo, p["g3"], p["be3"])
    return ff * pad


# ---------------- deterministic parameter init ----------------
def _xavier(key, shape):
    fan_in, fan_out = shape[-2], shape[-1]
    lim = float(np.sqrt(6.0 / (fan_in + fan_out)))
    return jax.random.uniform(key, shape, jnp.float32, -lim, lim)


def init_params(key):
    ks = jax.random.split(key, 16)
    return {
        # self-attention MHA (packed q|k|v projections)
        "wqkv_s": _xavier(ks[0], (D_MODEL, 3 * HD)),
        "bqkv_s": jnp.zeros((1, 3 * HD), jnp.float32),
        "wo_s": _xavier(ks[1], (HD, D_MODEL)),
        "bo_s": jnp.zeros((1, D_MODEL), jnp.float32),
        "g1": jnp.ones((1, D_MODEL), jnp.float32),
        "be1": jnp.zeros((1, D_MODEL), jnp.float32),
        # encoder (cross) MHA (shared across the 3 levels)
        "wqkv_e": _xavier(ks[2], (D_MODEL, 3 * HD)),
        "bqkv_e": jnp.zeros((1, 3 * HD), jnp.float32),
        "wo_e": _xavier(ks[3], (HD, D_MODEL)),
        "bo_e": jnp.zeros((1, D_MODEL), jnp.float32),
        "g2": jnp.ones((1, D_MODEL), jnp.float32),
        "be2": jnp.zeros((1, D_MODEL), jnp.float32),
        # fc_alpha1..3 : Linear(2*D, D) split into self_att half and enc_att half
        "wa_s": _xavier(ks[4], (NL, D_MODEL, D_MODEL)),
        "wa_e": _xavier(ks[5], (NL, D_MODEL, D_MODEL)),
        "ba": jnp.zeros((NL, D_MODEL), jnp.float32),
        # position-wise feed forward
        "w1": _xavier(ks[6], (D_MODEL, D_FF)),
        "b1": jnp.zeros((1, D_FF), jnp.float32),
        "w2": _xavier(ks[7], (D_FF, D_MODEL)),
        "b2": jnp.zeros((1, D_MODEL), jnp.float32),
        "g3": jnp.ones((1, D_MODEL), jnp.float32),
        "be3": jnp.zeros((1, D_MODEL), jnp.float32),
    }


# ---------------- main ----------------
if __name__ == "__main__":
    key = jax.random.PRNGKey(0)
    k_param, k_x, k_enc = jax.random.split(key, 3)
    params = init_params(k_param)

    x = jax.random.normal(k_x, (B, S, D_MODEL), jnp.float32)
    enc_out = jax.random.normal(k_enc, (B, NL, N, D_MODEL), jnp.float32)

    # padding mask (B, S, 1): 1 for valid tokens, 0 for pad (batch 1 has 2 padded tokens)
    valid = jnp.arange(S)[None, :] < jnp.array([S, S - 2])[:, None]
    mask_pad = valid.astype(jnp.float32)[:, :, None]

    # self-attention mask (causal OR key-is-pad) -> additive bias (B, S, S)
    causal = jnp.triu(jnp.ones((S, S), bool), k=1)
    self_masked = causal[None, :, :] | (~valid)[:, None, :]
    mask_self = jnp.where(self_masked, NEG, 0.0).astype(jnp.float32)

    # encoder-attention mask -> additive bias (B, 1, N) (batch 1 has 3 masked regions)
    enc_valid = jnp.arange(N)[None, :] < jnp.array([N, N - 3])[:, None]
    mask_enc = jnp.where(enc_valid, 0.0, NEG).astype(jnp.float32)[:, None, :]

    # One-time, cacheable prep hoisted off the per-step dispatch path (review item):
    WP, W2, VP = pack_params(params)                                    # parameters: per model
    enc_lvl_major = jnp.transpose(enc_out, (1, 0, 2, 3)).reshape(NL * B * N, D_MODEL)  # per sequence
    mask_enc_rows = mask_enc.reshape(B, N)                              # per sequence

    out = meshed_decoder_layer(x, enc_lvl_major, mask_pad, mask_self, mask_enc_rows, WP, W2, VP)
    out = jax.block_until_ready(out)

    ref = ref_forward(x, enc_out, mask_pad, mask_self, mask_enc, params)
    # Softmax now uses an exact divide; remaining deviation is only f32 MXU pass emulation /
    # op-ordering differences vs the XLA reference (well inside 2e-3).
    np.testing.assert_allclose(np.asarray(out), np.asarray(ref), rtol=2e-3, atol=2e-3)

    # TODO(synk): the custom MultiHeadAttention signature (`input_gl`, `isencoder`) is not
    # public; standard M2 post-norm MHA (QKV proj -> scaled dot softmax -> out proj ->
    # residual + LayerNorm) semantics are used, dropout in eval mode.
    print("KERNEL_OK")
</pallas_src>

<mosaic_0001>
module attributes {stable_mosaic.version = 11 : i64} {
  func.func @meshed_decoder_kernel(%arg0: memref<16x32xf32, #tpu.memory_space<vmem>>, %arg1: memref<96x32xf32, #tpu.memory_space<vmem>>, %arg2: memref<16x1xf32, #tpu.memory_space<vmem>>, %arg3: memref<16x8xf32, #tpu.memory_space<vmem>>, %arg4: memref<2x16xf32, #tpu.memory_space<vmem>>, %arg5: memref<32x1920xf32, #tpu.memory_space<vmem>>, %arg6: memref<64x32xf32, #tpu.memory_space<vmem>>, %arg7: memref<1x2432xf32, #tpu.memory_space<vmem>>, %arg8: memref<16x32xf32, #tpu.memory_space<vmem>>) attributes {dimension_semantics = [], scalar_prefetch = 0 : i64, scratch_operands = 0 : i64, tpu.core_type = #tpu.core_type<tc>} {
    %c0 = arith.constant 0 : index
    %c0_0 = arith.constant 0 : index
    %0 = vector.load %arg0[%c0, %c0_0] : memref<16x32xf32, #tpu.memory_space<vmem>>, vector<16x32xf32>
    %c0_1 = arith.constant 0 : index
    %c0_2 = arith.constant 0 : index
    %1 = vector.load %arg2[%c0_1, %c0_2] : memref<16x1xf32, #tpu.memory_space<vmem>>, vector<16x1xf32>
    %cst = arith.constant -1.000000e+30 : f32
    %2 = vector.broadcast %cst : f32 to vector<8x8xf32>
    %c0_3 = arith.constant 0 : index
    %c0_4 = arith.constant 0 : index
    %3 = vector.load %arg3[%c0_3, %c0_4] : memref<16x8xf32, #tpu.memory_space<vmem>>, vector<8x8xf32>
    %4 = tpu.concatenate %3, %2 in 1 : vector<8x8xf32>, vector<8x8xf32> -> vector<8x16xf32>
    %c8 = arith.constant 8 : index
    %c0_5 = arith.constant 0 : index
    %5 = vector.load %arg3[%c8, %c0_5] : memref<16x8xf32, #tpu.memory_space<vmem>>, vector<8x8xf32>
    %6 = tpu.concatenate %2, %5 in 1 : vector<8x8xf32>, vector<8x8xf32> -> vector<8x16xf32>
    %7 = tpu.concatenate %4, %6 in 0 : vector<8x16xf32>, vector<8x16xf32> -> vector<16x16xf32>
    %cst_6 = arith.constant -1.000000e+30 : f32
    %8 = vector.broadcast %cst_6 : f32 to vector<1x16xf32>
    %c0_7 = arith.constant 0 : index
    %c0_8 = arith.constant 0 : index
    %9 = vector.load %arg4[%c0_7, %c0_8] : memref<2x16xf32, #tpu.memory_space<vmem>>, vector<1x16xf32>
    %10 = tpu.concatenate %9, %8 in 1 : vector<1x16xf32>, vector<1x16xf32> -> vector<1x32xf32>
    %11 = vector.shape_cast %10 : vector<1x32xf32> to vector<1x32xf32>
    %12 = vector.broadcast %11 : vector<1x32xf32> to vector<8x32xf32>
    %c1 = arith.constant 1 : index
    %c0_9 = arith.constant 0 : index
    %13 = vector.load %arg4[%c1, %c0_9] : memref<2x16xf32, #tpu.memory_space<vmem>>, vector<1x16xf32>
    %14 = tpu.concatenate %8, %13 in 1 : vector<1x16xf32>, vector<1x16xf32> -> vector<1x32xf32>
    %15 = vector.shape_cast %14 : vector<1x32xf32> to vector<1x32xf32>
    %16 = vector.broadcast %15 : vector<1x32xf32> to vector<8x32xf32>
    %17 = tpu.concatenate %12, %16 in 0 : vector<8x32xf32>, vector<8x32xf32> -> vector<16x32xf32>
    %c0_10 = arith.constant 0 : index
    %c0_11 = arith.constant 0 : index
    %18 = vector.load %arg5[%c0_10, %c0_11] : memref<32x1920xf32, #tpu.memory_space<vmem>>, vector<32x32xf32>
    %cst_12 = arith.constant dense<0.000000e+00> : vector<16x32xf32>
    %19 = tpu.matmul %0, %18, %cst_12 {dimension_numbers = #tpu.dot_dimension_numbers<[1], [0], [0], [1], [0, 0, 1, 1], [], []>} : vector<16x32xf32>, vector<32x32xf32>, vector<16x32xf32> -> vector<16x32xf32>
    %c0_13 = arith.constant 0 : index
    %c0_14 = arith.constant 0 : index
    %20 = vector.load %arg7[%c0_13, %c0_14] : memref<1x2432xf32, #tpu.memory_space<vmem>>, vector<1x32xf32>
    %21 = vector.broadcast %20 : vector<1x32xf32> to vector<16x32xf32>
    %22 = arith.addf %19, %21 : vector<16x32xf32>
    %c0_15 = arith.constant 0 : index
    %c128 = arith.constant 128 : index
    %23 = vector.load %arg5[%c0_15, %c128] : memref<32x1920xf32, #tpu.memory_space<vmem>>, vector<32x32xf32>
    %cst_16 = arith.constant dense<0.000000e+00> : vector<16x32xf32>
    %24 = tpu.matmul %0, %23, %cst_16 {dimension_numbers = #tpu.dot_dimension_numbers<[1], [0], [0], [1], [0, 0, 1, 1], [], []>} : vector<16x32xf32>, vector<32x32xf32>, vector<16x32xf32> -> vector<16x32xf32>
    %c0_17 = arith.constant 0 : index
    %c128_18 = arith.constant 128 : index
    %25 = vector.load %arg7[%c0_17, %c128_18] : memref<1x2432xf32, #tpu.memory_space<vmem>>, vector<1x32xf32>
    %26 = vector.broadcast %25 : vector<1x32xf32> to vector<16x32xf32>
    %27 = arith.addf %24, %26 : vector<16x32xf32>
    %c0_19 = arith.constant 0 : index
    %c256 = arith.constant 256 : index
    %28 = vector.load %arg5[%c0_19, %c256] : memref<32x1920xf32, #tpu.memory_space<vmem>>, vector<32x32xf32>
    %cst_20 = arith.constant dense<0.000000e+00> : vector<16x32xf32>
    %29 = tpu.matmul %0, %28, %cst_20 {dimension_numbers = #tpu.dot_dimension_numbers<[1], [0], [0], [1], [0, 0, 1, 1], [], []>} : vector<16x32xf32>, vector<32x32xf32>, vector<16x32xf32> -> vector<16x32xf32>
    %c0_21 = arith.constant 0 : index
    %c256_22 = arith.constant 256 : index
    %30 = vector.load %arg7[%c0_21, %c256_22] : memref<1x2432xf32, #tpu.memory_space<vmem>>, vector<1x32xf32>
    %31 = vector.broadcast %30 : vector<1x32xf32> to vector<16x32xf32>
    %32 = arith.addf %29, %31 : vector<16x32xf32>
    %c0_23 = arith.constant 0 : index
    %c384 = arith.constant 384 : index
    %33 = vector.load %arg5[%c0_23, %c384] : memref<32x1920xf32, #tpu.memory_space<vmem>>, vector<32x32xf32>
    %34 = vector.extract_strided_slice %22 {offsets = [0, 0], sizes = [16, 8], strides = [1, 1]} : vector<16x32xf32> to vector<16x8xf32>
    %35 = vector.extract_strided_slice %27 {offsets = [0, 0], sizes = [16, 8], strides = [1, 1]} : vector<16x32xf32> to vector<16x8xf32>
    %cst_24 = arith.constant dense<0.000000e+00> : vector<16x16xf32>
    %36 = tpu.matmul %34, %35, %cst_24 {dimension_numbers = #tpu.dot_dimension_numbers<[1], [1], [0], [0], [0, 0, 1, 0], [], []>} : vector<16x8xf32>, vector<16x8xf32>, vector<16x16xf32> -> vector<16x16xf32>
    %37 = arith.addf %36, %7 : vector<16x16xf32>
    %cst_25 = arith.constant dense<0xFF800000> : vector<16xf32>
    %38 = vector.multi_reduction <maximumf>, %37, %cst_25 [1] : vector<16x16xf32> to vector<16xf32>
    %39 = vector.shape_cast %38 : vector<16xf32> to vector<16x1xf32>
    %40 = vector.broadcast %39 : vector<16x1xf32> to vector<16x16xf32>
    %41 = arith.subf %37, %40 : vector<16x16xf32>
    %42 = math.exp %41 : vector<16x16xf32>
    %cst_26 = arith.constant dense<0.000000e+00> : vector<16xf32>
    %43 = vector.multi_reduction <add>, %42, %cst_26 [1] : vector<16x16xf32> to vector<16xf32>
    %44 = vector.shape_cast %43 : vector<16xf32> to vector<16x1xf32>
    %45 = vector.broadcast %44 : vector<16x1xf32> to vector<16x16xf32>
    %46 = arith.divf %42, %45 : vector<16x16xf32>
    %47 = vector.extract_strided_slice %32 {offsets = [0, 0], sizes = [16, 8], strides = [1, 1]} : vector<16x32xf32> to vector<16x8xf32>
    %cst_27 = arith.constant dense<0.000000e+00> : vector<16x8xf32>
    %48 = tpu.matmul %46, %47, %cst_27 {dimension_numbers = #tpu.dot_dimension_numbers<[1], [0], [0], [1], [0, 0, 1, 1], [], []>} : vector<16x16xf32>, vector<16x8xf32>, vector<16x8xf32> -> vector<16x8xf32>
    %49 = vector.extract_strided_slice %33 {offsets = [0, 0], sizes = [8, 32], strides = [1, 1]} : vector<32x32xf32> to vector<8x32xf32>
    %cst_28 = arith.constant dense<0.000000e+00> : vector<16x32xf32>
    %50 = tpu.matmul %48, %49, %cst_28 {dimension_numbers = #tpu.dot_dimension_numbers<[1], [0], [0], [1], [0, 0, 1, 1], [], []>} : vector<16x8xf32>, vector<8x32xf32>, vector<16x32xf32> -> vector<16x32xf32>
    %51 = vector.extract_strided_slice %22 {offsets = [0, 8], sizes = [16, 8], strides = [1, 1]} : vector<16x32xf32> to vector<16x8xf32>
    %52 = vector.extract_strided_slice %27 {offsets = [0, 8], sizes = [16, 8], strides = [1, 1]} : vector<16x32xf32> to vector<16x8xf32>
    %cst_29 = arith.constant dense<0.000000e+00> : vector<16x16xf32>
    %53 = tpu.matmul %51, %52, %cst_29 {dimension_numbers = #tpu.dot_dimension_numbers<[1], [1], [0], [0], [0, 0, 1, 0], [], []>} : vector<16x8xf32>, vector<16x8xf32>, vector<16x16xf32> -> vector<16x16xf32>
    %54 = arith.addf %53, %7 : vector<16x16xf32>
    %cst_30 = arith.constant dense<0xFF800000> : vector<16xf32>
    %55 = vector.multi_reduction <maximumf>, %54, %cst_30 [1] : vector<16x16xf32> to vector<16xf32>
    %56 = vector.shape_cast %55 : vector<16xf32> to vector<16x1xf32>
    %57 = vector.broadcast %56 : vector<16x1xf32> to vector<16x16xf32>
    %58 = arith.subf %54, %57 : vector<16x16xf32>
    %59 = math.exp %58 : vector<16x16xf32>
    %cst_31 = arith.constant dense<0.000000e+00> : vector<16xf32>
    %60 = vector.multi_reduction <add>, %59, %cst_31 [1] : vector<16x16xf32> to vector<16xf32>
    %61 = vector.shape_cast %60 : vector<16xf32> to vector<16x1xf32>
    %62 = vector.broadcast %61 : vector<16x1xf32> to vector<16x16xf32>
    %63 = arith.divf %59, %62 : vector<16x16xf32>
    %64 = vector.extract_strided_slice %32 {offsets = [0, 8], sizes = [16, 8], strides = [1, 1]} : vector<16x32xf32> to vector<16x8xf32>
    %cst_32 = arith.constant dense<0.000000e+00> : vector<16x8xf32>
    %65 = tpu.matmul %63, %64, %cst_32 {dimension_numbers = #tpu.dot_dimension_numbers<[1], [0], [0], [1], [0, 0, 1, 1], [], []>} : vector<16x16xf32>, vector<16x8xf32>, vector<16x8xf32> -> vector<16x8xf32>
    %66 = vector.extract_strided_slice %33 {offsets = [8, 0], sizes = [8, 32], strides = [1, 1]} : vector<32x32xf32> to vector<8x32xf32>
    %cst_33 = arith.constant dense<0.000000e+00> : vector<16x32xf32>
    %67 = tpu.matmul %65, %66, %cst_33 {dimension_numbers = #tpu.dot_dimension_numbers<[1], [0], [0], [1], [0, 0, 1, 1], [], []>} : vector<16x8xf32>, vector<8x32xf32>, vector<16x32xf32> -> vector<16x32xf32>
    %68 = arith.addf %50, %67 : vector<16x32xf32>
    %69 = vector.extract_strided_slice %22 {offsets = [0, 16], sizes = [16, 8], strides = [1, 1]} : vector<16x32xf32> to vector<16x8xf32>
    %70 = vector.extract_strided_slice %27 {offsets = [0, 16], sizes = [16, 8], strides = [1, 1]} : vector<16x32xf32> to vector<16x8xf32>
    %cst_34 = arith.constant dense<0.000000e+00> : vector<16x16xf32>
    %71 = tpu.matmul %69, %70, %cst_34 {dimension_numbers = #tpu.dot_dimension_numbers<[1], [1], [0], [0], [0, 0, 1, 0], [], []>} : vector<16x8xf32>, vector<16x8xf32>, vector<16x16xf32> -> vector<16x16xf32>
    %72 = arith.addf %71, %7 : vector<16x16xf32>
    %cst_35 = arith.constant dense<0xFF800000> : vector<16xf32>
    %73 = vector.multi_reduction <maximumf>, %72, %cst_35 [1] : vector<16x16xf32> to vector<16xf32>
    %74 = vector.shape_cast %73 : vector<16xf32> to vector<16x1xf32>
    %75 = vector.broadcast %74 : vector<16x1xf32> to vector<16x16xf32>
    %76 = arith.subf %72, %75 : vector<16x16xf32>
    %77 = math.exp %76 : vector<16x16xf32>
    %cst_36 = arith.constant dense<0.000000e+00> : vector<16xf32>
    %78 = vector.multi_reduction <add>, %77, %cst_36 [1] : vector<16x16xf32> to vector<16xf32>
    %79 = vector.shape_cast %78 : vector<16xf32> to vector<16x1xf32>
    %80 = vector.broadcast %79 : vector<16x1xf32> to vector<16x16xf32>
    %81 = arith.divf %77, %80 : vector<16x16xf32>
    %82 = vector.extract_strided_slice %32 {offsets = [0, 16], sizes = [16, 8], strides = [1, 1]} : vector<16x32xf32> to vector<16x8xf32>
    %cst_37 = arith.constant dense<0.000000e+00> : vector<16x8xf32>
    %83 = tpu.matmul %81, %82, %cst_37 {dimension_numbers = #tpu.dot_dimension_numbers<[1], [0], [0], [1], [0, 0, 1, 1], [], []>} : vector<16x16xf32>, vector<16x8xf32>, vector<16x8xf32> -> vector<16x8xf32>
    %84 = vector.extract_strided_slice %33 {offsets = [16, 0], sizes = [8, 32], strides = [1, 1]} : vector<32x32xf32> to vector<8x32xf32>
    %cst_38 = arith.constant dense<0.000000e+00> : vector<16x32xf32>
    %85 = tpu.matmul %83, %84, %cst_38 {dimension_numbers = #tpu.dot_dimension_numbers<[1], [0], [0], [1], [0, 0, 1, 1], [], []>} : vector<16x8xf32>, vector<8x32xf32>, vector<16x32xf32> -> vector<16x32xf32>
    %86 = arith.addf %68, %85 : vector<16x32xf32>
    %87 = vector.extract_strided_slice %22 {offsets = [0, 24], sizes = [16, 8], strides = [1, 1]} : vector<16x32xf32> to vector<16x8xf32>
    %88 = vector.extract_strided_slice %27 {offsets = [0, 24], sizes = [16, 8], strides = [1, 1]} : vector<16x32xf32> to vector<16x8xf32>
    %cst_39 = arith.constant dense<0.000000e+00> : vector<16x16xf32>
    %89 = tpu.matmul %87, %88, %cst_39 {dimension_numbers = #tpu.dot_dimension_numbers<[1], [1], [0], [0], [0, 0, 1, 0], [], []>} : vector<16x8xf32>, vector<16x8xf32>, vector<16x16xf32> -> vector<16x16xf32>
    %90 = arith.addf %89, %7 : vector<16x16xf32>
    %cst_40 = arith.constant dense<0xFF800000> : vector<16xf32>
    %91 = vector.multi_reduction <maximumf>, %90, %cst_40 [1] : vector<16x16xf32> to vector<16xf32>
    %92 = vector.shape_cast %91 : vector<16xf32> to vector<16x1xf32>
    %93 = vector.broadcast %92 : vector<16x1xf32> to vector<16x16xf32>
    %94 = arith.subf %90, %93 : vector<16x16xf32>
    %95 = math.exp %94 : vector<16x16xf32>
    %cst_41 = arith.constant dense<0.000000e+00> : vector<16xf32>
    %96 = vector.multi_reduction <add>, %95, %cst_41 [1] : vector<16x16xf32> to vector<16xf32>
    %97 = vector.shape_cast %96 : vector<16xf32> to vector<16x1xf32>
    %98 = vector.broadcast %97 : vector<16x1xf32> to vector<16x16xf32>
    %99 = arith.divf %95, %98 : vector<16x16xf32>
    %100 = vector.extract_strided_slice %32 {offsets = [0, 24], sizes = [16, 8], strides = [1, 1]} : vector<16x32xf32> to vector<16x8xf32>
    %cst_42 = arith.constant dense<0.000000e+00> : vector<16x8xf32>
    %101 = tpu.matmul %99, %100, %cst_42 {dimension_numbers = #tpu.dot_dimension_numbers<[1], [0], [0], [1], [0, 0, 1, 1], [], []>} : vector<16x16xf32>, vector<16x8xf32>, vector<16x8xf32> -> vector<16x8xf32>
    %102 = vector.extract_strided_slice %33 {offsets = [24, 0], sizes = [8, 32], strides = [1, 1]} : vector<32x32xf32> to vector<8x32xf32>
    %cst_43 = arith.constant dense<0.000000e+00> : vector<16x32xf32>
    %103 = tpu.matmul %101, %102, %cst_43 {dimension_numbers = #tpu.dot_dimension_numbers<[1], [0], [0], [1], [0, 0, 1, 1], [], []>} : vector<16x8xf32>, vector<8x32xf32>, vector<16x32xf32> -> vector<16x32xf32>
    %104 = arith.addf %86, %103 : vector<16x32xf32>
    %c0_44 = arith.constant 0 : index
    %c384_45 = arith.constant 384 : index
    %105 = vector.load %arg7[%c0_44, %c384_45] : memref<1x2432xf32, #tpu.memory_space<vmem>>, vector<1x32xf32>
    %106 = vector.broadcast %105 : vector<1x32xf32> to vector<16x32xf32>
    %107 = arith.addf %104, %106 : vector<16x32xf32>
    %108 = arith.addf %0, %107 : vector<16x32xf32>
    %c0_46 = arith.constant 0 : index
    %c512 = arith.constant 512 : index
    %109 = vector.load %arg7[%c0_46, %c512] : memref<1x2432xf32, #tpu.memory_space<vmem>>, vector<1x32xf32>
    %c0_47 = arith.constant 0 : index
    %c640 = arith.constant 640 : index
    %110 = vector.load %arg7[%c0_47, %c640] : memref<1x2432xf32, #tpu.memory_space<vmem>>, vector<1x32xf32>
    %cst_48 = arith.constant dense<0.000000e+00> : vector<16xf32>
    %111 = vector.multi_reduction <add>, %108, %cst_48 [1] : vector<16x32xf32> to vector<16xf32>
    %112 = vector.shape_cast %111 : vector<16xf32> to vector<16x1xf32>
    %cst_49 = arith.constant 3.200000e+01 : f32
    %113 = vector.broadcast %cst_49 : f32 to vector<16x1xf32>
    %114 = arith.divf %112, %113 : vector<16x1xf32>
    %115 = vector.broadcast %114 : vector<16x1xf32> to vector<16x32xf32>
    %116 = arith.subf %108, %115 : vector<16x32xf32>
    %117 = arith.mulf %116, %116 : vector<16x32xf32>
    %cst_50 = arith.constant dense<0.000000e+00> : vector<16xf32>
    %118 = vector.multi_reduction <add>, %117, %cst_50 [1] : vector<16x32xf32> to vector<16xf32>
    %119 = vector.shape_cast %118 : vector<16xf32> to vector<16x1xf32>
    %cst_51 = arith.constant 3.200000e+01 : f32
    %120 = vector.broadcast %cst_51 : f32 to vector<16x1xf32>
    %121 = arith.divf %119, %120 : vector<16x1xf32>
    %122 = vector.broadcast %114 : vector<16x1xf32> to vector<16x32xf32>
    %123 = arith.subf %108, %122 : vector<16x32xf32>
    %cst_52 = arith.constant 9.99999974E-6 : f32
    %124 = vector.broadcast %cst_52 : f32 to vector<16x1xf32>
    %125 = arith.addf %121, %124 : vector<16x1xf32>
    %126 = math.sqrt %125 : vector<16x1xf32>
    %127 = vector.broadcast %126 : vector<16x1xf32> to vector<16x32xf32>
    %128 = arith.divf %123, %127 : vector<16x32xf32>
    %129 = vector.broadcast %109 : vector<1x32xf32> to vector<16x32xf32>
    %130 = arith.mulf %128, %129 : vector<16x32xf32>
    %131 = vector.broadcast %110 : vector<1x32xf32> to vector<16x32xf32>
    %132 = arith.addf %130, %131 : vector<16x32xf32>
    %133 = vector.broadcast %1 : vector<16x1xf32> to vector<16x32xf32>
    %134 = arith.mulf %132, %133 : vector<16x32xf32>
    %c0_53 = arith.constant 0 : index
    %c0_54 = arith.constant 0 : index
    %135 = vector.load %arg1[%c0_53, %c0_54] : memref<96x32xf32, #tpu.memory_space<vmem>>, vector<96x32xf32>
    %c0_55 = arith.constant 0 : index
    %c512_56 = arith.constant 512 : index
    %136 = vector.load %arg5[%c0_55, %c512_56] : memref<32x1920xf32, #tpu.memory_space<vmem>>, vector<32x32xf32>
    %cst_57 = arith.constant dense<0.000000e+00> : vector<16x32xf32>
    %137 = tpu.matmul %134, %136, %cst_57 {dimension_numbers = #tpu.dot_dimension_numbers<[1], [0], [0], [1], [0, 0, 1, 1], [], []>} : vector<16x32xf32>, vector<32x32xf32>, vector<16x32xf32> -> vector<16x32xf32>
    %c0_58 = arith.constant 0 : index
    %c768 = arith.constant 768 : index
    %138 = vector.load %arg7[%c0_58, %c768] : memref<1x2432xf32, #tpu.memory_space<vmem>>, vector<1x32xf32>
    %139 = vector.broadcast %138 : vector<1x32xf32> to vector<16x32xf32>
    %140 = arith.addf %137, %139 : vector<16x32xf32>
    %c0_59 = arith.constant 0 : index
    %c640_60 = arith.constant 640 : index
    %141 = vector.load %arg5[%c0_59, %c640_60] : memref<32x1920xf32, #tpu.memory_space<vmem>>, vector<32x32xf32>
    %cst_61 = arith.constant dense<0.000000e+00> : vector<96x32xf32>
    %142 = tpu.matmul %135, %141, %cst_61 {dimension_numbers = #tpu.dot_dimension_numbers<[1], [0], [0], [1], [0, 0, 1, 1], [], []>} : vector<96x32xf32>, vector<32x32xf32>, vector<96x32xf32> -> vector<96x32xf32>
    %c0_62 = arith.constant 0 : index
    %c896 = arith.constant 896 : index
    %143 = vector.load %arg7[%c0_62, %c896] : memref<1x2432xf32, #tpu.memory_space<vmem>>, vector<1x32xf32>
    %144 = vector.broadcast %143 : vector<1x32xf32> to vector<96x32xf32>
    %145 = arith.addf %142, %144 : vector<96x32xf32>
    %c0_63 = arith.constant 0 : index
    %c768_64 = arith.constant 768 : index
    %146 = vector.load %arg5[%c0_63, %c768_64] : memref<32x1920xf32, #tpu.memory_space<vmem>>, vector<32x32xf32>
    %cst_65 = arith.constant dense<0.000000e+00> : vector<96x32xf32>
    %147 = tpu.matmul %135, %146, %cst_65 {dimension_numbers = #tpu.dot_dimension_numbers<[1], [0], [0], [1], [0, 0, 1, 1], [], []>} : vector<96x32xf32>, vector<32x32xf32>, vector<96x32xf32> -> vector<96x32xf32>
    %c0_66 = arith.constant 0 : index
    %c1024 = arith.constant 1024 : index
    %148 = vector.load %arg7[%c0_66, %c1024] : memref<1x2432xf32, #tpu.memory_space<vmem>>, vector<1x32xf32>
    %149 = vector.broadcast %148 : vector<1x32xf32> to vector<96x32xf32>
    %150 = arith.addf %147, %149 : vector<96x32xf32>
    %c0_67 = arith.constant 0 : index
    %c896_68 = arith.constant 896 : index
    %151 = vector.load %arg5[%c0_67, %c896_68] : memref<32x1920xf32, #tpu.memory_space<vmem>>, vector<32x32xf32>
    %c0_69 = arith.constant 0 : index
    %c1152 = arith.constant 1152 : index
    %152 = vector.load %arg7[%c0_69, %c1152] : memref<1x2432xf32, #tpu.memory_space<vmem>>, vector<1x32xf32>
    %c0_70 = arith.constant 0 : index
    %c1280 = arith.constant 1280 : index
    %153 = vector.load %arg7[%c0_70, %c1280] : memref<1x2432xf32, #tpu.memory_space<vmem>>, vector<1x32xf32>
    %c0_71 = arith.constant 0 : index
    %c1408 = arith.constant 1408 : index
    %154 = vector.load %arg7[%c0_71, %c1408] : memref<1x2432xf32, #tpu.memory_space<vmem>>, vector<1x32xf32>
    %155 = vector.extract_strided_slice %145 {offsets = [0, 0], sizes = [32, 32], strides = [1, 1]} : vector<96x32xf32> to vector<32x32xf32>
    %156 = vector.extract_strided_slice %150 {offsets = [0, 0], sizes = [32, 32], strides = [1, 1]} : vector<96x32xf32> to vector<32x32xf32>
    %157 = vector.extract_strided_slice %140 {offsets = [0, 0], sizes = [16, 8], strides = [1, 1]} : vector<16x32xf32> to vector<16x8xf32>
    %158 = vector.extract_strided_slice %155 {offsets = [0, 0], sizes = [32, 8], strides = [1, 1]} : vector<32x32xf32> to vector<32x8xf32>
    %cst_72 = arith.constant dense<0.000000e+00> : vector<16x32xf32>
    %159 = tpu.matmul %157, %158, %cst_72 {dimension_numbers = #tpu.dot_dimension_numbers<[1], [1], [0], [0], [0, 0, 1, 0], [], []>} : vector<16x8xf32>, vector<32x8xf32>, vector<16x32xf32> -> vector<16x32xf32>
    %160 = arith.addf %159, %17 : vector<16x32xf32>
    %cst_73 = arith.constant dense<0xFF800000> : vector<16xf32>
    %161 = vector.multi_reduction <maximumf>, %160, %cst_73 [1] : vector<16x32xf32> to vector<16xf32>
    %162 = vector.shape_cast %161 : vector<16xf32> to vector<16x1xf32>
    %163 = vector.broadcast %162 : vector<16x1xf32> to vector<16x32xf32>
    %164 = arith.subf %160, %163 : vector<16x32xf32>
    %165 = math.exp %164 : vector<16x32xf32>
    %cst_74 = arith.constant dense<0.000000e+00> : vector<16xf32>
    %166 = vector.multi_reduction <add>, %165, %cst_74 [1] : vector<16x32xf32> to vector<16xf32>
    %167 = vector.shape_cast %166 : vector<16xf32> to vector<16x1xf32>
    %168 = vector.broadcast %167 : vector<16x1xf32> to vector<16x32xf32>
    %169 = arith.divf %165, %168 : vector<16x32xf32>
    %170 = vector.extract_strided_slice %156 {offsets = [0, 0], sizes = [32, 8], strides = [1, 1]} : vector<32x32xf32> to vector<32x8xf32>
    %cst_75 = arith.constant dense<0.000000e+00> : vector<16x8xf32>
    %171 = tpu.matmul %169, %170, %cst_75 {dimension_numbers = #tpu.dot_dimension_numbers<[1], [0], [0], [1], [0, 0, 1, 1], [], []>} : vector<16x32xf32>, vector<32x8xf32>, vector<16x8xf32> -> vector<16x8xf32>
    %172 = vector.extract_strided_slice %151 {offsets = [0, 0], sizes = [8, 32], strides = [1, 1]} : vector<32x32xf32> to vector<8x32xf32>
    %cst_76 = arith.constant dense<0.000000e+00> : vector<16x32xf32>
    %173 = tpu.matmul %171, %172, %cst_76 {dimension_numbers = #tpu.dot_dimension_numbers<[1], [0], [0], [1], [0, 0, 1, 1], [], []>} : vector<16x8xf32>, vector<8x32xf32>, vector<16x32xf32> -> vector<16x32xf32>
    %174 = vector.extract_strided_slice %140 {offsets = [0, 8], sizes = [16, 8], strides = [1, 1]} : vector<16x32xf32> to vector<16x8xf32>
    %175 = vector.extract_strided_slice %155 {offsets = [0, 8], sizes = [32, 8], strides = [1, 1]} : vector<32x32xf32> to vector<32x8xf32>
    %cst_77 = arith.constant dense<0.000000e+00> : vector<16x32xf32>
    %176 = tpu.matmul %174, %175, %cst_77 {dimension_numbers = #tpu.dot_dimension_numbers<[1], [1], [0], [0], [0, 0, 1, 0], [], []>} : vector<16x8xf32>, vector<32x8xf32>, vector<16x32xf32> -> vector<16x32xf32>
    %177 = arith.addf %176, %17 : vector<16x32xf32>
    %cst_78 = arith.constant dense<0xFF800000> : vector<16xf32>
    %178 = vector.multi_reduction <maximumf>, %177, %cst_78 [1] : vector<16x32xf32> to vector<16xf32>
    %179 = vector.shape_cast %178 : vector<16xf32> to vector<16x1xf32>
    %180 = vector.broadcast %179 : vector<16x1xf32> to vector<16x32xf32>
    %181 = arith.subf %177, %180 : vector<16x32xf32>
    %182 = math.exp %181 : vector<16x32xf32>
    %cst_79 = arith.constant dense<0.000000e+00> : vector<16xf32>
    %183 = vector.multi_reduction <add>, %182, %cst_79 [1] : vector<16x32xf32> to vector<16xf32>
    %184 = vector.shape_cast %183 : vector<16xf32> to vector<16x1xf32>
    %185 = vector.broadcast %184 : vector<16x1xf32> to vector<16x32xf32>
    %186 = arith.divf %182, %185 : vector<16x32xf32>
    %187 = vector.extract_strided_slice %156 {offsets = [0, 8], sizes = [32, 8], strides = [1, 1]} : vector<32x32xf32> to vector<32x8xf32>
    %cst_80 = arith.constant dense<0.000000e+00> : vector<16x8xf32>
    %188 = tpu.matmul %186, %187, %cst_80 {dimension_numbers = #tpu.dot_dimension_numbers<[1], [0], [0], [1], [0, 0, 1, 1], [], []>} : vector<16x32xf32>, vector<32x8xf32>, vector<16x8xf32> -> vector<16x8xf32>
    %189 = vector.extract_strided_slice %151 {offsets = [8, 0], sizes = [8, 32], strides = [1, 1]} : vector<32x32xf32> to vector<8x32xf32>
    %cst_81 = arith.constant dense<0.000000e+00> : vector<16x32xf32>
    %190 = tpu.matmul %188, %189, %cst_81 {dimension_numbers = #tpu.dot_dimension_numbers<[1], [0], [0], [1], [0, 0, 1, 1], [], []>} : vector<16x8xf32>, vector<8x32xf32>, vector<16x32xf32> -> vector<16x32xf32>
    %191 = arith.addf %173, %190 : vector<16x32xf32>
    %192 = vector.extract_strided_slice %140 {offsets = [0, 16], sizes = [16, 8], strides = [1, 1]} : vector<16x32xf32> to vector<16x8xf32>
    %193 = vector.extract_strided_slice %155 {offsets = [0, 16], sizes = [32, 8], strides = [1, 1]} : vector<32x32xf32> to vector<32x8xf32>
    %cst_82 = arith.constant dense<0.000000e+00> : vector<16x32xf32>
    %194 = tpu.matmul %192, %193, %cst_82 {dimension_numbers = #tpu.dot_dimension_numbers<[1], [1], [0], [0], [0, 0, 1, 0], [], []>} : vector<16x8xf32>, vector<32x8xf32>, vector<16x32xf32> -> vector<16x32xf32>
    %195 = arith.addf %194, %17 : vector<16x32xf32>
    %cst_83 = arith.constant dense<0xFF800000> : vector<16xf32>
    %196 = vector.multi_reduction <maximumf>, %195, %cst_83 [1] : vector<16x32xf32> to vector<16xf32>
    %197 = vector.shape_cast %196 : vector<16xf32> to vector<16x1xf32>
    %198 = vector.broadcast %197 : vector<16x1xf32> to vector<16x32xf32>
    %199 = arith.subf %195, %198 : vector<16x32xf32>
    %200 = math.exp %199 : vector<16x32xf32>
    %cst_84 = arith.constant dense<0.000000e+00> : vector<16xf32>
    %201 = vector.multi_reduction <add>, %200, %cst_84 [1] : vector<16x32xf32> to vector<16xf32>
    %202 = vector.shape_cast %201 : vector<16xf32> to vector<16x1xf32>
    %203 = vector.broadcast %202 : vector<16x1xf32> to vector<16x32xf32>
    %204 = arith.divf %200, %203 : vector<16x32xf32>
    %205 = vector.extract_strided_slice %156 {offsets = [0, 16], sizes = [32, 8], strides = [1, 1]} : vector<32x32xf32> to vector<32x8xf32>
    %cst_85 = arith.constant dense<0.000000e+00> : vector<16x8xf32>
    %206 = tpu.matmul %204, %205, %cst_85 {dimension_numbers = #tpu.dot_dimension_numbers<[1], [0], [0], [1], [0, 0, 1, 1], [], []>} : vector<16x32xf32>, vector<32x8xf32>, vector<16x8xf32> -> vector<16x8xf32>
    %207 = vector.extract_strided_slice %151 {offsets = [16, 0], sizes = [8, 32], strides = [1, 1]} : vector<32x32xf32> to vector<8x32xf32>
    %cst_86 = arith.constant dense<0.000000e+00> : vector<16x32xf32>
    %208 = tpu.matmul %206, %207, %cst_86 {dimension_numbers = #tpu.dot_dimension_numbers<[1], [0], [0], [1], [0, 0, 1, 1], [], []>} : vector<16x8xf32>, vector<8x32xf32>, vector<16x32xf32> -> vector<16x32xf32>
    %209 = arith.addf %191, %208 : vector<16x32xf32>
    %210 = vector.extract_strided_slice %140 {offsets = [0, 24], sizes = [16, 8], strides = [1, 1]} : vector<16x32xf32> to vector<16x8xf32>
    %211 = vector.extract_strided_slice %155 {offsets = [0, 24], sizes = [32, 8], strides = [1, 1]} : vector<32x32xf32> to vector<32x8xf32>
    %cst_87 = arith.constant dense<0.000000e+00> : vector<16x32xf32>
    %212 = tpu.matmul %210, %211, %cst_87 {dimension_numbers = #tpu.dot_dimension_numbers<[1], [1], [0], [0], [0, 0, 1, 0], [], []>} : vector<16x8xf32>, vector<32x8xf32>, vector<16x32xf32> -> vector<16x32xf32>
    %213 = arith.addf %212, %17 : vector<16x32xf32>
    %cst_88 = arith.constant dense<0xFF800000> : vector<16xf32>
    %214 = vector.multi_reduction <maximumf>, %213, %cst_88 [1] : vector<16x32xf32> to vector<16xf32>
    %215 = vector.shape_cast %214 : vector<16xf32> to vector<16x1xf32>
    %216 = vector.broadcast %215 : vector<16x1xf32> to vector<16x32xf32>
    %217 = arith.subf %213, %216 : vector<16x32xf32>
    %218 = math.exp %217 : vector<16x32xf32>
    %cst_89 = arith.constant dense<0.000000e+00> : vector<16xf32>
    %219 = vector.multi_reduction <add>, %218, %cst_89 [1] : vector<16x32xf32> to vector<16xf32>
    %220 = vector.shape_cast %219 : vector<16xf32> to vector<16x1xf32>
    %221 = vector.broadcast %220 : vector<16x1xf32> to vector<16x32xf32>
    %222 = arith.divf %218, %221 : vector<16x32xf32>
    %223 = vector.extract_strided_slice %156 {offsets = [0, 24], sizes = [32, 8], strides = [1, 1]} : vector<32x32xf32> to vector<32x8xf32>
    %cst_90 = arith.constant dense<0.000000e+00> : vector<16x8xf32>
    %224 = tpu.matmul %222, %223, %cst_90 {dimension_numbers = #tpu.dot_dimension_numbers<[1], [0], [0], [1], [0, 0, 1, 1], [], []>} : vector<16x32xf32>, vector<32x8xf32>, vector<16x8xf32> -> vector<16x8xf32>
    %225 = vector.extract_strided_slice %151 {offsets = [24, 0], sizes = [8, 32], strides = [1, 1]} : vector<32x32xf32> to vector<8x32xf32>
    %cst_91 = arith.constant dense<0.000000e+00> : vector<16x32xf32>
    %226 = tpu.matmul %224, %225, %cst_91 {dimension_numbers = #tpu.dot_dimension_numbers<[1], [0], [0], [1], [0, 0, 1, 1], [], []>} : vector<16x8xf32>, vector<8x32xf32>, vector<16x32xf32> -> vector<16x32xf32>
    %227 = arith.addf %209, %226 : vector<16x32xf32>
    %228 = vector.broadcast %152 : vector<1x32xf32> to vector<16x32xf32>
    %229 = arith.addf %227, %228 : vector<16x32xf32>
    %230 = arith.addf %134, %229 : vector<16x32xf32>
    %cst_92 = arith.constant dense<0.000000e+00> : vector<16xf32>
    %231 = vector.multi_reduction <add>, %230, %cst_92 [1] : vector<16x32xf32> to vector<16xf32>
    %232 = vector.shape_cast %231 : vector<16xf32> to vector<16x1xf32>
    %cst_93 = arith.constant 3.200000e+01 : f32
    %233 = vector.broadcast %cst_93 : f32 to vector<16x1xf32>
    %234 = arith.divf %232, %233 : vector<16x1xf32>
    %235 = vector.broadcast %234 : vector<16x1xf32> to vector<16x32xf32>
    %236 = arith.subf %230, %235 : vector<16x32xf32>
    %237 = arith.mulf %236, %236 : vector<16x32xf32>
    %cst_94 = arith.constant dense<0.000000e+00> : vector<16xf32>
    %238 = vector.multi_reduction <add>, %237, %cst_94 [1] : vector<16x32xf32> to vector<16xf32>
    %239 = vector.shape_cast %238 : vector<16xf32> to vector<16x1xf32>
    %cst_95 = arith.constant 3.200000e+01 : f32
    %240 = vector.broadcast %cst_95 : f32 to vector<16x1xf32>
    %241 = arith.divf %239, %240 : vector<16x1xf32>
    %242 = vector.broadcast %234 : vector<16x1xf32> to vector<16x32xf32>
    %243 = arith.subf %230, %242 : vector<16x32xf32>
    %cst_96 = arith.constant 9.99999974E-6 : f32
    %244 = vector.broadcast %cst_96 : f32 to vector<16x1xf32>
    %245 = arith.addf %241, %244 : vector<16x1xf32>
    %246 = math.sqrt %245 : vector<16x1xf32>
    %247 = vector.broadcast %246 : vector<16x1xf32> to vector<16x32xf32>
    %248 = arith.divf %243, %247 : vector<16x32xf32>
    %249 = vector.broadcast %153 : vector<1x32xf32> to vector<16x32xf32>
    %250 = arith.mulf %248, %249 : vector<16x32xf32>
    %251 = vector.broadcast %154 : vector<1x32xf32> to vector<16x32xf32>
    %252 = arith.addf %250, %251 : vector<16x32xf32>
    %253 = vector.broadcast %1 : vector<16x1xf32> to vector<16x32xf32>
    %254 = arith.mulf %252, %253 : vector<16x32xf32>
    %c0_97 = arith.constant 0 : index
    %c1024_98 = arith.constant 1024 : index
    %255 = vector.load %arg5[%c0_97, %c1024_98] : memref<32x1920xf32, #tpu.memory_space<vmem>>, vector<32x32xf32>
    %cst_99 = arith.constant dense<0.000000e+00> : vector<16x32xf32>
    %256 = tpu.matmul %134, %255, %cst_99 {dimension_numbers = #tpu.dot_dimension_numbers<[1], [0], [0], [1], [0, 0, 1, 1], [], []>} : vector<16x32xf32>, vector<32x32xf32>, vector<16x32xf32> -> vector<16x32xf32>
    %c0_100 = arith.constant 0 : index
    %c1408_101 = arith.constant 1408 : index
    %257 = vector.load %arg5[%c0_100, %c1408_101] : memref<32x1920xf32, #tpu.memory_space<vmem>>, vector<32x32xf32>
    %cst_102 = arith.constant dense<0.000000e+00> : vector<16x32xf32>
    %258 = tpu.matmul %254, %257, %cst_102 {dimension_numbers = #tpu.dot_dimension_numbers<[1], [0], [0], [1], [0, 0, 1, 1], [], []>} : vector<16x32xf32>, vector<32x32xf32>, vector<16x32xf32> -> vector<16x32xf32>
    %259 = arith.addf %256, %258 : vector<16x32xf32>
    %c0_103 = arith.constant 0 : index
    %c1536 = arith.constant 1536 : index
    %260 = vector.load %arg7[%c0_103, %c1536] : memref<1x2432xf32, #tpu.memory_space<vmem>>, vector<1x32xf32>
    %261 = vector.broadcast %260 : vector<1x32xf32> to vector<16x32xf32>
    %262 = arith.addf %259, %261 : vector<16x32xf32>
    %263 = arith.negf %262 : vector<16x32xf32>
    %264 = math.exp %263 : vector<16x32xf32>
    %cst_104 = arith.constant 1.000000e+00 : f32
    %265 = vector.broadcast %cst_104 : f32 to vector<16x32xf32>
    %266 = arith.addf %265, %264 : vector<16x32xf32>
    %267 = arith.divf %265, %266 : vector<16x32xf32>
    %268 = arith.mulf %254, %267 : vector<16x32xf32>
    %269 = vector.extract_strided_slice %145 {offsets = [32, 0], sizes = [32, 32], strides = [1, 1]} : vector<96x32xf32> to vector<32x32xf32>
    %270 = vector.extract_strided_slice %150 {offsets = [32, 0], sizes = [32, 32], strides = [1, 1]} : vector<96x32xf32> to vector<32x32xf32>
    %271 = vector.extract_strided_slice %140 {offsets = [0, 0], sizes = [16, 8], strides = [1, 1]} : vector<16x32xf32> to vector<16x8xf32>
    %272 = vector.extract_strided_slice %269 {offsets = [0, 0], sizes = [32, 8], strides = [1, 1]} : vector<32x32xf32> to vector<32x8xf32>
    %cst_105 = arith.constant dense<0.000000e+00> : vector<16x32xf32>
    %273 = tpu.matmul %271, %272, %cst_105 {dimension_numbers = #tpu.dot_dimension_numbers<[1], [1], [0], [0], [0, 0, 1, 0], [], []>} : vector<16x8xf32>, vector<32x8xf32>, vector<16x32xf32> -> vector<16x32xf32>
    %274 = arith.addf %273, %17 : vector<16x32xf32>
    %cst_106 = arith.constant dense<0xFF800000> : vector<16xf32>
    %275 = vector.multi_reduction <maximumf>, %274, %cst_106 [1] : vector<16x32xf32> to vector<16xf32>
    %276 = vector.shape_cast %275 : vector<16xf32> to vector<16x1xf32>
    %277 = vector.broadcast %276 : vector<16x1xf32> to vector<16x32xf32>
    %278 = arith.subf %274, %277 : vector<16x32xf32>
    %279 = math.exp %278 : vector<16x32xf32>
    %cst_107 = arith.constant dense<0.000000e+00> : vector<16xf32>
    %280 = vector.multi_reduction <add>, %279, %cst_107 [1] : vector<16x32xf32> to vector<16xf32>
    %281 = vector.shape_cast %280 : vector<16xf32> to vector<16x1xf32>
    %282 = vector.broadcast %281 : vector<16x1xf32> to vector<16x32xf32>
    %283 = arith.divf %279, %282 : vector<16x32xf32>
    %284 = vector.extract_strided_slice %270 {offsets = [0, 0], sizes = [32, 8], strides = [1, 1]} : vector<32x32xf32> to vector<32x8xf32>
    %cst_108 = arith.constant dense<0.000000e+00> : vector<16x8xf32>
    %285 = tpu.matmul %283, %284, %cst_108 {dimension_numbers = #tpu.dot_dimension_numbers<[1], [0], [0], [1], [0, 0, 1, 1], [], []>} : vector<16x32xf32>, vector<32x8xf32>, vector<16x8xf32> -> vector<16x8xf32>
    %286 = vector.extract_strided_slice %151 {offsets = [0, 0], sizes = [8, 32], strides = [1, 1]} : vector<32x32xf32> to vector<8x32xf32>
    %cst_109 = arith.constant dense<0.000000e+00> : vector<16x32xf32>
    %287 = tpu.matmul %285, %286, %cst_109 {dimension_numbers = #tpu.dot_dimension_numbers<[1], [0], [0], [1], [0, 0, 1, 1], [], []>} : vector<16x8xf32>, vector<8x32xf32>, vector<16x32xf32> -> vector<16x32xf32>
    %288 = vector.extract_strided_slice %140 {offsets = [0, 8], sizes = [16, 8], strides = [1, 1]} : vector<16x32xf32> to vector<16x8xf32>
    %289 = vector.extract_strided_slice %269 {offsets = [0, 8], sizes = [32, 8], strides = [1, 1]} : vector<32x32xf32> to vector<32x8xf32>
    %cst_110 = arith.constant dense<0.000000e+00> : vector<16x32xf32>
    %290 = tpu.matmul %288, %289, %cst_110 {dimension_numbers = #tpu.dot_dimension_numbers<[1], [1], [0], [0], [0, 0, 1, 0], [], []>} : vector<16x8xf32>, vector<32x8xf32>, vector<16x32xf32> -> vector<16x32xf32>
    %291 = arith.addf %290, %17 : vector<16x32xf32>
    %cst_111 = arith.constant dense<0xFF800000> : vector<16xf32>
    %292 = vector.multi_reduction <maximumf>, %291, %cst_111 [1] : vector<16x32xf32> to vector<16xf32>
    %293 = vector.shape_cast %292 : vector<16xf32> to vector<16x1xf32>
    %294 = vector.broadcast %293 : vector<16x1xf32> to vector<16x32xf32>
    %295 = arith.subf %291, %294 : vector<16x32xf32>
    %296 = math.exp %295 : vector<16x32xf32>
    %cst_112 = arith.constant dense<0.000000e+00> : vector<16xf32>
    %297 = vector.multi_reduction <add>, %296, %cst_112 [1] : vector<16x32xf32> to vector<16xf32>
    %298 = vector.shape_cast %297 : vector<16xf32> to vector<16x1xf32>
    %299 = vector.broadcast %298 : vector<16x1xf32> to vector<16x32xf32>
    %300 = arith.divf %296, %299 : vector<16x32xf32>
    %301 = vector.extract_strided_slice %270 {offsets = [0, 8], sizes = [32, 8], strides = [1, 1]} : vector<32x32xf32> to vector<32x8xf32>
    %cst_113 = arith.constant dense<0.000000e+00> : vector<16x8xf32>
    %302 = tpu.matmul %300, %301, %cst_113 {dimension_numbers = #tpu.dot_dimension_numbers<[1], [0], [0], [1], [0, 0, 1, 1], [], []>} : vector<16x32xf32>, vector<32x8xf32>, vector<16x8xf32> -> vector<16x8xf32>
    %303 = vector.extract_strided_slice %151 {offsets = [8, 0], sizes = [8, 32], strides = [1, 1]} : vector<32x32xf32> to vector<8x32xf32>
    %cst_114 = arith.constant dense<0.000000e+00> : vector<16x32xf32>
    %304 = tpu.matmul %302, %303, %cst_114 {dimension_numbers = #tpu.dot_dimension_numbers<[1], [0], [0], [1], [0, 0, 1, 1], [], []>} : vector<16x8xf32>, vector<8x32xf32>, vector<16x32xf32> -> vector<16x32xf32>
    %305 = arith.addf %287, %304 : vector<16x32xf32>
    %306 = vector.extract_strided_slice %140 {offsets = [0, 16], sizes = [16, 8], strides = [1, 1]} : vector<16x32xf32> to vector<16x8xf32>
    %307 = vector.extract_strided_slice %269 {offsets = [0, 16], sizes = [32, 8], strides = [1, 1]} : vector<32x32xf32> to vector<32x8xf32>
    %cst_115 = arith.constant dense<0.000000e+00> : vector<16x32xf32>
    %308 = tpu.matmul %306, %307, %cst_115 {dimension_numbers = #tpu.dot_dimension_numbers<[1], [1], [0], [0], [0, 0, 1, 0], [], []>} : vector<16x8xf32>, vector<32x8xf32>, vector<16x32xf32> -> vector<16x32xf32>
    %309 = arith.addf %308, %17 : vector<16x32xf32>
    %cst_116 = arith.constant dense<0xFF800000> : vector<16xf32>
    %310 = vector.multi_reduction <maximumf>, %309, %cst_116 [1] : vector<16x32xf32> to vector<16xf32>
    %311 = vector.shape_cast %310 : vector<16xf32> to vector<16x1xf32>
    %312 = vector.broadcast %311 : vector<16x1xf32> to vector<16x32xf32>
    %313 = arith.subf %309, %312 : vector<16x32xf32>
    %314 = math.exp %313 : vector<16x32xf32>
    %cst_117 = arith.constant dense<0.000000e+00> : vector<16xf32>
    %315 = vector.multi_reduction <add>, %314, %cst_117 [1] : vector<16x32xf32> to vector<16xf32>
    %316 = vector.shape_cast %315 : vector<16xf32> to vector<16x1xf32>
    %317 = vector.broadcast %316 : vector<16x1xf32> to vector<16x32xf32>
    %318 = arith.divf %314, %317 : vector<16x32xf32>
    %319 = vector.extract_strided_slice %270 {offsets = [0, 16], sizes = [32, 8], strides = [1, 1]} : vector<32x32xf32> to vector<32x8xf32>
    %cst_118 = arith.constant dense<0.000000e+00> : vector<16x8xf32>
    %320 = tpu.matmul %318, %319, %cst_118 {dimension_numbers = #tpu.dot_dimension_numbers<[1], [0], [0], [1], [0, 0, 1, 1], [], []>} : vector<16x32xf32>, vector<32x8xf32>, vector<16x8xf32> -> vector<16x8xf32>
    %321 = vector.extract_strided_slice %151 {offsets = [16, 0], sizes = [8, 32], strides = [1, 1]} : vector<32x32xf32> to vector<8x32xf32>
    %cst_119 = arith.constant dense<0.000000e+00> : vector<16x32xf32>
    %322 = tpu.matmul %320, %321, %cst_119 {dimension_numbers = #tpu.dot_dimension_numbers<[1], [0], [0], [1], [0, 0, 1, 1], [], []>} : vector<16x8xf32>, vector<8x32xf32>, vector<16x32xf32> -> vector<16x32xf32>
    %323 = arith.addf %305, %322 : vector<16x32xf32>
    %324 = vector.extract_strided_slice %140 {offsets = [0, 24], sizes = [16, 8], strides = [1, 1]} : vector<16x32xf32> to vector<16x8xf32>
    %325 = vector.extract_strided_slice %269 {offsets = [0, 24], sizes = [32, 8], strides = [1, 1]} : vector<32x32xf32> to vector<32x8xf32>
    %cst_120 = arith.constant dense<0.000000e+00> : vector<16x32xf32>
    %326 = tpu.matmul %324, %325, %cst_120 {dimension_numbers = #tpu.dot_dimension_numbers<[1], [1], [0], [0], [0, 0, 1, 0], [], []>} : vector<16x8xf32>, vector<32x8xf32>, vector<16x32xf32> -> vector<16x32xf32>
    %327 = arith.addf %326, %17 : vector<16x32xf32>
    %cst_121 = arith.constant dense<0xFF800000> : vector<16xf32>
    %328 = vector.multi_reduction <maximumf>, %327, %cst_121 [1] : vector<16x32xf32> to vector<16xf32>
    %329 = vector.shape_cast %328 : vector<16xf32> to vector<16x1xf32>
    %330 = vector.broadcast %329 : vector<16x1xf32> to vector<16x32xf32>
    %331 = arith.subf %327, %330 : vector<16x32xf32>
    %332 = math.exp %331 : vector<16x32xf32>
    %cst_122 = arith.constant dense<0.000000e+00> : vector<16xf32>
    %333 = vector.multi_reduction <add>, %332, %cst_122 [1] : vector<16x32xf32> to vector<16xf32>
    %334 = vector.shape_cast %333 : vector<16xf32> to vector<16x1xf32>
    %335 = vector.broadcast %334 : vector<16x1xf32> to vector<16x32xf32>
    %336 = arith.divf %332, %335 : vector<16x32xf32>
    %337 = vector.extract_strided_slice %270 {offsets = [0, 24], sizes = [32, 8], strides = [1, 1]} : vector<32x32xf32> to vector<32x8xf32>
    %cst_123 = arith.constant dense<0.000000e+00> : vector<16x8xf32>
    %338 = tpu.matmul %336, %337, %cst_123 {dimension_numbers = #tpu.dot_dimension_numbers<[1], [0], [0], [1], [0, 0, 1, 1], [], []>} : vector<16x32xf32>, vector<32x8xf32>, vector<16x8xf32> -> vector<16x8xf32>
    %339 = vector.extract_strided_slice %151 {offsets = [24, 0], sizes = [8, 32], strides = [1, 1]} : vector<32x32xf32> to vector<8x32xf32>
    %cst_124 = arith.constant dense<0.000000e+00> : vector<16x32xf32>
    %340 = tpu.matmul %338, %339, %cst_124 {dimension_numbers = #tpu.dot_dimension_numbers<[1], [0], [0], [1], [0, 0, 1, 1], [], []>} : vector<16x8xf32>, vector<8x32xf32>, vector<16x32xf32> -> vector<16x32xf32>
    %341 = arith.addf %323, %340 : vector<16x32xf32>
    %342 = vector.broadcast %152 : vector<1x32xf32> to vector<16x32xf32>
    %343 = arith.addf %341, %342 : vector<16x32xf32>
    %344 = arith.addf %134, %343 : vector<16x32xf32>
    %cst_125 = arith.constant dense<0.000000e+00> : vector<16xf32>
    %345 = vector.multi_reduction <add>, %344, %cst_125 [1] : vector<16x32xf32> to vector<16xf32>
    %346 = vector.shape_cast %345 : vector<16xf32> to vector<16x1xf32>
    %cst_126 = arith.constant 3.200000e+01 : f32
    %347 = vector.broadcast %cst_126 : f32 to vector<16x1xf32>
    %348 = arith.divf %346, %347 : vector<16x1xf32>
    %349 = vector.broadcast %348 : vector<16x1xf32> to vector<16x32xf32>
    %350 = arith.subf %344, %349 : vector<16x32xf32>
    %351 = arith.mulf %350, %350 : vector<16x32xf32>
    %cst_127 = arith.constant dense<0.000000e+00> : vector<16xf32>
    %352 = vector.multi_reduction <add>, %351, %cst_127 [1] : vector<16x32xf32> to vector<16xf32>
    %353 = vector.shape_cast %352 : vector<16xf32> to vector<16x1xf32>
    %cst_128 = arith.constant 3.200000e+01 : f32
    %354 = vector.broadcast %cst_128 : f32 to vector<16x1xf32>
    %355 = arith.divf %353, %354 : vector<16x1xf32>
    %356 = vector.broadcast %348 : vector<16x1xf32> to vector<16x32xf32>
    %357 = arith.subf %344, %356 : vector<16x32xf32>
    %cst_129 = arith.constant 9.99999974E-6 : f32
    %358 = vector.broadcast %cst_129 : f32 to vector<16x1xf32>
    %359 = arith.addf %355, %358 : vector<16x1xf32>
    %360 = math.sqrt %359 : vector<16x1xf32>
    %361 = vector.broadcast %360 : vector<16x1xf32> to vector<16x32xf32>
    %362 = arith.divf %357, %361 : vector<16x32xf32>
    %363 = vector.broadcast %153 : vector<1x32xf32> to vector<16x32xf32>
    %364 = arith.mulf %362, %363 : vector<16x32xf32>
    %365 = vector.broadcast %154 : vector<1x32xf32> to vector<16x32xf32>
    %366 = arith.addf %364, %365 : vector<16x32xf32>
    %367 = vector.broadcast %1 : vector<16x1xf32> to vector<16x32xf32>
    %368 = arith.mulf %366, %367 : vector<16x32xf32>
    %c0_130 = arith.constant 0 : index
    %c1152_131 = arith.constant 1152 : index
    %369 = vector.load %arg5[%c0_130, %c1152_131] : memref<32x1920xf32, #tpu.memory_space<vmem>>, vector<32x32xf32>
    %cst_132 = arith.constant dense<0.000000e+00> : vector<16x32xf32>
    %370 = tpu.matmul %134, %369, %cst_132 {dimension_numbers = #tpu.dot_dimension_numbers<[1], [0], [0], [1], [0, 0, 1, 1], [], []>} : vector<16x32xf32>, vector<32x32xf32>, vector<16x32xf32> -> vector<16x32xf32>
    %c0_133 = arith.constant 0 : index
    %c1536_134 = arith.constant 1536 : index
    %371 = vector.load %arg5[%c0_133, %c1536_134] : memref<32x1920xf32, #tpu.memory_space<vmem>>, vector<32x32xf32>
    %cst_135 = arith.constant dense<0.000000e+00> : vector<16x32xf32>
    %372 = tpu.matmul %368, %371, %cst_135 {dimension_numbers = #tpu.dot_dimension_numbers<[1], [0], [0], [1], [0, 0, 1, 1], [], []>} : vector<16x32xf32>, vector<32x32xf32>, vector<16x32xf32> -> vector<16x32xf32>
    %373 = arith.addf %370, %372 : vector<16x32xf32>
    %c0_136 = arith.constant 0 : index
    %c1664 = arith.constant 1664 : index
    %374 = vector.load %arg7[%c0_136, %c1664] : memref<1x2432xf32, #tpu.memory_space<vmem>>, vector<1x32xf32>
    %375 = vector.broadcast %374 : vector<1x32xf32> to vector<16x32xf32>
    %376 = arith.addf %373, %375 : vector<16x32xf32>
    %377 = arith.negf %376 : vector<16x32xf32>
    %378 = math.exp %377 : vector<16x32xf32>
    %cst_137 = arith.constant 1.000000e+00 : f32
    %379 = vector.broadcast %cst_137 : f32 to vector<16x32xf32>
    %380 = arith.addf %379, %378 : vector<16x32xf32>
    %381 = arith.divf %379, %380 : vector<16x32xf32>
    %382 = arith.mulf %368, %381 : vector<16x32xf32>
    %383 = arith.addf %268, %382 : vector<16x32xf32>
    %384 = vector.extract_strided_slice %145 {offsets = [64, 0], sizes = [32, 32], strides = [1, 1]} : vector<96x32xf32> to vector<32x32xf32>
    %385 = vector.extract_strided_slice %150 {offsets = [64, 0], sizes = [32, 32], strides = [1, 1]} : vector<96x32xf32> to vector<32x32xf32>
    %386 = vector.extract_strided_slice %140 {offsets = [0, 0], sizes = [16, 8], strides = [1, 1]} : vector<16x32xf32> to vector<16x8xf32>
    %387 = vector.extract_strided_slice %384 {offsets = [0, 0], sizes = [32, 8], strides = [1, 1]} : vector<32x32xf32> to vector<32x8xf32>
    %cst_138 = arith.constant dense<0.000000e+00> : vector<16x32xf32>
    %388 = tpu.matmul %386, %387, %cst_138 {dimension_numbers = #tpu.dot_dimension_numbers<[1], [1], [0], [0], [0, 0, 1, 0], [], []>} : vector<16x8xf32>, vector<32x8xf32>, vector<16x32xf32> -> vector<16x32xf32>
    %389 = arith.addf %388, %17 : vector<16x32xf32>
    %cst_139 = arith.constant dense<0xFF800000> : vector<16xf32>
    %390 = vector.multi_reduction <maximumf>, %389, %cst_139 [1] : vector<16x32xf32> to vector<16xf32>
    %391 = vector.shape_cast %390 : vector<16xf32> to vector<16x1xf32>
    %392 = vector.broadcast %391 : vector<16x1xf32> to vector<16x32xf32>
    %393 = arith.subf %389, %392 : vector<16x32xf32>
    %394 = math.exp %393 : vector<16x32xf32>
    %cst_140 = arith.constant dense<0.000000e+00> : vector<16xf32>
    %395 = vector.multi_reduction <add>, %394, %cst_140 [1] : vector<16x32xf32> to vector<16xf32>
    %396 = vector.shape_cast %395 : vector<16xf32> to vector<16x1xf32>
    %397 = vector.broadcast %396 : vector<16x1xf32> to vector<16x32xf32>
    %398 = arith.divf %394, %397 : vector<16x32xf32>
    %399 = vector.extract_strided_slice %385 {offsets = [0, 0], sizes = [32, 8], strides = [1, 1]} : vector<32x32xf32> to vector<32x8xf32>
    %cst_141 = arith.constant dense<0.000000e+00> : vector<16x8xf32>
    %400 = tpu.matmul %398, %399, %cst_141 {dimension_numbers = #tpu.dot_dimension_numbers<[1], [0], [0], [1], [0, 0, 1, 1], [], []>} : vector<16x32xf32>, vector<32x8xf32>, vector<16x8xf32> -> vector<16x8xf32>
    %401 = vector.extract_strided_slice %151 {offsets = [0, 0], sizes = [8, 32], strides = [1, 1]} : vector<32x32xf32> to vector<8x32xf32>
    %cst_142 = arith.constant dense<0.000000e+00> : vector<16x32xf32>
    %402 = tpu.matmul %400, %401, %cst_142 {dimension_numbers = #tpu.dot_dimension_numbers<[1], [0], [0], [1], [0, 0, 1, 1], [], []>} : vector<16x8xf32>, vector<8x32xf32>, vector<16x32xf32> -> vector<16x32xf32>
    %403 = vector.extract_strided_slice %140 {offsets = [0, 8], sizes = [16, 8], strides = [1, 1]} : vector<16x32xf32> to vector<16x8xf32>
    %404 = vector.extract_strided_slice %384 {offsets = [0, 8], sizes = [32, 8], strides = [1, 1]} : vector<32x32xf32> to vector<32x8xf32>
    %cst_143 = arith.constant dense<0.000000e+00> : vector<16x32xf32>
    %405 = tpu.matmul %403, %404, %cst_143 {dimension_numbers = #tpu.dot_dimension_numbers<[1], [1], [0], [0], [0, 0, 1, 0], [], []>} : vector<16x8xf32>, vector<32x8xf32>, vector<16x32xf32> -> vector<16x32xf32>
    %406 = arith.addf %405, %17 : vector<16x32xf32>
    %cst_144 = arith.constant dense<0xFF800000> : vector<16xf32>
    %407 = vector.multi_reduction <maximumf>, %406, %cst_144 [1] : vector<16x32xf32> to vector<16xf32>
    %408 = vector.shape_cast %407 : vector<16xf32> to vector<16x1xf32>
    %409 = vector.broadcast %408 : vector<16x1xf32> to vector<16x32xf32>
    %410 = arith.subf %406, %409 : vector<16x32xf32>
    %411 = math.exp %410 : vector<16x32xf32>
    %cst_145 = arith.constant dense<0.000000e+00> : vector<16xf32>
    %412 = vector.multi_reduction <add>, %411, %cst_145 [1] : vector<16x32xf32> to vector<16xf32>
    %413 = vector.shape_cast %412 : vector<16xf32> to vector<16x1xf32>
    %414 = vector.broadcast %413 : vector<16x1xf32> to vector<16x32xf32>
    %415 = arith.divf %411, %414 : vector<16x32xf32>
    %416 = vector.extract_strided_slice %385 {offsets = [0, 8], sizes = [32, 8], strides = [1, 1]} : vector<32x32xf32> to vector<32x8xf32>
    %cst_146 = arith.constant dense<0.000000e+00> : vector<16x8xf32>
    %417 = tpu.matmul %415, %416, %cst_146 {dimension_numbers = #tpu.dot_dimension_numbers<[1], [0], [0], [1], [0, 0, 1, 1], [], []>} : vector<16x32xf32>, vector<32x8xf32>, vector<16x8xf32> -> vector<16x8xf32>
    %418 = vector.extract_strided_slice %151 {offsets = [8, 0], sizes = [8, 32], strides = [1, 1]} : vector<32x32xf32> to vector<8x32xf32>
    %cst_147 = arith.constant dense<0.000000e+00> : vector<16x32xf32>
    %419 = tpu.matmul %417, %418, %cst_147 {dimension_numbers = #tpu.dot_dimension_numbers<[1], [0], [0], [1], [0, 0, 1, 1], [], []>} : vector<16x8xf32>, vector<8x32xf32>, vector<16x32xf32> -> vector<16x32xf32>
    %420 = arith.addf %402, %419 : vector<16x32xf32>
    %421 = vector.extract_strided_slice %140 {offsets = [0, 16], sizes = [16, 8], strides = [1, 1]} : vector<16x32xf32> to vector<16x8xf32>
    %422 = vector.extract_strided_slice %384 {offsets = [0, 16], sizes = [32, 8], strides = [1, 1]} : vector<32x32xf32> to vector<32x8xf32>
    %cst_148 = arith.constant dense<0.000000e+00> : vector<16x32xf32>
    %423 = tpu.matmul %421, %422, %cst_148 {dimension_numbers = #tpu.dot_dimension_numbers<[1], [1], [0], [0], [0, 0, 1, 0], [], []>} : vector<16x8xf32>, vector<32x8xf32>, vector<16x32xf32> -> vector<16x32xf32>
    %424 = arith.addf %423, %17 : vector<16x32xf32>
    %cst_149 = arith.constant dense<0xFF800000> : vector<16xf32>
    %425 = vector.multi_reduction <maximumf>, %424, %cst_149 [1] : vector<16x32xf32> to vector<16xf32>
    %426 = vector.shape_cast %425 : vector<16xf32> to vector<16x1xf32>
    %427 = vector.broadcast %426 : vector<16x1xf32> to vector<16x32xf32>
    %428 = arith.subf %424, %427 : vector<16x32xf32>
    %429 = math.exp %428 : vector<16x32xf32>
    %cst_150 = arith.constant dense<0.000000e+00> : vector<16xf32>
    %430 = vector.multi_reduction <add>, %429, %cst_150 [1] : vector<16x32xf32> to vector<16xf32>
    %431 = vector.shape_cast %430 : vector<16xf32> to vector<16x1xf32>
    %432 = vector.broadcast %431 : vector<16x1xf32> to vector<16x32xf32>
    %433 = arith.divf %429, %432 : vector<16x32xf32>
    %434 = vector.extract_strided_slice %385 {offsets = [0, 16], sizes = [32, 8], strides = [1, 1]} : vector<32x32xf32> to vector<32x8xf32>
    %cst_151 = arith.constant dense<0.000000e+00> : vector<16x8xf32>
    %435 = tpu.matmul %433, %434, %cst_151 {dimension_numbers = #tpu.dot_dimension_numbers<[1], [0], [0], [1], [0, 0, 1, 1], [], []>} : vector<16x32xf32>, vector<32x8xf32>, vector<16x8xf32> -> vector<16x8xf32>
    %436 = vector.extract_strided_slice %151 {offsets = [16, 0], sizes = [8, 32], strides = [1, 1]} : vector<32x32xf32> to vector<8x32xf32>
    %cst_152 = arith.constant dense<0.000000e+00> : vector<16x32xf32>
    %437 = tpu.matmul %435, %436, %cst_152 {dimension_numbers = #tpu.dot_dimension_numbers<[1], [0], [0], [1], [0, 0, 1, 1], [], []>} : vector<16x8xf32>, vector<8x32xf32>, vector<16x32xf32> -> vector<16x32xf32>
    %438 = arith.addf %420, %437 : vector<16x32xf32>
    %439 = vector.extract_strided_slice %140 {offsets = [0, 24], sizes = [16, 8], strides = [1, 1]} : vector<16x32xf32> to vector<16x8xf32>
    %440 = vector.extract_strided_slice %384 {offsets = [0, 24], sizes = [32, 8], strides = [1, 1]} : vector<32x32xf32> to vector<32x8xf32>
    %cst_153 = arith.constant dense<0.000000e+00> : vector<16x32xf32>
    %441 = tpu.matmul %439, %440, %cst_153 {dimension_numbers = #tpu.dot_dimension_numbers<[1], [1], [0], [0], [0, 0, 1, 0], [], []>} : vector<16x8xf32>, vector<32x8xf32>, vector<16x32xf32> -> vector<16x32xf32>
    %442 = arith.addf %441, %17 : vector<16x32xf32>
    %cst_154 = arith.constant dense<0xFF800000> : vector<16xf32>
    %443 = vector.multi_reduction <maximumf>, %442, %cst_154 [1] : vector<16x32xf32> to vector<16xf32>
    %444 = vector.shape_cast %443 : vector<16xf32> to vector<16x1xf32>
    %445 = vector.broadcast %444 : vector<16x1xf32> to vector<16x32xf32>
    %446 = arith.subf %442, %445 : vector<16x32xf32>
    %447 = math.exp %446 : vector<16x32xf32>
    %cst_155 = arith.constant dense<0.000000e+00> : vector<16xf32>
    %448 = vector.multi_reduction <add>, %447, %cst_155 [1] : vector<16x32xf32> to vector<16xf32>
    %449 = vector.shape_cast %448 : vector<16xf32> to vector<16x1xf32>
    %450 = vector.broadcast %449 : vector<16x1xf32> to vector<16x32xf32>
    %451 = arith.divf %447, %450 : vector<16x32xf32>
    %452 = vector.extract_strided_slice %385 {offsets = [0, 24], sizes = [32, 8], strides = [1, 1]} : vector<32x32xf32> to vector<32x8xf32>
    %cst_156 = arith.constant dense<0.000000e+00> : vector<16x8xf32>
    %453 = tpu.matmul %451, %452, %cst_156 {dimension_numbers = #tpu.dot_dimension_numbers<[1], [0], [0], [1], [0, 0, 1, 1], [], []>} : vector<16x32xf32>, vector<32x8xf32>, vector<16x8xf32> -> vector<16x8xf32>
    %454 = vector.extract_strided_slice %151 {offsets = [24, 0], sizes = [8, 32], strides = [1, 1]} : vector<32x32xf32> to vector<8x32xf32>
    %cst_157 = arith.constant dense<0.000000e+00> : vector<16x32xf32>
    %455 = tpu.matmul %453, %454, %cst_157 {dimension_numbers = #tpu.dot_dimension_numbers<[1], [0], [0], [1], [0, 0, 1, 1], [], []>} : vector<16x8xf32>, vector<8x32xf32>, vector<16x32xf32> -> vector<16x32xf32>
    %456 = arith.addf %438, %455 : vector<16x32xf32>
    %457 = vector.broadcast %152 : vector<1x32xf32> to vector<16x32xf32>
    %458 = arith.addf %456, %457 : vector<16x32xf32>
    %459 = arith.addf %134, %458 : vector<16x32xf32>
    %cst_158 = arith.constant dense<0.000000e+00> : vector<16xf32>
    %460 = vector.multi_reduction <add>, %459, %cst_158 [1] : vector<16x32xf32> to vector<16xf32>
    %461 = vector.shape_cast %460 : vector<16xf32> to vector<16x1xf32>
    %cst_159 = arith.constant 3.200000e+01 : f32
    %462 = vector.broadcast %cst_159 : f32 to vector<16x1xf32>
    %463 = arith.divf %461, %462 : vector<16x1xf32>
    %464 = vector.broadcast %463 : vector<16x1xf32> to vector<16x32xf32>
    %465 = arith.subf %459, %464 : vector<16x32xf32>
    %466 = arith.mulf %465, %465 : vector<16x32xf32>
    %cst_160 = arith.constant dense<0.000000e+00> : vector<16xf32>
    %467 = vector.multi_reduction <add>, %466, %cst_160 [1] : vector<16x32xf32> to vector<16xf32>
    %468 = vector.shape_cast %467 : vector<16xf32> to vector<16x1xf32>
    %cst_161 = arith.constant 3.200000e+01 : f32
    %469 = vector.broadcast %cst_161 : f32 to vector<16x1xf32>
    %470 = arith.divf %468, %469 : vector<16x1xf32>
    %471 = vector.broadcast %463 : vector<16x1xf32> to vector<16x32xf32>
    %472 = arith.subf %459, %471 : vector<16x32xf32>
    %cst_162 = arith.constant 9.99999974E-6 : f32
    %473 = vector.broadcast %cst_162 : f32 to vector<16x1xf32>
    %474 = arith.addf %470, %473 : vector<16x1xf32>
    %475 = math.sqrt %474 : vector<16x1xf32>
    %476 = vector.broadcast %475 : vector<16x1xf32> to vector<16x32xf32>
    %477 = arith.divf %472, %476 : vector<16x32xf32>
    %478 = vector.broadcast %153 : vector<1x32xf32> to vector<16x32xf32>
    %479 = arith.mulf %477, %478 : vector<16x32xf32>
    %480 = vector.broadcast %154 : vector<1x32xf32> to vector<16x32xf32>
    %481 = arith.addf %479, %480 : vector<16x32xf32>
    %482 = vector.broadcast %1 : vector<16x1xf32> to vector<16x32xf32>
    %483 = arith.mulf %481, %482 : vector<16x32xf32>
    %c0_163 = arith.constant 0 : index
    %c1280_164 = arith.constant 1280 : index
    %484 = vector.load %arg5[%c0_163, %c1280_164] : memref<32x1920xf32, #tpu.memory_space<vmem>>, vector<32x32xf32>
    %cst_165 = arith.constant dense<0.000000e+00> : vector<16x32xf32>
    %485 = tpu.matmul %134, %484, %cst_165 {dimension_numbers = #tpu.dot_dimension_numbers<[1], [0], [0], [1], [0, 0, 1, 1], [], []>} : vector<16x32xf32>, vector<32x32xf32>, vector<16x32xf32> -> vector<16x32xf32>
    %c0_166 = arith.constant 0 : index
    %c1664_167 = arith.constant 1664 : index
    %486 = vector.load %arg5[%c0_166, %c1664_167] : memref<32x1920xf32, #tpu.memory_space<vmem>>, vector<32x32xf32>
    %cst_168 = arith.constant dense<0.000000e+00> : vector<16x32xf32>
    %487 = tpu.matmul %483, %486, %cst_168 {dimension_numbers = #tpu.dot_dimension_numbers<[1], [0], [0], [1], [0, 0, 1, 1], [], []>} : vector<16x32xf32>, vector<32x32xf32>, vector<16x32xf32> -> vector<16x32xf32>
    %488 = arith.addf %485, %487 : vector<16x32xf32>
    %c0_169 = arith.constant 0 : index
    %c1792 = arith.constant 1792 : index
    %489 = vector.load %arg7[%c0_169, %c1792] : memref<1x2432xf32, #tpu.memory_space<vmem>>, vector<1x32xf32>
    %490 = vector.broadcast %489 : vector<1x32xf32> to vector<16x32xf32>
    %491 = arith.addf %488, %490 : vector<16x32xf32>
    %492 = arith.negf %491 : vector<16x32xf32>
    %493 = math.exp %492 : vector<16x32xf32>
    %cst_170 = arith.constant 1.000000e+00 : f32
    %494 = vector.broadcast %cst_170 : f32 to vector<16x32xf32>
    %495 = arith.addf %494, %493 : vector<16x32xf32>
    %496 = arith.divf %494, %495 : vector<16x32xf32>
    %497 = arith.mulf %483, %496 : vector<16x32xf32>
    %498 = arith.addf %383, %497 : vector<16x32xf32>
    %cst_171 = arith.constant 0.577350259 : f32
    %499 = vector.broadcast %cst_171 : f32 to vector<16x32xf32>
    %500 = arith.mulf %498, %499 : vector<16x32xf32>
    %501 = vector.broadcast %1 : vector<16x1xf32> to vector<16x32xf32>
    %502 = arith.mulf %500, %501 : vector<16x32xf32>
    %c0_172 = arith.constant 0 : index
    %c1792_173 = arith.constant 1792 : index
    %503 = vector.load %arg5[%c0_172, %c1792_173] : memref<32x1920xf32, #tpu.memory_space<vmem>>, vector<32x64xf32>
    %cst_174 = arith.constant dense<0.000000e+00> : vector<16x64xf32>
    %504 = tpu.matmul %502, %503, %cst_174 {dimension_numbers = #tpu.dot_dimension_numbers<[1], [0], [0], [1], [0, 0, 1, 1], [], []>} : vector<16x32xf32>, vector<32x64xf32>, vector<16x64xf32> -> vector<16x64xf32>
    %c0_175 = arith.constant 0 : index
    %c1920 = arith.constant 1920 : index
    %505 = vector.load %arg7[%c0_175, %c1920] : memref<1x2432xf32, #tpu.memory_space<vmem>>, vector<1x64xf32>
    %506 = vector.broadcast %505 : vector<1x64xf32> to vector<16x64xf32>
    %507 = arith.addf %504, %506 : vector<16x64xf32>
    %cst_176 = arith.constant 0.000000e+00 : f32
    %508 = vector.broadcast %cst_176 : f32 to vector<16x64xf32>
    %509 = arith.maximumf %507, %508 : vector<16x64xf32>
    %c0_177 = arith.constant 0 : index
    %c0_178 = arith.constant 0 : index
    %510 = vector.load %arg6[%c0_177, %c0_178] : memref<64x32xf32, #tpu.memory_space<vmem>>, vector<64x32xf32>
    %cst_179 = arith.constant dense<0.000000e+00> : vector<16x32xf32>
    %511 = tpu.matmul %509, %510, %cst_179 {dimension_numbers = #tpu.dot_dimension_numbers<[1], [0], [0], [1], [0, 0, 1, 1], [], []>} : vector<16x64xf32>, vector<64x32xf32>, vector<16x32xf32> -> vector<16x32xf32>
    %c0_180 = arith.constant 0 : index
    %c2048 = arith.constant 2048 : index
    %512 = vector.load %arg7[%c0_180, %c2048] : memref<1x2432xf32, #tpu.memory_space<vmem>>, vector<1x32xf32>
    %513 = vector.broadcast %512 : vector<1x32xf32> to vector<16x32xf32>
    %514 = arith.addf %511, %513 : vector<16x32xf32>
    %515 = arith.addf %502, %514 : vector<16x32xf32>
    %c0_181 = arith.constant 0 : index
    %c2176 = arith.constant 2176 : index
    %516 = vector.load %arg7[%c0_181, %c2176] : memref<1x2432xf32, #tpu.memory_space<vmem>>, vector<1x32xf32>
    %c0_182 = arith.constant 0 : index
    %c2304 = arith.constant 2304 : index
    %517 = vector.load %arg7[%c0_182, %c2304] : memref<1x2432xf32, #tpu.memory_space<vmem>>, vector<1x32xf32>
    %cst_183 = arith.constant dense<0.000000e+00> : vector<16xf32>
    %518 = vector.multi_reduction <add>, %515, %cst_183 [1] : vector<16x32xf32> to vector<16xf32>
    %519 = vector.shape_cast %518 : vector<16xf32> to vector<16x1xf32>
    %cst_184 = arith.constant 3.200000e+01 : f32
    %520 = vector.broadcast %cst_184 : f32 to vector<16x1xf32>
    %521 = arith.divf %519, %520 : vector<16x1xf32>
    %522 = vector.broadcast %521 : vector<16x1xf32> to vector<16x32xf32>
    %523 = arith.subf %515, %522 : vector<16x32xf32>
    %524 = arith.mulf %523, %523 : vector<16x32xf32>
    %cst_185 = arith.constant dense<0.000000e+00> : vector<16xf32>
    %525 = vector.multi_reduction <add>, %524, %cst_185 [1] : vector<16x32xf32> to vector<16xf32>
    %526 = vector.shape_cast %525 : vector<16xf32> to vector<16x1xf32>
    %cst_186 = arith.constant 3.200000e+01 : f32
    %527 = vector.broadcast %cst_186 : f32 to vector<16x1xf32>
    %528 = arith.divf %526, %527 : vector<16x1xf32>
    %529 = vector.broadcast %521 : vector<16x1xf32> to vector<16x32xf32>
    %530 = arith.subf %515, %529 : vector<16x32xf32>
    %cst_187 = arith.constant 9.99999974E-6 : f32
    %531 = vector.broadcast %cst_187 : f32 to vector<16x1xf32>
    %532 = arith.addf %528, %531 : vector<16x1xf32>
    %533 = math.sqrt %532 : vector<16x1xf32>
    %534 = vector.broadcast %533 : vector<16x1xf32> to vector<16x32xf32>
    %535 = arith.divf %530, %534 : vector<16x32xf32>
    %536 = vector.broadcast %516 : vector<1x32xf32> to vector<16x32xf32>
    %537 = arith.mulf %535, %536 : vector<16x32xf32>
    %538 = vector.broadcast %517 : vector<1x32xf32> to vector<16x32xf32>
    %539 = arith.addf %537, %538 : vector<16x32xf32>
    %540 = vector.broadcast %1 : vector<16x1xf32> to vector<16x32xf32>
    %541 = arith.mulf %539, %540 : vector<16x32xf32>
    %c0_188 = arith.constant 0 : index
    %c0_189 = arith.constant 0 : index
    %542 = vector.load %arg8[%c0_188, %c0_189] : memref<16x32xf32, #tpu.memory_space<vmem>>, vector<16x32xf32>
    tpu.vector_store %arg8[%c0_188, %c0_189], %541 {strides = array<i32>} : memref<16x32xf32, #tpu.memory_space<vmem>>, vector<16x32xf32>,
    return
  }
}

</mosaic_0001>

<bundles_post_ra>
// kernel: meshed_decoder_layer.1
= control target key start
LH: loop header
LB: loop body
LE: loop exit
PB: predicated region body
PF: predicated region fallthrough
CT: control target
= control target key end

     0   :  { %13 = vsyncpa [#allocation3], 0  ;;  %s9561_s0 = inlined_call_operand.vmem [shape: f32[16,32], index: 0, kind: input, shape index: {}]   ;;  %s9562_s1 = inlined_call_operand.vmem [shape: f32[96,32], index: 1, kind: input, shape index: {}]   ;;  %s9563_s2 = inlined_call_operand.vmem [shape: f32[16,1], index: 2, kind: input, shape index: {}]   ;;  %s9564_s3 = inlined_call_operand.vmem [shape: f32[16,8], index: 3, kind: input, shape index: {}]   ;;  %s9565_s4 = inlined_call_operand.vmem [shape: f32[2,16], index: 4, kind: input, shape index: {}]   ;;  %s9566_s5 = inlined_call_operand.hbm [shape: f32[32,1920], index: 5, kind: input, shape index: {}]   ;;  %s9567_s6 = inlined_call_operand.vmem [shape: f32[64,32], index: 6, kind: input, shape index: {}]   ;;  %s9568_s7 = inlined_call_operand.vmem [shape: f32[1,2432], index: 7, kind: input, shape index: {}]   ;;  %s9569_s8 = inlined_call_operand.hbm [shape: f32[16,32], index: 8, kind: output, shape index: {}]  }
   0x1   :  { %14 = vsyncpa [#allocation4], 0  ;;  %s8471_s27 = smov [#allocation2]   ;;  %s8423_s9 = scalar_lea.hbm %s9566_s5, 7680 }
   0x2   :  { %s30_s28 = sshll.u32 %s8471_s27, 4  ;;  %p8424_p0 = scmp.ne.s32.totalorder %s9566_s5, %s8423_s9  ;;  %s31_s28 = int_to_ptr.vmem [resolvable:$true] %s30_s28 }
   0x3   :  { %p8427_p1 = scmp.lt.u32.totalorder %s8423_s9, %s9566_s5 }
   0x5   :  { %p8429_p2 = pnand %p8427_p1, %p8424_p0 }
   0x7   :  { %8432 = shalt.err (!%p8429_p2)
}
   0x8   :  { %s8433_s14 = scalar_lea.vmem %s31_s28, 7680  ;;  %p8438_p4 = scmp.lt.s32.totalorder %s31_s28, %s31_s28 }
   0x9   :  { %p8434_p3 = scmp.ne.s32.totalorder %s31_s28, %s8433_s14  ;;  %p8439_p5 = scmp.lt.s32.totalorder %s8433_s14, %s8433_s14 }
   0xb   :  { %p8440_p6 = por %p8439_p5, %p8438_p4 }
   0xd   :  { %p8441_p7 = pnand %p8440_p6, %p8434_p3 }
   0xf   :  { %8444 = shalt.err (!%p8441_p7)
}
  0x10   :  { %s8472_s15 = smov 1920   ;;  %s8473_s16 = smov 120  }
  0x11   :  { %36 = dma.hbm_to_vmem [thread:$0]  %s9566_s5, 7680, %s31_s28, [#allocation3], %s8472_s15, %s8472_s15, %s8473_s16  }
  0x12   :  { %8467 = dma.done.wait [#allocation3], 7680  }
  0x13   :  { %8468 = vsyncadd [#allocation3], 4294959616  ;;  %vm85_vm0 = vcmask 261120   ;;  %v74_v0 = vld [vmem:[#allocation2] sm:$0xff]  ;;  %v75_v1 = vld [vmem:[#allocation2 + $0x78] sm:$0xff]  ;;  %vm49_vm1 = vcmask 64512  }
  0x14   :  { %v76_v2 = vld [vmem:[#allocation2 + $0xf0] sm:$0xff]  ;;  %v7572_v3 = vpack.c.bf16 %v75_v1, %v74_v0  ;;  %v77_v4 = vld [vmem:[#allocation2 + $0x168] sm:$0xff]  ;;  %v8542_v5 = vld [vmem:[%s9561_s0] sm:$0xff]  ;;  %s8474_s27 = smov 8   ;;  %s8475_s28 = smov 112   ;;  %vm58_vm3 = vcmask 130048  }
  0x15   :  { %v7576_v6 = vpack.c.bf16 %v77_v4, %v76_v2  ;;  %6988 = vmatprep.mubr.msk.f32.mxu1 %vm85_vm0, %v8542_v5  ;;  %v167_v7 = vld [vmem:[#allocation2 + $0x8] sm:$0xff]  ;;  %v168_v8 = vld [vmem:[#allocation2 + $0x80] sm:$0xff]  ;;  %7010 = vmatprep.mubr.msk.f32.mxu0 %vm85_vm0, %v8542_v5  ;;  %v169_v10 = vld [vmem:[#allocation2 + $0xf8] sm:$0xff]  ;;  %s8476_s10 = smov 104   ;;  %s8478_s26 = smov 16  }
  0x16   :  { %7573 = vmatprep.subr.bf16.mxu1 %v7572_v3  ;;  %v7580_v9 = vpack.c.bf16 %v168_v8, %v167_v7  ;;  %v170_v11 = vld [vmem:[#allocation2 + $0x170] sm:$0xff]  ;;  %v8551_v12 = vld [vmem:[%s9561_s0 + $0x8] sm:$0xff]  ;;  %v6423_v14 = vld [vmem:[%s9568_s7] ss:$0 sm:$0xff] }
  0x17   :  { %7575 = vmatpush3.bf16.msra.mxu1 %v7572_v3  ;;  %v7584_v13 = vpack.c.bf16 %v170_v11, %v169_v10  ;;  %v51_v19 = vld [vmem:[%s9564_s3 + $0x8] sm:$0xff]  ;;  %v6426_v20 = vld [vmem:[%s9568_s7 + $0x1] ss:$0 sm:$0xff]  ;;  %vm8581_vm2 = vmpackc.low %vm49_vm1, %vm49_vm1 }
  0x18   :  { %7577 = vmatprep.subr.bf16.mxu1 %v7576_v6  ;;  %v253_v28 = vld [vmem:[#allocation2 + $0x10] sm:$0xff]  ;;  %v254_v29 = vld [vmem:[#allocation2 + $0x88] sm:$0xff]  ;;  %v255_v30 = vld [vmem:[#allocation2 + $0x100] sm:$0xff] }
  0x19   :  { %v7588_v31 = vpack.c.bf16 %v254_v29, %v253_v28  ;;  %v256_v32 = vld [vmem:[#allocation2 + $0x178] sm:$0xff]  ;;  %v48_v47 = vld [vmem:[%s9564_s3] sm:$0xff] }
  0x1a   :  { %v7592_v33 = vpack.c.bf16 %v256_v32, %v255_v30  ;;  %v8622_v49 = vsel %vm49_vm1, %v48_v47, -1e+30 }
  0x1b   :  { %7579 = vmatpush3.bf16.msra.mxu1 %v7576_v6  ;;  %7589 = vmatprep.subr.bf16.mxu0 %v7588_v31 }
  0x1c   :  { %7581 = vmatprep.subr.bf16.mxu1 %v7580_v9  ;;  %7591 = vmatpush3.bf16.msra.mxu0 %v7588_v31 }
  0x1d   :  { %7593 = vmatprep.subr.bf16.mxu0 %v7592_v33 }
  0x1e   :  { %6989 = vmatmul.mubr.msk.f32.vlgmr.msra.gmra.mrb[0].mxu1 %vm85_vm0, %v8551_v12 }
  0x1f   :  { %7583 = vmatpush3.bf16.msra.mxu1 %v7580_v9  ;;  %6999 = vmatprep.mubr.msk.f32.mxu1 %vm85_vm0, %v8542_v5 }
  0x20   :  { %7585 = vmatprep.subr.bf16.mxu1 %v7584_v13  ;;  %7595 = vmatpush3.bf16.msra.mxu0 %v7592_v33 }
  0x23   :  { %7587 = vmatpush3.bf16.msra.mxu1 %v7584_v13  ;;  %7011 = vmatmul.mubr.msk.f32.vlgmr.msra.gmra.mrb[0].mxu0 %vm85_vm0, %v8551_v12  ;;  %v6429_v13 = vld [vmem:[%s9568_s7 + $0x2] ss:$0 sm:$0xff] }
  0x26   :  { %7000 = vmatmul.mubr.msk.f32.vlgmr.msra.gmra.mrb[2].mxu1 %vm85_vm0, %v8551_v12 }
  0xf1   :  { %v6990_v15 = vpop.f32.mrb[0].mxu1 }
  0xf2   :  { %v8562_v16 = vadd.f32 %v6990_v15, %v6423_v14  ;;  %v158_v17 = vpop.f32.mrb[1].mxu1 }
  0xf3   :  { %v8564_v18 = vadd.f32 %v6423_v14, %v158_v17 }
  0xf4   :  { %535 = vrot.lane.b32.xlu1 %v8562_v16, %s8473_s16 }
  0xf5   :  { %7017 = vmatprep.mubr.msk.f32.mxu1 %vm49_vm1, %v8564_v18 }
  0xf6   :  { %v7012_v7 = vpop.f32.mrb[0].mxu0 }
  0xf7   :  { %v336_v14 = vadd.f32 %v7012_v7, %v6429_v13  ;;  %v330_v15 = vpop.f32.mrb[1].mxu0 }
  0xf8   :  { %53 = vrot.lane.b32.xlu1 %v51_v19, %s8474_s27  ;;  %v331_v17 = vadd.f32 %v6429_v13, %v330_v15 }
  0xf9   :  { %v7001_v21 = vpop.f32.mrb[2].mxu1 }
  0xfa   :  { %v250_v22 = vadd.f32 %v7001_v21, %v6426_v20  ;;  %v244_v23 = vpop.f32.mrb[3].mxu1  ;;  %v8637_v19 = vpack.i.bf16 %v336_v14, %v331_v17 }
  0xfb   :  { %v245_v24 = vadd.f32 %v6426_v20, %v244_v23  ;;  %v7602_v20 = vpack.c.bf16 %v336_v14, %v331_v17 }
  0xfc   :  { %897 = vrot.lane.b32.xlu1 %v8564_v18, %s8475_s28 }
  0xfd   :  { %v8585_v26 = vpack.i.bf16 %v250_v22, %v245_v24  ;;  %v7596_v27 = vpack.c.bf16 %v250_v22, %v245_v24  ;;  %7603 = vmatprep.subr.bf16.mxu0 %v7602_v20 }
  0xfe   :  { %7605 = vmatpush3.bf16.msra.mxu0 %v7602_v20 }
  0xff   :  { %8013 = vrot.lane.b32.xlu0 %v8585_v26, %s8473_s16  ;;  %7598 = vmatprep.subr.msk.bf16.mxu1 %vm8581_vm2, %v7596_v27 }
 0x100   :  { %7601 = vmatpush3.bf16.xpose.msk.msra.mxu1 %vm8581_vm2, %v7596_v27 }
 0x103   :  { %533 = vrot.lane.b32.xlu0 %v8564_v18, %s8473_s16 }
 0x107   :  { %8018 = vrot.lane.b32.xlu0 %v8585_v26, %s8475_s28  ;;  %7018 = vmatmul.mubr.msk.f32.vlgmr.msra.gmra.mrb[4].mxu1 %vm49_vm1, %v8562_v16 }
 0x10b   :  { %899 = vrot.lane.b32.xlu0 %v8562_v16, %s8475_s28 }
 0x166   :  { %v536_v35 = vpop.permute.xlu1 %535 }
 0x16a   :  { %v54_v40 = vpop.permute.xlu1 %53 }
 0x16b   :  { %v8619_v48 = vsel %vm49_vm1, -1e+30, %v54_v40 }
 0x16e   :  { %v898_v45 = vpop.permute.xlu1 %897 }
 0x171   :  { %v8014_v34 = vpop.permute.xlu0 %8013 }
 0x172   :  { %v8016_v36 = vunpack.i.h.bf16 %v8014_v34  ;;  %v8015_v37 = vunpack.i.l.bf16 %v8014_v34 }
 0x174   :  { %v7606_v38 = vpack.c.bf16 %v8016_v36, %v8015_v37 }
 0x175   :  { %v534_v39 = vpop.permute.xlu0 %533 }
 0x176   :  { %7608 = vmatprep.subr.msk.bf16.mxu1 %vm8581_vm2, %v7606_v38  ;;  %7031 = vmatprep.mubr.msk.f32.mxu1 %vm49_vm1, %v534_v39 }
 0x177   :  { %7611 = vmatpush3.bf16.xpose.msk.msra.mxu1 %vm8581_vm2, %v7606_v38 }
 0x179   :  { %v8019_v41 = vpop.permute.xlu0 %8018 }
 0x17a   :  { %v8021_v42 = vunpack.i.h.bf16 %v8019_v41  ;;  %v8020_v43 = vunpack.i.l.bf16 %v8019_v41 }
 0x17c   :  { %v7616_v44 = vpack.c.bf16 %v8021_v42, %v8020_v43 }
 0x17d   :  { %v900_v46 = vpop.permute.xlu0 %899 }
 0x17e   :  { %7032 = vmatmul.mubr.msk.f32.vlgmr.msra.gmra.mrb[6].mxu1 %vm49_vm1, %v536_v35  ;;  %7618 = vmatprep.subr.msk.bf16.mxu1 %vm8581_vm2, %v7616_v44 }
 0x17f   :  { %7621 = vmatpush3.bf16.xpose.msk.msra.mxu1 %vm8581_vm2, %v7616_v44  ;;  %7055 = vmatprep.mubr.msk.f32.mxu1 %vm49_vm1, %v898_v45 }
 0x186   :  { %7056 = vmatmul.mubr.msk.f32.vlgmr.msra.gmra.mrb[8].mxu1 %vm49_vm1, %v900_v46 }
 0x1da   :  { %v7019_v50 = vpop.f32.mrb[4].mxu1 }
 0x1db   :  { %v427_v51 = vadd.f32 %v7019_v50, %v8619_v48  ;;  %v421_v52 = vpop.f32.mrb[5].mxu1 }
 0x1dc   :  { %v422_v53 = vadd.f32 %v421_v52, %v8622_v49 }
 0x1dd   :  { %v433_v54 = vsel %vm58_vm3, %v427_v51, -inf }
 0x1de   :  { %434 = vmax.xlane.f32.xlu0 %v433_v54  ;;  %v430_v55 = vsel %vm58_vm3, %v422_v53, -inf }
 0x1df   :  { %431 = vmax.xlane.f32.xlu1 %v430_v55 }
 0x251   :  { %v7033_v56 = vpop.f32.mrb[6].mxu1 }
 0x252   :  { %v621_v57 = vadd.f32 %v7033_v56, %v8619_v48  ;;  %v615_v58 = vpop.f32.mrb[7].mxu1 }
 0x253   :  { %v616_v59 = vadd.f32 %v615_v58, %v8622_v49 }
 0x254   :  { %v627_v60 = vsel %vm58_vm3, %v621_v57, -inf }
 0x255   :  { %628 = vmax.xlane.f32.xlu1 %v627_v60  ;;  %v624_v61 = vsel %vm58_vm3, %v616_v59, -inf }
 0x256   :  { %625 = vmax.xlane.f32.xlu0 %v624_v61 }
 0x259   :  { %v7057_v62 = vpop.f32.mrb[8].mxu1 }
 0x25a   :  { %v979_v63 = vpop.f32.mrb[9].mxu1 }
 0x26b   :  { %v435_v0 = vpop.xlane.xlu0 %434 }
 0x26c   :  { %v437_v1 = vsub.f32 %v427_v51, %v435_v0  ;;  %v432_v2 = vpop.xlane.xlu1 %431 }
 0x26d   :  { %v436_v3 = vsub.f32 %v422_v53, %v432_v2 }
 0x26e   :  { %v440_v4 = vmul.f32 1.442695, %v437_v1 }
 0x26f   :  { %v438_v6 = vmul.f32 1.442695, %v436_v3 }
 0x270   :  { %8224 = vpow2.f32 %v440_v4  ;;  %v340_v4 = vld [vmem:[#allocation2 + $0x90] sm:$0xff] }
 0x271   :  { %8226 = vpow2.f32 %v438_v6  ;;  %v339_v6 = vld [vmem:[#allocation2 + $0x18] sm:$0xff] }
 0x27a   :  { %v8225_v8 = vpop.eup %8224 }
 0x27b   :  { %v8227_v9 = vpop.eup %8226  ;;  %v445_v10 = vsel %vm58_vm3, %v8225_v8, 0.0 }
 0x27c   :  { %446 = vadd.xlane.f32.xlu1 %v445_v10  ;;  %v442_v11 = vsel %vm58_vm3, %v8227_v9, 0.0 }
 0x27d   :  { %443 = vadd.xlane.f32.xlu0 %v442_v11 }
 0x2e2   :  { %v629_v21 = vpop.xlane.xlu1 %628 }
 0x2e3   :  { %v631_v22 = vsub.f32 %v621_v57, %v629_v21  ;;  %v626_v23 = vpop.xlane.xlu0 %625 }
 0x2e4   :  { %v630_v24 = vsub.f32 %v616_v59, %v626_v23 }
 0x2e5   :  { %v634_v27 = vmul.f32 1.442695, %v631_v22 }
 0x2e6   :  { %v632_v28 = vmul.f32 1.442695, %v630_v24 }
 0x2e7   :  { %8228 = vpow2.f32 %v634_v27 }
 0x2e8   :  { %8230 = vpow2.f32 %v632_v28 }
 0x2f1   :  { %v8229_v29 = vpop.eup %8228 }
 0x2f2   :  { %v8231_v30 = vpop.eup %8230  ;;  %v639_v31 = vsel %vm58_vm3, %v8229_v29, 0.0 }
 0x2f3   :  { %640 = vadd.xlane.f32.xlu1 %v639_v31  ;;  %v636_v32 = vsel %vm58_vm3, %v8231_v30, 0.0 }
 0x2f4   :  { %637 = vadd.xlane.f32.xlu0 %v636_v32  ;;  %v341_v32 = vld [vmem:[#allocation2 + $0x108] sm:$0xff] }
 0x304   :  { %8028 = vrot.lane.b32.xlu1 %v8585_v26, %s8476_s10  ;;  %v985_v26 = vadd.f32 %v7057_v62, %v8619_v48 }
 0x306   :  { %v991_v40 = vsel %vm58_vm3, %v985_v26, -inf }
 0x308   :  { %1180 = vrot.lane.b32.xlu1 %v8564_v18, %s8476_s10  ;;  %v980_v18 = vadd.f32 %v979_v63, %v8622_v49 }
 0x309   :  { %v447_v33 = vpop.xlane.xlu1 %446 }
 0x30a   :  { %8232 = vrcp.f32 %v447_v33  ;;  %8023 = vrot.lane.b32.xlu0 %v8637_v19, %s8473_s16  ;;  %v444_v34 = vpop.xlane.xlu0 %443  ;;  %v988_v39 = vsel %vm58_vm3, %v980_v18, -inf }
 0x30b   :  { %8234 = vrcp.f32 %v444_v34 }
 0x30e   :  { %1182 = vrot.lane.b32.xlu0 %v8562_v16, %s8476_s10 }
 0x314   :  { %v8233_v35 = vpop.eup %8232 }
 0x315   :  { %v8235_v36 = vpop.eup %8234  ;;  %v451_v38 = vmul.f32 %v8233_v35, %v8225_v8 }
 0x316   :  { %v449_v37 = vmul.f32 %v8235_v36, %v8227_v9 }
 0x318   :  { %7024 = vmatprep.mubr.msk.f32.mxu0 %vm58_vm3, %v449_v37 }
 0x319   :  { %7025 = vmatmul.mubr.msk.f32.vlgmr.msra.gmra.mrb[2].mxu0 %vm58_vm3, %v451_v38 }
 0x32c   :  { %989 = vmax.xlane.f32.xlu1 %v988_v39 }
 0x32d   :  { %992 = vmax.xlane.f32.xlu0 %v991_v40 }
 0x380   :  { %v641_v41 = vpop.xlane.xlu1 %640 }
 0x381   :  { %8236 = vrcp.f32 %v641_v41  ;;  %v638_v16 = vpop.xlane.xlu0 %637 }
 0x382   :  { %8238 = vrcp.f32 %v638_v16 }
 0x384   :  { %v8029_v42 = vpop.permute.xlu1 %8028 }
 0x385   :  { %v8031_v43 = vunpack.i.h.bf16 %v8029_v42  ;;  %v8030_v44 = vunpack.i.l.bf16 %v8029_v42  ;;  %v8024_v45 = vpop.permute.xlu0 %8023 }
 0x386   :  { %v8026_v46 = vunpack.i.h.bf16 %v8024_v45  ;;  %v8025_v47 = vunpack.i.l.bf16 %v8024_v45 }
 0x387   :  { %v7626_v50 = vpack.c.bf16 %v8031_v43, %v8030_v44 }
 0x388   :  { %v1181_v51 = vpop.permute.xlu1 %1180  ;;  %v7612_v52 = vpack.c.bf16 %v8026_v46, %v8025_v47  ;;  %v342_v47 = vld [vmem:[#allocation2 + $0x180] sm:$0xff] }
 0x389   :  { %7628 = vmatprep.subr.msk.bf16.mxu1 %vm8581_vm2, %v7626_v50  ;;  %7074 = vmatprep.mubr.msk.f32.mxu1 %vm49_vm1, %v1181_v51  ;;  %v1183_v57 = vpop.permute.xlu0 %1182 }
 0x38a   :  { %7631 = vmatpush3.bf16.xpose.msk.msra.mxu1 %vm8581_vm2, %v7626_v50  ;;  %7613 = vmatprep.subr.bf16.mxu0 %v7612_v52 }
 0x38b   :  { %v8237_v53 = vpop.eup %8236  ;;  %7615 = vmatpush3.bf16.msra.mxu0 %v7612_v52 }
 0x38c   :  { %v8239_v54 = vpop.eup %8238  ;;  %v645_v56 = vmul.f32 %v8237_v53, %v8229_v29  ;;  %7041 = vmatprep.subr.mxu0 %v340_v4 }
 0x38d   :  { %v643_v55 = vmul.f32 %v8239_v54, %v8231_v30 }
 0x38f   :  { %7038 = vmatprep.mubr.msk.f32.mxu0 %vm58_vm3, %v643_v55  ;;  %v6464_v55 = vld [vmem:[%s9568_s7 + $0x3] ss:$0 sm:$0xff] }
 0x390   :  { %7039 = vmatmul.mubr.msk.f32.vlgmr.msra.gmra.mrb[4].mxu0 %vm58_vm3, %v645_v56 }
 0x391   :  { %7075 = vmatmul.mubr.msk.f32.vlgmr.msra.gmra.mrb[10].mxu1 %vm49_vm1, %v1183_v57  ;;  %7042 = vmatpush3.msra.mxu0 %v340_v4 }
 0x392   :  { %7046 = vmatprep.subr.mxu0 %v339_v6 }
 0x3b9   :  { %v990_v58 = vpop.xlane.xlu1 %989 }
 0x3ba   :  { %v994_v59 = vsub.f32 %v980_v18, %v990_v58  ;;  %v993_v60 = vpop.xlane.xlu0 %992 }
 0x3bb   :  { %v995_v61 = vsub.f32 %v985_v26, %v993_v60 }
 0x3bc   :  { %v996_v62 = vmul.f32 1.442695, %v994_v59 }
 0x3bd   :  { %v998_v63 = vmul.f32 1.442695, %v995_v61 }
 0x3be   :  { %8240 = vpow2.f32 %v996_v62 }
 0x3bf   :  { %8242 = vpow2.f32 %v998_v63 }
 0x3c8   :  { %v8241_v0 = vpop.eup %8240 }
 0x3c9   :  { %v8243_v1 = vpop.eup %8242  ;;  %v1000_v2 = vsel %vm58_vm3, %v8241_v0, 0.0 }
 0x3ca   :  { %1001 = vadd.xlane.f32.xlu0 %v1000_v2  ;;  %v1003_v3 = vsel %vm58_vm3, %v8243_v1, 0.0 }
 0x3cb   :  { %1004 = vadd.xlane.f32.xlu1 %v1003_v3 }
 0x3e0   :  { %8033 = vrot.lane.b32.xlu0 %v8637_v19, %s8475_s28 }
 0x3ec   :  { %v7026_v7 = vpop.f32.mrb[2].mxu0 }
 0x3ed   :  { %v524_v8 = vpop.f32.mrb[3].mxu0 }
 0x457   :  { %v1002_v9 = vpop.xlane.xlu0 %1001 }
 0x458   :  { %8244 = vrcp.f32 %v1002_v9  ;;  %v1005_v11 = vpop.xlane.xlu1 %1004 }
 0x459   :  { %8246 = vrcp.f32 %v1005_v11  ;;  %v1649_v11 = vld [vmem:[#allocation2 + $0x28] sm:$0xff] }
 0x45b   :  { %v8034_v10 = vpop.permute.xlu0 %8033 }
 0x45c   :  { %v8036_v13 = vunpack.i.h.bf16 %v8034_v10  ;;  %v8035_v14 = vunpack.i.l.bf16 %v8034_v10 }
 0x45e   :  { %v7622_v23 = vpack.c.bf16 %v8036_v13, %v8035_v14  ;;  %v1650_v13 = vld [vmem:[#allocation2 + $0xa0] sm:$0xff] }
 0x45f   :  { %v7644_v14 = vpack.c.bf16 %v1650_v13, %v1649_v11 }
 0x462   :  { %v8245_v28 = vpop.eup %8244 }
 0x463   :  { %v7040_v15 = vpop.f32.mrb[4].mxu0  ;;  %v8247_v30 = vpop.eup %8246  ;;  %v1007_v31 = vmul.f32 %v8245_v28, %v8241_v0  ;;  %v8477_v0 = vmov 0   ;;  %v1557_v28 = vld [vmem:[#allocation2 + $0x20] sm:$0xff] }
 0x464   :  { %v726_v17 = vpop.f32.mrb[5].mxu0  ;;  %v7076_v20 = vpop.f32.mrb[10].mxu1  ;;  %8042 = vset.pattern.permute.xlu0 %v8477_v0  ;;  %8043 = vset.pattern.permute.xlu1 %v8477_v0 }
 0x465   :  { %7043 = vmatprep.mubr.msk.f32.mxu0 %vm49_vm1, %v726_v17  ;;  %v1262_v21 = vpop.f32.mrb[11].mxu1  ;;  %v1268_v24 = vadd.f32 %v7076_v20, %v8619_v48  ;;  %v1652_v17 = vld [vmem:[#allocation2 + $0x190] sm:$0xff] }
 0x466   :  { %v1263_v22 = vadd.f32 %v1262_v21, %v8622_v49  ;;  %7044 = vmatmul.mubr.msk.f32.vlgmr.msra.gmra.mrb[6].mxu0 %vm49_vm1, %v7040_v15  ;;  %v1009_v49 = vmul.f32 %v8247_v30, %v8243_v1  ;;  %v47_v1 = vld [vmem:[%s9563_s2 + $0x8] sm:$0xff]  ;;  %v1651_v15 = vld [vmem:[#allocation2 + $0x118] sm:$0xff]  ;;  %v46_v21 = vld [vmem:[%s9563_s2] sm:$0xff]  ;;  %s8479_s2 = smov [#allocation5]  }
 0x467   :  { %7047 = vmatpush3.msra.mxu0 %v339_v6  ;;  %7048 = vmatprep.mubr.msk.f32.mxu0 %vm49_vm1, %v524_v8  ;;  %v1274_v29 = vsel %vm58_vm3, %v1268_v24, -inf  ;;  %v7648_v20 = vpack.c.bf16 %v1652_v17, %v1651_v15  ;;  %v8834_v15 = vld [vmem:[%s9562_s1 + $0x50] sm:$0xff]  ;;  %v8841_v17 = vld [vmem:[%s9562_s1 + $0x58] sm:$0xff]  ;;  %s6411_s21 = sshll.u32 %s8479_s2, 4  ;;  %s6412_s21 = int_to_ptr.vmem [resolvable:$true] %s6411_s21 }
 0x468   :  { %7623 = vmatprep.subr.bf16.mxu0 %v7622_v23  ;;  %v1271_v27 = vsel %vm58_vm3, %v1263_v22, -inf  ;;  %s8445_s22 = scalar_lea.vmem %s6412_s21, 256  ;;  %p8450_p9 = scmp.lt.s32.totalorder %s6412_s21, %s6412_s21 }
 0x469   :  { %1272 = vmax.xlane.f32.xlu1 %v1271_v27  ;;  %v8734_v27 = vld [vmem:[%s9562_s1 + $0x18] sm:$0xff]  ;;  %p8446_p8 = scmp.ne.s32.totalorder %s6412_s21, %s8445_s22  ;;  %p8451_p10 = scmp.lt.s32.totalorder %s8445_s22, %s8445_s22 }
 0x46b   :  { %p8452_p11 = por %p8451_p10, %p8450_p9 }
 0x46d   :  { %1275 = vmax.xlane.f32.xlu1 %v1274_v29  ;;  %v1558_v29 = vld [vmem:[#allocation2 + $0x98] sm:$0xff]  ;;  %p8453_p12 = pnand %p8452_p11, %p8446_p8 }
 0x46e   :  { %7049 = vmatmul.mubr.msk.f32.vlgmr.msra.gmra.mrb[6].mxu0 %vm49_vm1, %v7026_v7  ;;  %v7636_v30 = vpack.c.bf16 %v1558_v29, %v1557_v28 }
 0x46f   :  { %7625 = vmatpush3.bf16.msra.mxu0 %v7622_v23  ;;  %7062 = vmatprep.mubr.msk.f32.mxu0 %vm58_vm3, %v1007_v31  ;;  %v8720_v23 = vld [vmem:[%s9562_s1 + $0x8] sm:$0xff]  ;;  %v1559_v31 = vld [vmem:[#allocation2 + $0x110] sm:$0xff] }
 0x470   :  { %7065 = vmatprep.subr.mxu0 %v341_v32  ;;  %7637 = vmatprep.subr.bf16.mxu1 %v7636_v30 }
 0x471   :  { %7639 = vmatpush3.bf16.msra.mxu1 %v7636_v30  ;;  %v6467_v30 = vld [vmem:[%s9568_s7 + $0x6] ss:$0 sm:$0xff] }
 0x472   :  { %7063 = vmatmul.mubr.msk.f32.vlgmr.msra.gmra.mrb[8].mxu0 %vm58_vm3, %v1009_v49  ;;  %v1560_v49 = vld [vmem:[#allocation2 + $0x188] sm:$0xff] }
 0x473   :  { %7066 = vmatpush3.msra.mxu0 %v341_v32  ;;  %v7640_v32 = vpack.c.bf16 %v1560_v49, %v1559_v31 }
 0x475   :  { %7641 = vmatprep.subr.bf16.mxu1 %v7640_v32 }
 0x476   :  { %7643 = vmatpush3.bf16.msra.mxu1 %v7640_v32 }
 0x4f6   :  { %v1273_v48 = vpop.xlane.xlu1 %1272 }
 0x4f7   :  { %v1277_v33 = vsub.f32 %v1263_v22, %v1273_v48  ;;  %v8713_v22 = vld [vmem:[%s9562_s1] sm:$0xff] }
 0x4f8   :  { %v8741_v48 = vld [vmem:[%s9562_s1 + $0x20] sm:$0xff] }
 0x4f9   :  { %v1279_v36 = vmul.f32 1.442695, %v1277_v33  ;;  %v8746_v33 = vld [vmem:[%s9562_s1 + $0x28] sm:$0xff] }
 0x4fa   :  { %v1276_v34 = vpop.xlane.xlu1 %1275 }
 0x4fb   :  { %v1278_v35 = vsub.f32 %v1268_v24, %v1276_v34  ;;  %v8727_v24 = vld [vmem:[%s9562_s1 + $0x10] sm:$0xff] }
 0x4fc   :  { %v8751_v34 = vld [vmem:[%s9562_s1 + $0x30] sm:$0xff] }
 0x4fd   :  { %v1281_v37 = vmul.f32 1.442695, %v1278_v35  ;;  %v8762_v35 = vld [vmem:[%s9562_s1 + $0x38] sm:$0xff] }
 0x4ff   :  { %8248 = vpow2.f32 %v1281_v37  ;;  %v8776_v37 = vld [vmem:[%s9562_s1 + $0x48] sm:$0xff] }
 0x500   :  { %8250 = vpow2.f32 %v1279_v36  ;;  %v8767_v36 = vld [vmem:[%s9562_s1 + $0x40] sm:$0xff] }
 0x509   :  { %v8249_v38 = vpop.eup %8248 }
 0x50a   :  { %v1286_v18 = vsel %vm58_vm3, %v8249_v38, 0.0  ;;  %v8251_v26 = vpop.eup %8250 }
 0x50b   :  { %1287 = vadd.xlane.f32.xlu1 %v1286_v18  ;;  %v1283_v39 = vsel %vm58_vm3, %v8251_v26, 0.0 }
 0x50f   :  { %1284 = vadd.xlane.f32.xlu1 %v1283_v39 }
 0x520   :  { %8038 = vrot.lane.b32.xlu1 %v8637_v19, %s8476_s10 }
 0x545   :  { %v7064_v40 = vpop.f32.mrb[8].mxu0 }
 0x546   :  { %v1088_v41 = vpop.f32.mrb[9].mxu0 }
 0x547   :  { %7067 = vmatprep.mubr.msk.f32.mxu0 %vm49_vm1, %v1088_v41 }
 0x548   :  { %7068 = vmatmul.mubr.msk.f32.vlgmr.msra.gmra.mrb[6].mxu0 %vm49_vm1, %v7064_v40 }
 0x598   :  { %v1288_v16 = vpop.xlane.xlu1 %1287 }
 0x599   :  { %8252 = vrcp.f32 %v1288_v16 }
 0x59c   :  { %v1285_v42 = vpop.xlane.xlu1 %1284 }
 0x59d   :  { %8254 = vrcp.f32 %v1285_v42 }
 0x5a0   :  { %v8039_v43 = vpop.permute.xlu1 %8038 }
 0x5a1   :  { %v8041_v44 = vunpack.i.h.bf16 %v8039_v43  ;;  %v8040_v45 = vunpack.i.l.bf16 %v8039_v43 }
 0x5a3   :  { %v7632_v46 = vpack.c.bf16 %v8041_v44, %v8040_v45  ;;  %v8253_v50 = vpop.eup %8252 }
 0x5a4   :  { %v1292_v52 = vmul.f32 %v8253_v50, %v8249_v38 }
 0x5a5   :  { %7633 = vmatprep.subr.bf16.mxu0 %v7632_v46 }
 0x5a6   :  { %7635 = vmatpush3.bf16.msra.mxu0 %v7632_v46 }
 0x5a7   :  { %v8255_v51 = vpop.eup %8254  ;;  %7084 = vmatprep.subr.mxu0 %v342_v47 }
 0x5a8   :  { %v1290_v19 = vmul.f32 %v8255_v51, %v8251_v26 }
 0x5aa   :  { %7081 = vmatprep.mubr.msk.f32.mxu0 %vm58_vm3, %v1290_v19 }
 0x5ab   :  { %7082 = vmatmul.mubr.msk.f32.vlgmr.msra.gmra.mrb[10].mxu0 %vm58_vm3, %v1292_v52 }
 0x5ac   :  { %7085 = vmatpush3.msra.mxu0 %v342_v47 }
 0x5ad   :  { %7645 = vmatprep.subr.bf16.mxu0 %v7644_v14 }
 0x67e   :  { %v7083_v53 = vpop.f32.mrb[10].mxu0 }
 0x67f   :  { %v1371_v54 = vpop.f32.mrb[11].mxu0 }
 0x680   :  { %7086 = vmatprep.mubr.msk.f32.mxu0 %vm49_vm1, %v1371_v54 }
 0x681   :  { %7087 = vmatmul.mubr.msk.f32.vlgmr.msra.gmra.mrb[6].mxu0 %vm49_vm1, %v7083_v53  ;;  %v6465_v53 = vld [vmem:[%s9568_s7 + $0x4] ss:$0 sm:$0xff] }
 0x682   :  { %7647 = vmatpush3.bf16.msra.mxu0 %v7644_v14  ;;  %7108 = vmatprep.mubr.msk.f32.mxu0 %vm85_vm0, %v8713_v22 }
 0x683   :  { %7649 = vmatprep.subr.bf16.mxu0 %v7648_v20 }
 0x686   :  { %7651 = vmatpush3.bf16.msra.mxu0 %v7648_v20 }
 0x689   :  { %7109 = vmatmul.mubr.msk.f32.vlgmr.msra.gmra.mrb[12].mxu0 %vm85_vm0, %v8720_v23 }
 0x68a   :  { %7111 = vmatprep.mubr.msk.f32.mxu0 %vm85_vm0, %v8727_v24 }
 0x68d   :  { %7112 = vmatmul.mubr.msk.f32.gmra.mrb[14].mxu0 %vm85_vm0, %v8734_v27 }
 0x68e   :  { %7114 = vmatprep.mubr.msk.f32.mxu0 %vm85_vm0, %v8741_v48 }
 0x691   :  { %7115 = vmatmul.mubr.msk.f32.gmra.mrb[16].mxu0 %vm85_vm0, %v8746_v33 }
 0x692   :  { %7117 = vmatprep.mubr.msk.f32.mxu0 %vm85_vm0, %v8751_v34 }
 0x695   :  { %7118 = vmatmul.mubr.msk.f32.gmra.mrb[18].mxu0 %vm85_vm0, %v8762_v35 }
 0x696   :  { %7120 = vmatprep.mubr.msk.f32.mxu0 %vm85_vm0, %v8767_v36 }
 0x699   :  { %7121 = vmatmul.mubr.msk.f32.gmra.mrb[20].mxu0 %vm85_vm0, %v8776_v37 }
 0x69a   :  { %7123 = vmatprep.mubr.msk.f32.mxu0 %vm85_vm0, %v8834_v15 }
 0x69d   :  { %7124 = vmatmul.mubr.msk.f32.gmra.mrb[22].mxu0 %vm85_vm0, %v8841_v17 }
 0x754   :  { %v7088_v56 = vpop.f32.mrb[6].mxu0 }
 0x755   :  { %v1471_v57 = vadd.f32 %v7088_v56, %v6464_v55  ;;  %v1452_v58 = vpop.f32.mrb[7].mxu0 }
 0x756   :  { %v1470_v59 = vadd.f32 %v6464_v55, %v1452_v58  ;;  %v6466_v55 = vld [vmem:[%s9568_s7 + $0x5] ss:$0 sm:$0xff] }
 0x757   :  { %v1473_v60 = vadd.f32 %v1471_v57, %v8551_v12 }
 0x758   :  { %v1472_v61 = vadd.f32 %v1470_v59, %v8542_v5 }
 0x759   :  { %v1479_v62 = vsel %vm85_vm0, %v1473_v60, 0.0 }
 0x75a   :  { %1480 = vadd.xlane.f32.xlu1 %v1479_v62  ;;  %v1476_v63 = vsel %vm85_vm0, %v1472_v61, 0.0 }
 0x75b   :  { %1477 = vadd.xlane.f32.xlu0 %v1476_v63 }
 0x76b   :  { %1540 = vperm.xlu1 %8043, %v47_v1  }
 0x7e7   :  { %v1481_v2 = vpop.xlane.xlu1 %1480 }
 0x7e8   :  { %v1484_v3 = vmul.f32 0.03125, %v1481_v2  ;;  %v1478_v4 = vpop.xlane.xlu0 %1477  ;;  %v8807_v2 = vld [vmem:[%s9568_s7 + $0x7] ss:$0 sm:$0xff] }
 0x7e9   :  { %v1483_v12 = vmul.f32 0.03125, %v1478_v4 }
 0x7ea   :  { %v8697_v6 = vsub.f32 %v1473_v60, %v1484_v3  ;;  %v7110_v3 = vpop.f32.mrb[12].mxu0 }
 0x7eb   :  { %v8699_v5 = vsub.f32 %v1472_v61, %v1483_v12  ;;  %v8795_v63 = vpop.permute.xlu1 %1540  ;;  %v1768_v4 = vadd.f32 %v7110_v3, %v8807_v2  ;;  %v1762_v12 = vpop.f32.mrb[13].mxu0 }
 0x7ec   :  { %v1488_v9 = vmul.f32 %v8697_v6, %v8697_v6 }
 0x7ed   :  { %v1487_v7 = vmul.f32 %v8699_v5, %v8699_v5 }
 0x7ee   :  { %v1492_v10 = vsel %vm85_vm0, %v1488_v9, 0.0 }
 0x7ef   :  { %v1489_v8 = vsel %vm85_vm0, %v1487_v7, 0.0 }
 0x7f0   :  { %1490 = vadd.xlane.f32.xlu0 %v1489_v8  ;;  %v7113_v8 = vpop.f32.mrb[14].mxu0 }
 0x7f1   :  { %v1778_v9 = vadd.f32 %v7113_v8, %v8807_v2 }
 0x7f4   :  { %1493 = vadd.xlane.f32.xlu0 %v1492_v10  ;;  %v1772_v10 = vpop.f32.mrb[15].mxu0 }
 0x7f5   :  { %v1773_v11 = vadd.f32 %v8807_v2, %v1772_v10 }
 0x7f7   :  { %v8823_v13 = vpack.i.bf16 %v1778_v9, %v1773_v11  ;;  %v7666_v14 = vpack.c.bf16 %v1778_v9, %v1773_v11 }
 0x80a   :  { %1535 = vperm.xlu0 %8042, %v46_v21  }
 0x87d   :  { %v1491_v38 = vpop.xlane.xlu0 %1490 }
 0x87e   :  { %v1495_v18 = vmul.f32 0.03125, %v1491_v38 }
 0x880   :  { %v1497_v26 = vadd.f32 1e-05, %v1495_v18 }
 0x881   :  { %v1494_v39 = vpop.xlane.xlu0 %1493 }
 0x882   :  { %8256 = vrsqrt.f32 %v1497_v26  ;;  %v1496_v40 = vmul.f32 0.03125, %v1494_v39  ;;  %vm1501_vm4 = vcmp.eq.f32.partialorder %v1497_v26, inf  ;;  %v1504_v43 = vand.u32 2147483648, %v1497_v26 }
 0x883   :  { %vm1503_vm5 = vcmp.eq.f32.partialorder %v1497_v26, 0.0 }
 0x884   :  { %v1498_v41 = vadd.f32 1e-05, %v1496_v40 }
 0x886   :  { %8258 = vrsqrt.f32 %v1498_v41  ;;  %vm1508_vm6 = vcmp.eq.f32.partialorder %v1498_v41, inf  ;;  %v1511_v50 = vand.u32 2147483648, %v1498_v41  ;;  %vm1510_vm7 = vcmp.eq.f32.partialorder %v1498_v41, 0.0 }
 0x889   :  { %v8787_v57 = vpop.permute.xlu0 %1535 }
 0x88c   :  { %v8257_v16 = vpop.eup %8256 }
 0x88d   :  { %v1500_v42 = vmul.f32 %v8257_v16, %v1497_v26 }
 0x88f   :  { %v1502_v44 = vsel %vm1501_vm4, %v1497_v26, %v1500_v42  ;;  %v64_v42 = vld [vmem:[%s9565_s4 + $0x1] sm:$0x1] }
 0x890   :  { %v1505_v45 = vsel %vm1503_vm5, %v1504_v43, %v1502_v44  ;;  %v8259_v46 = vpop.eup %8258  ;;  %v7116_v44 = vpop.f32.mrb[16].mxu0  ;;  %vm6260_vm5 = vcmask 523264  }
 0x891   :  { %8260 = vrcp.f32 %v1505_v45  ;;  %v1507_v47 = vmul.f32 %v8259_v46, %v1498_v41  ;;  %v1782_v45 = vpop.f32.mrb[17].mxu0 }
 0x892   :  { %v7119_v46 = vpop.f32.mrb[18].mxu0 }
 0x893   :  { %v1509_v51 = vsel %vm1508_vm6, %v1498_v41, %v1507_v47  ;;  %v1792_v47 = vpop.f32.mrb[19].mxu0 }
 0x894   :  { %v1512_v19 = vsel %vm1510_vm7, %v1511_v50, %v1509_v51  ;;  %v7122_v50 = vpop.f32.mrb[20].mxu0 }
 0x895   :  { %8262 = vrcp.f32 %v1512_v19  ;;  %v1802_v51 = vpop.f32.mrb[21].mxu0  ;;  %v1808_v8 = vadd.f32 %v7122_v50, %v8807_v2 }
 0x896   :  { %v7125_v19 = vpop.f32.mrb[22].mxu0  ;;  %v1803_v9 = vadd.f32 %v8807_v2, %v1802_v51 }
 0x897   :  { %v1818_v10 = vadd.f32 %v7125_v19, %v8807_v2 }
 0x898   :  { %v8938_v11 = vpack.c.bf16 %v1808_v8, %v1803_v9 }
 0x89b   :  { %v8261_v52 = vpop.eup %8260 }
 0x89c   :  { %v1514_v54 = vmul.f32 %v8261_v52, %v8699_v5  ;;  %v1812_v52 = vpop.f32.mrb[23].mxu0 }
 0x89e   :  { %v1523_v56 = vmul.f32 %v6465_v53, %v1514_v54  ;;  %v1822_v54 = vld [vmem:[#allocation2 + $0xa8] sm:$0xff] }
 0x89f   :  { %v8263_v58 = vpop.eup %8262 }
 0x8a0   :  { %v1531_v59 = vadd.f32 %v6466_v55, %v1523_v56  ;;  %v1516_v60 = vmul.f32 %v8263_v58, %v8697_v6  ;;  %v1763_v6 = vadd.f32 %v8807_v2, %v1762_v12  ;;  %v1824_v58 = vld [vmem:[#allocation2 + $0x198] sm:$0xff] }
 0x8a2   :  { %v8791_v61 = vmul.f32 %v8787_v57, %v1531_v59  ;;  %v1524_v62 = vmul.f32 %v6465_v53, %v1516_v60  ;;  %v8811_v5 = vpack.i.bf16 %v1768_v4, %v1763_v6  ;;  %v7660_v7 = vpack.c.bf16 %v1768_v4, %v1763_v6  ;;  %v1821_v53 = vld [vmem:[#allocation2 + $0x30] sm:$0xff] }
 0x8a3   :  { %v7652_v56 = vpack.c.bf16 %v1822_v54, %v1821_v53  ;;  %v1793_v4 = vadd.f32 %v8807_v2, %v1792_v47 }
 0x8a4   :  { %7097 = vmatprep.mubr.msk.f32.mxu1 %vm85_vm0, %v8791_v61  ;;  %v1532_v0 = vadd.f32 %v6466_v55, %v1524_v62  ;;  %8045 = vrot.lane.b32.xlu1 %v8811_v5, %s8473_s16  ;;  %v1823_v55 = vld [vmem:[#allocation2 + $0x120] sm:$0xff]  ;;  %v1783_v62 = vadd.f32 %v8807_v2, %v1782_v45 }
 0x8a5   :  { %7662 = vmatprep.subr.msk.bf16.mxu0 %vm8581_vm2, %v7660_v7  ;;  %8055 = vrot.lane.b32.xlu0 %v8811_v5, %s8475_s28  ;;  %v7656_v59 = vpack.c.bf16 %v1824_v58, %v1823_v55 }
 0x8a6   :  { %v8798_v1 = vmul.f32 %v8795_v63, %v1532_v0  ;;  %7665 = vmatpush3.bf16.xpose.msk.msra.mxu0 %vm8581_vm2, %v7660_v7  ;;  %7653 = vmatprep.subr.bf16.mxu1 %v7652_v56  ;;  %v1798_v0 = vadd.f32 %v7119_v46, %v8807_v2 }
 0x8a7   :  { %7668 = vmatprep.subr.msk.bf16.mxu0 %vm8581_vm2, %v7666_v14 }
 0x8a8   :  { %7098 = vmatmul.mubr.msk.f32.vlgmr.msra.gmra.mrb[12].mxu1 %vm85_vm0, %v8798_v1  ;;  %8050 = vrot.lane.b32.xlu1 %v8823_v13, %s8473_s16  ;;  %v8931_v6 = vpack.c.bf16 %v1798_v0, %v1793_v4  ;;  %v8933_v7 = vpack.i.bf16 %v1798_v0, %v1793_v4 }
 0x8a9   :  { %7134 = vmatprep.mubr.msk.f32.mxu1 %vm85_vm0, %v8713_v22  ;;  %7655 = vmatpush3.bf16.msra.mxu1 %v7652_v56 }
 0x8aa   :  { %7657 = vmatprep.subr.bf16.mxu1 %v7656_v59 }
 0x8ad   :  { %7659 = vmatpush3.bf16.msra.mxu1 %v7656_v59  ;;  %v8967_v59 = vld [vmem:[%s9568_s7 + $0x8] ss:$0 sm:$0xff] }
 0x8ae   :  { %7671 = vmatpush3.bf16.xpose.msk.msra.mxu0 %vm8581_vm2, %v7666_v14  ;;  %v1813_v14 = vadd.f32 %v8807_v2, %v1812_v52 }
 0x8b0   :  { %7135 = vmatmul.mubr.msk.f32.vlgmr.msra.gmra.mrb[14].mxu1 %vm85_vm0, %v8720_v23 }
 0x8b1   :  { %7137 = vmatprep.mubr.msk.f32.mxu1 %vm85_vm0, %v8727_v24 }
 0x8b4   :  { %7138 = vmatmul.mubr.msk.f32.gmra.mrb[16].mxu1 %vm85_vm0, %v8734_v27 }
 0x8b5   :  { %7140 = vmatprep.mubr.msk.f32.mxu1 %vm85_vm0, %v8741_v48 }
 0x8b8   :  { %7141 = vmatmul.mubr.msk.f32.gmra.mrb[18].mxu1 %vm85_vm0, %v8746_v33 }
 0x8b9   :  { %7143 = vmatprep.mubr.msk.f32.mxu1 %vm85_vm0, %v8751_v34 }
 0x8bc   :  { %7144 = vmatmul.mubr.msk.f32.gmra.mrb[20].mxu1 %vm85_vm0, %v8762_v35 }
 0x8bd   :  { %7146 = vmatprep.mubr.msk.f32.mxu1 %vm85_vm0, %v8767_v36 }
 0x8c0   :  { %7147 = vmatmul.mubr.msk.f32.gmra.mrb[22].mxu1 %vm85_vm0, %v8776_v37  ;;  %v1788_v37 = vadd.f32 %v7116_v44, %v8807_v2 }
 0x8c1   :  { %7149 = vmatprep.mubr.msk.f32.mxu1 %vm85_vm0, %v8834_v15  ;;  %v8941_v15 = vpack.i.bf16 %v1808_v8, %v1803_v9 }
 0x8c2   :  { %v8926_v3 = vpack.c.bf16 %v1788_v37, %v1783_v62  ;;  %v8929_v12 = vpack.i.bf16 %v1788_v37, %v1783_v62 }
 0x8c4   :  { %7150 = vmatmul.mubr.msk.f32.gmra.mrb[24].mxu1 %vm85_vm0, %v8841_v17  ;;  %v8943_v17 = vpack.c.bf16 %v1818_v10, %v1813_v14 }
 0x916   :  { %v8046_v20 = vpop.permute.xlu1 %8045 }
 0x917   :  { %v8048_v21 = vunpack.i.h.bf16 %v8046_v20  ;;  %v8047_v22 = vunpack.i.l.bf16 %v8046_v20  ;;  %v8056_v40 = vpop.permute.xlu0 %8055  ;;  %v8945_v20 = vpack.i.bf16 %v1818_v10, %v1813_v14 }
 0x918   :  { %v8058_v41 = vunpack.i.h.bf16 %v8056_v40  ;;  %v8057_v16 = vunpack.i.l.bf16 %v8056_v40 }
 0x919   :  { %v7680_v28 = vpack.c.bf16 %v8048_v21, %v8047_v22  ;;  %v60_v21 = vlaneseq }
 0x91a   :  { %v8051_v29 = vpop.permute.xlu1 %8050  ;;  %v7700_v43 = vpack.c.bf16 %v8058_v41, %v8057_v16 }
 0x91b   :  { %7682 = vmatprep.subr.msk.bf16.mxu0 %vm8581_vm2, %v7680_v28  ;;  %v8053_v49 = vunpack.i.h.bf16 %v8051_v29  ;;  %v8052_v32 = vunpack.i.l.bf16 %v8051_v29  ;;  %v61_v22 = vshrl.u32 %v60_v21, 7 }
 0x91d   :  { %v7686_v39 = vpack.c.bf16 %v8053_v49, %v8052_v32  ;;  %v62_v29 = vsub.s32 0, %v61_v22 }
 0x97b   :  { %v7099_v31 = vpop.f32.mrb[12].mxu1 }
 0x97c   :  { %v1640_v38 = vpop.f32.mrb[13].mxu1  ;;  %v8852_v26 = vadd.f32 %v7099_v31, %v6467_v30 }
 0x97d   :  { %v8850_v18 = vadd.f32 %v6467_v30, %v1640_v38 }
 0x97f   :  { %2540 = vrot.lane.b32.xlu0 %v8850_v18, %s8475_s28  ;;  %2160 = vrot.lane.b32.xlu1 %v8850_v18, %s8473_s16 }
 0x980   :  { %7160 = vmatprep.mubr.msk.f32.mxu0 %vm49_vm1, %v8850_v18 }
 0x981   :  { %7161 = vmatmul.mubr.msk.f32.vlgmr.msra.gmra.mrb[24].mxu0 %vm49_vm1, %v8852_v26 }
 0x982   :  { %7685 = vmatpush3.bf16.xpose.msk.msra.mxu0 %vm8581_vm2, %v7680_v28  ;;  %v57_v28 = vld [vmem:[%s9565_s4] sm:$0x1] }
 0x983   :  { %2162 = vrot.lane.b32.xlu1 %v8852_v26, %s8473_s16  ;;  %7688 = vmatprep.subr.msk.bf16.mxu0 %vm8581_vm2, %v7686_v39  ;;  %v59_v31 = vsel %vm58_vm3, %v57_v28, -1e+30  ;;  %v7136_v58 = vpop.f32.mrb[14].mxu1 }
 0x984   :  { %v8954_v2 = vrot.slane %v59_v31, %v62_v29 }
 0x987   :  { %66 = vrot.lane.b32.xlu1 %v64_v42, %s8478_s26 }
 0x98a   :  { %7691 = vmatpush3.bf16.xpose.msk.msra.mxu0 %vm8581_vm2, %v7686_v39 }
 0x98b   :  { %8060 = vrot.lane.b32.xlu1 %v8823_v13, %s8475_s28  ;;  %7702 = vmatprep.subr.msk.bf16.mxu0 %vm8581_vm2, %v7700_v43 }
 0x98f   :  { %2542 = vrot.lane.b32.xlu1 %v8852_v26, %s8475_s28 }
 0x9f1   :  { %v8893_v60 = vpop.permute.xlu1 %2160  ;;  %v8905_v24 = vpop.permute.xlu0 %2540 }
 0x9f2   :  { %7182 = vmatprep.mubr.msk.f32.mxu0 %vm49_vm1, %v8893_v60 }
 0x9f5   :  { %v8901_v23 = vpop.permute.xlu1 %2162 }
 0x9f6   :  { %7183 = vmatmul.mubr.msk.f32.vlgmr.msra.gmra.mrb[26].mxu0 %vm49_vm1, %v8901_v23 }
 0x9f7   :  { %7705 = vmatpush3.bf16.xpose.msk.msra.mxu0 %vm8581_vm2, %v7700_v43  ;;  %7214 = vmatprep.mubr.msk.f32.mxu0 %vm49_vm1, %v8905_v24 }
 0x9f9   :  { %v67_v27 = vpop.permute.xlu1 %66 }
 0x9fa   :  { %v69_v30 = vsel %vm58_vm3, -1e+30, %v67_v27  ;;  %v1904_v27 = vadd.f32 %v7136_v58, %v8967_v59 }
 0x9fb   :  { %v8952_v49 = vrot.slane %v69_v30, %v62_v29 }
 0x9fd   :  { %v8061_v48 = vpop.permute.xlu1 %8060 }
 0x9fe   :  { %v8063_v33 = vunpack.i.h.bf16 %v8061_v48  ;;  %v8062_v34 = vunpack.i.l.bf16 %v8061_v48  ;;  %v1898_v48 = vpop.f32.mrb[15].mxu1 }
 0x9ff   :  { %v7139_v4 = vpop.f32.mrb[16].mxu1 }
 0xa00   :  { %v7706_v35 = vpack.c.bf16 %v8063_v33, %v8062_v34  ;;  %v1899_v33 = vadd.f32 %v8967_v59, %v1898_v48  ;;  %v1908_v8 = vpop.f32.mrb[17].mxu1  ;;  %v1914_v9 = vadd.f32 %v7139_v4, %v8967_v59 }
 0xa01   :  { %v8919_v36 = vpop.permute.xlu1 %2542  ;;  %v1909_v10 = vadd.f32 %v8967_v59, %v1908_v8 }
 0xa02   :  { %7708 = vmatprep.subr.msk.bf16.mxu0 %vm8581_vm2, %v7706_v35  ;;  %v7672_v21 = vpack.c.bf16 %v1904_v27, %v1899_v33 }
 0xa03   :  { %7711 = vmatpush3.bf16.xpose.msk.msra.mxu0 %vm8581_vm2, %v7706_v35  ;;  %v8971_v35 = vpack.i.bf16 %v1904_v27, %v1899_v33  ;;  %v8977_v14 = vpack.i.bf16 %v1914_v9, %v1909_v10  ;;  %v7676_v22 = vpack.c.bf16 %v1914_v9, %v1909_v10 }
 0xa04   :  { %7673 = vmatprep.subr.bf16.mxu1 %v7672_v21 }
 0xa05   :  { %7675 = vmatpush3.bf16.msra.mxu1 %v7672_v21 }
 0xa06   :  { %7677 = vmatprep.subr.bf16.mxu1 %v7676_v22 }
 0xa09   :  { %7679 = vmatpush3.bf16.msra.mxu1 %v7676_v22 }
 0xa0a   :  { %7215 = vmatmul.mubr.msk.f32.vlgmr.msra.gmra.mrb[28].mxu0 %vm49_vm1, %v8919_v36 }
 0xa54   :  { %v7162_v32 = vpop.f32.mrb[24].mxu0 }
 0xa55   :  { %v2054_v38 = vadd.f32 %v7162_v32, %v8952_v49  ;;  %v2048_v39 = vpop.f32.mrb[25].mxu0 }
 0xa56   :  { %v2049_v40 = vadd.f32 %v2048_v39, %v8954_v2 }
 0xa57   :  { %v2060_v41 = vsel %vm85_vm0, %v2054_v38, -inf }
 0xa58   :  { %2061 = vmax.xlane.f32.xlu1 %v2060_v41  ;;  %v2057_v16 = vsel %vm85_vm0, %v2049_v40, -inf }
 0xa59   :  { %2058 = vmax.xlane.f32.xlu0 %v2057_v16 }
 0xac9   :  { %v7184_v42 = vpop.f32.mrb[26].mxu0 }
 0xaca   :  { %v2250_v43 = vpop.f32.mrb[27].mxu0  ;;  %v2256_v45 = vadd.f32 %v7184_v42, %v8952_v49 }
 0xacb   :  { %v2251_v44 = vadd.f32 %v2250_v43, %v8954_v2 }
 0xacc   :  { %v2262_v47 = vsel %vm85_vm0, %v2256_v45, -inf }
 0xacd   :  { %v2259_v46 = vsel %vm85_vm0, %v2251_v44, -inf }
 0xace   :  { %2260 = vmax.xlane.f32.xlu0 %v2259_v46 }
 0xad2   :  { %2263 = vmax.xlane.f32.xlu0 %v2262_v47 }
 0xadd   :  { %v7216_v50 = vpop.f32.mrb[28].mxu0 }
 0xade   :  { %v2630_v51 = vpop.f32.mrb[29].mxu0 }
 0xae5   :  { %v2062_v19 = vpop.xlane.xlu1 %2061 }
 0xae6   :  { %v2064_v52 = vsub.f32 %v2054_v38, %v2062_v19  ;;  %v2059_v53 = vpop.xlane.xlu0 %2058  ;;  %v2631_v19 = vadd.f32 %v2630_v51, %v8954_v2 }
 0xae7   :  { %v2063_v54 = vsub.f32 %v2049_v40, %v2059_v53 }
 0xae8   :  { %v2067_v55 = vmul.f32 1.442695, %v2064_v52  ;;  %v2636_v52 = vadd.f32 %v7216_v50, %v8952_v49  ;;  %v2639_v53 = vsel %vm85_vm0, %v2631_v19, -inf }
 0xae9   :  { %v2065_v56 = vmul.f32 1.442695, %v2063_v54 }
 0xaea   :  { %8264 = vpow2.f32 %v2067_v55  ;;  %v2642_v54 = vsel %vm85_vm0, %v2636_v52, -inf  ;;  %v7142_v55 = vpop.f32.mrb[18].mxu1 }
 0xaeb   :  { %8266 = vpow2.f32 %v2065_v56  ;;  %v1918_v56 = vpop.f32.mrb[19].mxu1 }
 0xaec   :  { %v7145_v58 = vpop.f32.mrb[20].mxu1 }
 0xaed   :  { %v1928_v27 = vpop.f32.mrb[21].mxu1 }
 0xaee   :  { %v7148_v48 = vpop.f32.mrb[22].mxu1 }
 0xaef   :  { %v1938_v33 = vpop.f32.mrb[23].mxu1 }
 0xaf4   :  { %v8265_v34 = vpop.eup %8264 }
 0xaf5   :  { %v8267_v37 = vpop.eup %8266  ;;  %v2072_v62 = vsel %vm85_vm0, %v8265_v34, 0.0 }
 0xaf6   :  { %2073 = vadd.xlane.f32.xlu0 %v2072_v62  ;;  %v2069_v0 = vsel %vm85_vm0, %v8267_v37, 0.0 }
 0xaf7   :  { %2070 = vadd.xlane.f32.xlu1 %v2069_v0 }
 0xb5b   :  { %v2261_v28 = vpop.xlane.xlu0 %2260 }
 0xb5c   :  { %v2265_v29 = vsub.f32 %v2251_v44, %v2261_v28 }
 0xb5e   :  { %v2267_v30 = vmul.f32 1.442695, %v2265_v29 }
 0xb5f   :  { %v2264_v31 = vpop.xlane.xlu0 %2263 }
 0xb60   :  { %8268 = vpow2.f32 %v2267_v30  ;;  %v2266_v32 = vsub.f32 %v2256_v45, %v2264_v31 }
 0xb62   :  { %v2269_v38 = vmul.f32 1.442695, %v2266_v32 }
 0xb64   :  { %8270 = vpow2.f32 %v2269_v38 }
 0xb6a   :  { %v8269_v39 = vpop.eup %8268 }
 0xb6b   :  { %v2271_v40 = vsel %vm85_vm0, %v8269_v39, 0.0 }
 0xb6c   :  { %2272 = vadd.xlane.f32.xlu1 %v2271_v40 }
 0xb6e   :  { %v8271_v41 = vpop.eup %8270 }
 0xb6f   :  { %v2274_v16 = vsel %vm85_vm0, %v8271_v41, 0.0 }
 0xb70   :  { %2275 = vadd.xlane.f32.xlu0 %v2274_v16 }
 0xb7d   :  { %8065 = vrot.lane.b32.xlu1 %v8971_v35, %s8473_s16 }
 0xb83   :  { %v2074_v42 = vpop.xlane.xlu0 %2073 }
 0xb84   :  { %8272 = vrcp.f32 %v2074_v42  ;;  %v2071_v43 = vpop.xlane.xlu1 %2070 }
 0xb85   :  { %8274 = vrcp.f32 %v2071_v43 }
 0xb86   :  { %8070 = vrot.lane.b32.xlu0 %v8977_v14, %s8473_s16 }
 0xb8e   :  { %v8273_v44 = vpop.eup %8272 }
 0xb8f   :  { %v8275_v45 = vpop.eup %8274  ;;  %v2078_v47 = vmul.f32 %v8273_v44, %v8265_v34  ;;  %v7151_v34 = vpop.f32.mrb[24].mxu1 }
 0xb90   :  { %v2076_v46 = vmul.f32 %v8275_v45, %v8267_v37  ;;  %v1948_v37 = vpop.f32.mrb[25].mxu1 }
 0xb92   :  { %7171 = vmatprep.mubr.msk.f32.mxu1 %vm85_vm0, %v2076_v46 }
 0xb93   :  { %7172 = vmatmul.mubr.msk.f32.vlgmr.msra.gmra.mrb[26].mxu1 %vm85_vm0, %v2078_v47  ;;  %v1919_v47 = vadd.f32 %v8967_v59, %v1918_v56  ;;  %v1939_v56 = vadd.f32 %v8967_v59, %v1938_v33 }
 0xba1   :  { %2640 = vmax.xlane.f32.xlu1 %v2639_v53 }
 0xba5   :  { %2643 = vmax.xlane.f32.xlu0 %v2642_v54 }
 0xbf9   :  { %v2273_v62 = vpop.xlane.xlu1 %2272 }
 0xbfa   :  { %8276 = vrcp.f32 %v2273_v62 }
 0xbfd   :  { %v8066_v0 = vpop.permute.xlu1 %8065  ;;  %v2276_v51 = vpop.xlane.xlu0 %2275 }
 0xbfe   :  { %v8068_v4 = vunpack.i.h.bf16 %v8066_v0  ;;  %v8067_v50 = vunpack.i.l.bf16 %v8066_v0  ;;  %8278 = vrcp.f32 %v2276_v51 }
 0xc00   :  { %v7692_v8 = vpack.c.bf16 %v8068_v4, %v8067_v50 }
 0xc01   :  { %v8071_v9 = vpop.permute.xlu0 %8070 }
 0xc02   :  { %v8073_v10 = vunpack.i.h.bf16 %v8071_v9  ;;  %v8072_v21 = vunpack.i.l.bf16 %v8071_v9  ;;  %7693 = vmatprep.subr.bf16.mxu1 %v7692_v8 }
 0xc03   :  { %7695 = vmatpush3.bf16.msra.mxu1 %v7692_v8 }
 0xc04   :  { %v8277_v22 = vpop.eup %8276  ;;  %v7696_v28 = vpack.c.bf16 %v8073_v10, %v8072_v21 }
 0xc05   :  { %v2278_v29 = vmul.f32 %v8277_v22, %v8269_v39 }
 0xc06   :  { %7697 = vmatprep.subr.bf16.mxu1 %v7696_v28 }
 0xc07   :  { %7699 = vmatpush3.bf16.msra.mxu1 %v7696_v28  ;;  %7193 = vmatprep.mubr.msk.f32.mxu1 %vm85_vm0, %v2278_v29 }
 0xc08   :  { %v8279_v30 = vpop.eup %8278 }
 0xc09   :  { %v2280_v31 = vmul.f32 %v8279_v30, %v8271_v41  ;;  %v1924_v41 = vadd.f32 %v7142_v55, %v8967_v59  ;;  %v1944_v55 = vadd.f32 %v7148_v48, %v8967_v59 }
 0xc0b   :  { %7194 = vmatmul.mubr.msk.f32.vlgmr.msra.gmra.mrb[28].mxu1 %vm85_vm0, %v2280_v31  ;;  %v9002_v53 = vpack.c.bf16 %v1924_v41, %v1919_v47  ;;  %v9004_v54 = vpack.i.bf16 %v1924_v41, %v1919_v47  ;;  %v9020_v51 = vpack.c.bf16 %v1944_v55, %v1939_v56  ;;  %v9022_v4 = vpack.i.bf16 %v1944_v55, %v1939_v56 }
 0xc2e   :  { %v2641_v32 = vpop.xlane.xlu1 %2640 }
 0xc2f   :  { %v2645_v38 = vsub.f32 %v2631_v19, %v2641_v32  ;;  %v1934_v19 = vadd.f32 %v7145_v58, %v8967_v59  ;;  %v1954_v58 = vadd.f32 %v7151_v34, %v8967_v59 }
 0xc31   :  { %v2647_v40 = vmul.f32 1.442695, %v2645_v38 }
 0xc32   :  { %v2644_v16 = vpop.xlane.xlu0 %2643 }
 0xc33   :  { %8280 = vpow2.f32 %v2647_v40  ;;  %v2646_v42 = vsub.f32 %v2636_v52, %v2644_v16  ;;  %v1929_v52 = vadd.f32 %v8967_v59, %v1928_v27  ;;  %v1949_v27 = vadd.f32 %v8967_v59, %v1948_v37 }
 0xc35   :  { %v2649_v43 = vmul.f32 1.442695, %v2646_v42  ;;  %v9008_v62 = vpack.c.bf16 %v1934_v19, %v1929_v52  ;;  %v9010_v0 = vpack.i.bf16 %v1934_v19, %v1929_v52  ;;  %v9030_v48 = vpack.c.bf16 %v1954_v58, %v1949_v27 }
 0xc36   :  { %v9032_v33 = vpack.i.bf16 %v1954_v58, %v1949_v27  ;;  %v9065_v27 = vld [vmem:[#allocation2 + $0x1a0] sm:$0xff] }
 0xc37   :  { %8282 = vpow2.f32 %v2649_v43  ;;  %v9047_v43 = vld [vmem:[#allocation2 + $0x128] sm:$0xff] }
 0xc3d   :  { %v8281_v44 = vpop.eup %8280 }
 0xc3e   :  { %v2651_v45 = vsel %vm85_vm0, %v8281_v44, 0.0 }
 0xc3f   :  { %2652 = vadd.xlane.f32.xlu1 %v2651_v45 }
 0xc41   :  { %v8994_v39 = vpop.eup %8282 }
 0xc42   :  { %v2654_v46 = vsel %vm85_vm0, %v8994_v39, 0.0 }
 0xc43   :  { %2655 = vadd.xlane.f32.xlu0 %v2654_v46 }
 0xc50   :  { %8075 = vrot.lane.b32.xlu1 %v8971_v35, %s8475_s28 }
 0xc54   :  { %8085 = vrot.lane.b32.xlu1 %v8811_v5, %s8476_s10  ;;  %v9028_v5 = vld [vmem:[#allocation2 + $0xb0] sm:$0xff] }
 0xc55   :  { %7196 = vmatprep.subr.mxu1 %v9028_v5 }
 0xc56   :  { %7197 = vmatpush3.msra.mxu1 %v9028_v5 }
 0xc58   :  { %8090 = vrot.lane.b32.xlu1 %v8823_v13, %s8476_s10  ;;  %v9038_v13 = vld [vmem:[#allocation2 + $0x38] sm:$0xff] }
 0xc59   :  { %8080 = vrot.lane.b32.xlu0 %v8977_v14, %s8475_s28  ;;  %7201 = vmatprep.subr.mxu1 %v9038_v13 }
 0xc5c   :  { %2839 = vrot.lane.b32.xlu1 %v8852_v26, %s8476_s10 }
 0xc5d   :  { %2837 = vrot.lane.b32.xlu0 %v8850_v18, %s8476_s10 }
 0xc66   :  { %v7173_v59 = vpop.f32.mrb[26].mxu1 }
 0xc67   :  { %v2151_v34 = vpop.f32.mrb[27].mxu1 }
 0xccc   :  { %v2653_v37 = vpop.xlane.xlu1 %2652 }
 0xccd   :  { %8284 = vrcp.f32 %v2653_v37 }
 0xcd0   :  { %v8076_v50 = vpop.permute.xlu1 %8075  ;;  %v2656_v8 = vpop.xlane.xlu0 %2655 }
 0xcd1   :  { %v8078_v9 = vunpack.i.h.bf16 %v8076_v50  ;;  %v8077_v10 = vunpack.i.l.bf16 %v8076_v50  ;;  %8286 = vrcp.f32 %v2656_v8 }
 0xcd3   :  { %v7712_v28 = vpack.c.bf16 %v8078_v9, %v8077_v10 }
 0xcd4   :  { %v8081_v29 = vpop.permute.xlu0 %8080  ;;  %v8086_v16 = vpop.permute.xlu1 %8085 }
 0xcd5   :  { %v8083_v31 = vunpack.i.h.bf16 %v8081_v29  ;;  %v8082_v32 = vunpack.i.l.bf16 %v8081_v29  ;;  %v8088_v45 = vunpack.i.h.bf16 %v8086_v16  ;;  %v8087_v46 = vunpack.i.l.bf16 %v8086_v16 }
 0xcd7   :  { %v8285_v30 = vpop.eup %8284  ;;  %v7716_v40 = vpack.c.bf16 %v8083_v31, %v8082_v32  ;;  %v7720_v47 = vpack.c.bf16 %v8088_v45, %v8087_v46 }
 0xcd8   :  { %v2658_v38 = vmul.f32 %v8285_v30, %v8281_v44  ;;  %v8091_v44 = vpop.permute.xlu1 %8090  ;;  %v9056_v58 = vpop.permute.xlu0 %2837 }
 0xcd9   :  { %v8093_v19 = vunpack.i.h.bf16 %v8091_v44  ;;  %v8092_v52 = vunpack.i.l.bf16 %v8091_v44 }
 0xcdb   :  { %v8287_v42 = vpop.eup %8286 }
 0xcdc   :  { %v2660_v41 = vmul.f32 %v8287_v42, %v8994_v39  ;;  %v7726_v39 = vpack.c.bf16 %v8093_v19, %v8092_v52 }
 0xcde   :  { %v7195_v21 = vpop.f32.mrb[28].mxu1 }
 0xcdf   :  { %v2369_v22 = vpop.f32.mrb[29].mxu1 }
 0xce0   :  { %7198 = vmatprep.mubr.msk.f32.mxu1 %vm49_vm1, %v2369_v22 }
 0xce1   :  { %7199 = vmatmul.mubr.msk.f32.vlgmr.msra.gmra.mrb[30].mxu1 %vm49_vm1, %v7195_v21 }
 0xce2   :  { %7202 = vmatpush3.msra.mxu1 %v9038_v13  ;;  %7203 = vmatprep.mubr.msk.f32.mxu1 %vm49_vm1, %v2151_v34 }
 0xce3   :  { %7713 = vmatprep.subr.bf16.mxu1 %v7712_v28 }
 0xce9   :  { %7204 = vmatmul.mubr.msk.f32.vlgmr.msra.gmra.mrb[30].mxu1 %vm49_vm1, %v7173_v59  ;;  %v9070_v59 = vpop.permute.xlu1 %2839 }
 0xcea   :  { %7715 = vmatpush3.bf16.msra.mxu1 %v7712_v28  ;;  %7225 = vmatprep.mubr.msk.f32.mxu1 %vm85_vm0, %v2658_v38 }
 0xceb   :  { %7717 = vmatprep.subr.bf16.mxu1 %v7716_v40 }
 0xcee   :  { %7719 = vmatpush3.bf16.msra.mxu1 %v7716_v40 }
 0xcef   :  { %7228 = vmatprep.subr.mxu1 %v9047_v43 }
 0xcf1   :  { %7226 = vmatmul.mubr.msk.f32.vlgmr.msra.gmra.mrb[32].mxu1 %vm85_vm0, %v2660_v41 }
 0xcf2   :  { %7229 = vmatpush3.msra.mxu1 %v9047_v43 }
 0xcf3   :  { %7722 = vmatprep.subr.msk.bf16.mxu1 %vm8581_vm2, %v7720_v47 }
 0xdc4   :  { %v7227_v55 = vpop.f32.mrb[32].mxu1 }
 0xdc5   :  { %v2745_v56 = vpop.f32.mrb[33].mxu1 }
 0xdc6   :  { %7230 = vmatprep.mubr.msk.f32.mxu1 %vm49_vm1, %v2745_v56 }
 0xdc7   :  { %7231 = vmatmul.mubr.msk.f32.vlgmr.msra.gmra.mrb[30].mxu1 %vm49_vm1, %v7227_v55 }
 0xdc8   :  { %7725 = vmatpush3.bf16.xpose.msk.msra.mxu1 %vm8581_vm2, %v7720_v47  ;;  %7241 = vmatprep.mubr.msk.f32.mxu1 %vm49_vm1, %v9056_v58 }
 0xdc9   :  { %7728 = vmatprep.subr.msk.bf16.mxu1 %vm8581_vm2, %v7726_v39 }
 0xdd0   :  { %7731 = vmatpush3.bf16.xpose.msk.msra.mxu1 %vm8581_vm2, %v7726_v39 }
 0xdd1   :  { %7255 = vmatprep.subr.mxu1 %v9065_v27 }
 0xdd7   :  { %7242 = vmatmul.mubr.msk.f32.vlgmr.msra.gmra.mrb[34].mxu1 %vm49_vm1, %v9070_v59 }
 0xdd8   :  { %7256 = vmatpush3.msra.mxu1 %v9065_v27 }
 0xdd9   :  { %7758 = vmatprep.subr.msk.bf16.mxu1 %vm8581_vm2, %v8926_v3 }
 0xeaa   :  { %v7243_v34 = vpop.f32.mrb[34].mxu1 }
 0xeab   :  { %v2933_v37 = vadd.f32 %v7243_v34, %v8952_v49  ;;  %v2927_v50 = vpop.f32.mrb[35].mxu1 }
 0xeac   :  { %v2928_v8 = vadd.f32 %v2927_v50, %v8954_v2 }
 0xead   :  { %v2939_v9 = vsel %vm85_vm0, %v2933_v37, -inf }
 0xeae   :  { %2940 = vmax.xlane.f32.xlu1 %v2939_v9  ;;  %v2936_v10 = vsel %vm85_vm0, %v2928_v8, -inf }
 0xeaf   :  { %2937 = vmax.xlane.f32.xlu0 %v2936_v10 }
 0xebf   :  { %8095 = vrot.lane.b32.xlu1 %v8971_v35, %s8476_s10 }
 0xf3b   :  { %v2941_v21 = vpop.xlane.xlu1 %2940 }
 0xf3c   :  { %v2943_v22 = vsub.f32 %v2933_v37, %v2941_v21  ;;  %v2938_v28 = vpop.xlane.xlu0 %2937 }
 0xf3d   :  { %v2942_v29 = vsub.f32 %v2928_v8, %v2938_v28  ;;  %v9108_v8 = vld [vmem:[%s9568_s7 + $0x9] ss:$0 sm:$0xff] }
 0xf3e   :  { %v2946_v30 = vmul.f32 1.442695, %v2943_v22 }
 0xf3f   :  { %v2944_v31 = vmul.f32 1.442695, %v2942_v29  ;;  %v8096_v32 = vpop.permute.xlu1 %8095 }
 0xf40   :  { %8288 = vpow2.f32 %v2946_v30  ;;  %v8098_v38 = vunpack.i.h.bf16 %v8096_v32  ;;  %v8097_v40 = vunpack.i.l.bf16 %v8096_v32 }
 0xf41   :  { %8290 = vpow2.f32 %v2944_v31 }
 0xf42   :  { %v7732_v16 = vpack.c.bf16 %v8098_v38, %v8097_v40 }
 0xf44   :  { %7733 = vmatprep.subr.bf16.mxu0 %v7732_v16 }
 0xf45   :  { %7735 = vmatpush3.bf16.msra.mxu0 %v7732_v16 }
 0xf4a   :  { %v8289_v42 = vpop.eup %8288 }
 0xf4b   :  { %v2951_v45 = vsel %vm85_vm0, %v8289_v42, 0.0  ;;  %v8291_v46 = vpop.eup %8290 }
 0xf4c   :  { %2952 = vadd.xlane.f32.xlu0 %v2951_v45  ;;  %v2948_v35 = vsel %vm85_vm0, %v8291_v46, 0.0 }
 0xf50   :  { %2949 = vadd.xlane.f32.xlu0 %v2948_v35 }
 0xf66   :  { %8100 = vrot.lane.b32.xlu0 %v8977_v14, %s8476_s10 }
 0xfd9   :  { %v2953_v41 = vpop.xlane.xlu0 %2952 }
 0xfda   :  { %8292 = vrcp.f32 %v2953_v41 }
 0xfdd   :  { %v2950_v47 = vpop.xlane.xlu0 %2949 }
 0xfde   :  { %8294 = vrcp.f32 %v2950_v47 }
 0xfe1   :  { %v8101_v44 = vpop.permute.xlu0 %8100 }
 0xfe2   :  { %v8103_v19 = vunpack.i.h.bf16 %v8101_v44  ;;  %v8102_v52 = vunpack.i.l.bf16 %v8101_v44 }
 0xfe4   :  { %v7736_v55 = vpack.c.bf16 %v8103_v19, %v8102_v52  ;;  %v8293_v56 = vpop.eup %8292 }
 0xfe5   :  { %v2957_v37 = vmul.f32 %v8293_v56, %v8289_v42 }
 0xfe6   :  { %7737 = vmatprep.subr.bf16.mxu0 %v7736_v55 }
 0xfe7   :  { %7739 = vmatpush3.bf16.msra.mxu0 %v7736_v55 }
 0xfe8   :  { %v8295_v39 = vpop.eup %8294 }
 0xfe9   :  { %v2955_v34 = vmul.f32 %v8295_v39, %v8291_v46 }
 0xfeb   :  { %7252 = vmatprep.mubr.msk.f32.mxu0 %vm85_vm0, %v2955_v34 }
 0xfec   :  { %7253 = vmatmul.mubr.msk.f32.vlgmr.msra.gmra.mrb[30].mxu0 %vm85_vm0, %v2957_v37 }
0x10bf   :  { %v7254_v50 = vpop.f32.mrb[30].mxu0 }
0x10c0   :  { %v3042_v14 = vpop.f32.mrb[31].mxu0 }
0x10c1   :  { %7257 = vmatprep.mubr.msk.f32.mxu1 %vm49_vm1, %v3042_v14 }
0x10c2   :  { %7258 = vmatmul.mubr.msk.f32.vlgmr.msra.gmra.mrb[30].mxu1 %vm49_vm1, %v7254_v50 }
0x10c3   :  { %7761 = vmatpush3.bf16.xpose.msk.msra.mxu1 %vm8581_vm2, %v8926_v3  ;;  %7290 = vmatprep.mubr.msk.f32.mxu1 %vm49_vm1, %v8850_v18 }
0x10c4   :  { %7764 = vmatprep.subr.msk.bf16.mxu1 %vm8581_vm2, %v8931_v6 }
0x10cb   :  { %7767 = vmatpush3.bf16.xpose.msk.msra.mxu1 %vm8581_vm2, %v8931_v6 }
0x10d2   :  { %7291 = vmatmul.mubr.msk.f32.vlgmr.msra.gmra.mrb[36].mxu1 %vm49_vm1, %v8852_v26 }
0x1195   :  { %v7259_v3 = vpop.f32.mrb[30].mxu1 }
0x1196   :  { %v3141_v9 = vadd.f32 %v7259_v3, %v9108_v8  ;;  %v3123_v10 = vpop.f32.mrb[31].mxu1 }
0x1197   :  { %v3140_v21 = vadd.f32 %v9108_v8, %v3123_v10 }
0x1198   :  { %v3143_v22 = vadd.f32 %v3141_v9, %v8798_v1 }
0x1199   :  { %v3142_v28 = vadd.f32 %v3140_v21, %v8791_v61 }
0x119a   :  { %v3147_v6 = vsel %vm85_vm0, %v3143_v22, 0.0 }
0x119b   :  { %3148 = vadd.xlane.f32.xlu0 %v3147_v6  ;;  %v3144_v29 = vsel %vm85_vm0, %v3142_v28, 0.0 }
0x119c   :  { %3145 = vadd.xlane.f32.xlu1 %v3144_v29  ;;  %v3208_v29 = vld [vmem:[#allocation2 + $0x148] sm:$0xff] }
0x11a5   :  { %v7292_v30 = vpop.f32.mrb[36].mxu1 }
0x11a6   :  { %v3473_v31 = vadd.f32 %v7292_v30, %v8952_v49  ;;  %v3467_v32 = vpop.f32.mrb[37].mxu1  ;;  %v3209_v30 = vld [vmem:[#allocation2 + $0x1c0] sm:$0xff] }
0x11a7   :  { %v3468_v38 = vadd.f32 %v3467_v32, %v8954_v2  ;;  %v3202_v32 = vld [vmem:[#allocation2 + $0x40] sm:$0xff] }
0x11a8   :  { %v3479_v40 = vsel %vm85_vm0, %v3473_v31, -inf }
0x11a9   :  { %3480 = vmax.xlane.f32.xlu0 %v3479_v40  ;;  %v3476_v16 = vsel %vm85_vm0, %v3468_v38, -inf }
0x11aa   :  { %3477 = vmax.xlane.f32.xlu1 %v3476_v16 }
0x1228   :  { %v3149_v42 = vpop.xlane.xlu0 %3148 }
0x1229   :  { %v3151_v45 = vmul.f32 0.03125, %v3149_v42  ;;  %v3146_v46 = vpop.xlane.xlu1 %3145 }
0x122a   :  { %v3150_v35 = vmul.f32 0.03125, %v3146_v46 }
0x122b   :  { %v9120_v41 = vsub.f32 %v3143_v22, %v3151_v45  ;;  %v3206_v22 = vld [vmem:[#allocation2 + $0x58] sm:$0xff] }
0x122c   :  { %v9122_v47 = vsub.f32 %v3142_v28, %v3150_v35  ;;  %v3207_v28 = vld [vmem:[#allocation2 + $0xd0] sm:$0xff] }
0x122d   :  { %v3155_v44 = vmul.f32 %v9120_v41, %v9120_v41  ;;  %v7740_v6 = vpack.c.bf16 %v3207_v28, %v3206_v22  ;;  %v9149_v22 = vld [vmem:[%s9568_s7 + $0xa] ss:$0 sm:$0xff] }
0x122e   :  { %v3154_v19 = vmul.f32 %v9122_v47, %v9122_v47 }
0x122f   :  { %v3159_v52 = vsel %vm85_vm0, %v3155_v44, 0.0  ;;  %7741 = vmatprep.subr.bf16.mxu0 %v7740_v6 }
0x1230   :  { %3160 = vadd.xlane.f32.xlu0 %v3159_v52  ;;  %v3156_v55 = vsel %vm85_vm0, %v3154_v19, 0.0  ;;  %7743 = vmatpush3.bf16.msra.mxu0 %v7740_v6 }
0x1231   :  { %3157 = vadd.xlane.f32.xlu1 %v3156_v55 }
0x1236   :  { %v3481_v56 = vpop.xlane.xlu0 %3480 }
0x1237   :  { %v3483_v39 = vsub.f32 %v3473_v31, %v3481_v56  ;;  %v3478_v34 = vpop.xlane.xlu1 %3477  ;;  %v7744_v31 = vpack.c.bf16 %v3209_v30, %v3208_v29  ;;  %v9155_v30 = vld [vmem:[%s9568_s7 + $0xb] ss:$0 sm:$0xff] }
0x1238   :  { %v3482_v37 = vsub.f32 %v3468_v38, %v3478_v34  ;;  %v3203_v38 = vld [vmem:[#allocation2 + $0xb8] sm:$0xff] }
0x1239   :  { %v3486_v50 = vmul.f32 1.442695, %v3483_v39  ;;  %7745 = vmatprep.subr.bf16.mxu0 %v7744_v31  ;;  %v7748_v40 = vpack.c.bf16 %v3203_v38, %v3202_v32 }
0x123a   :  { %v3484_v14 = vmul.f32 1.442695, %v3482_v37  ;;  %7747 = vmatpush3.bf16.msra.mxu0 %v7744_v31 }
0x123b   :  { %8296 = vpow2.f32 %v3486_v50  ;;  %7749 = vmatprep.subr.bf16.mxu0 %v7748_v40 }
0x123c   :  { %8298 = vpow2.f32 %v3484_v14 }
0x1245   :  { %v9130_v3 = vpop.eup %8296 }
0x1246   :  { %v9132_v9 = vpop.eup %8298  ;;  %v3491_v10 = vsel %vm85_vm0, %v9130_v3, 0.0 }
0x1247   :  { %3492 = vadd.xlane.f32.xlu0 %v3491_v10  ;;  %v3488_v21 = vsel %vm85_vm0, %v9132_v9, 0.0 }
0x1248   :  { %3489 = vadd.xlane.f32.xlu1 %v3488_v21 }
0x1259   :  { %8105 = vrot.lane.b32.xlu1 %v8929_v12, %s8473_s16 }
0x125d   :  { %8110 = vrot.lane.b32.xlu0 %v8933_v7, %s8473_s16  ;;  %8115 = vrot.lane.b32.xlu1 %v8929_v12, %s8475_s28 }
0x1261   :  { %8120 = vrot.lane.b32.xlu1 %v8933_v7, %s8475_s28 }
0x12bd   :  { %v3161_v16 = vpop.xlane.xlu0 %3160 }
0x12be   :  { %v3163_v42 = vmul.f32 0.03125, %v3161_v16  ;;  %v3158_v45 = vpop.xlane.xlu1 %3157 }
0x12bf   :  { %v3162_v46 = vmul.f32 0.03125, %v3158_v45  ;;  %v3204_v45 = vld [vmem:[#allocation2 + $0x130] sm:$0xff] }
0x12c0   :  { %v3165_v35 = vadd.f32 1e-05, %v3163_v42 }
0x12c1   :  { %v3164_v44 = vadd.f32 1e-05, %v3162_v46  ;;  %v3205_v46 = vld [vmem:[#allocation2 + $0x1a8] sm:$0xff] }
0x12c2   :  { %8300 = vrsqrt.f32 %v3165_v35  ;;  %vm3175_vm8 = vcmp.eq.f32.partialorder %v3165_v35, inf  ;;  %v3178_v56 = vand.u32 2147483648, %v3165_v35  ;;  %vm3177_vm9 = vcmp.eq.f32.partialorder %v3165_v35, 0.0 }
0x12c3   :  { %8302 = vrsqrt.f32 %v3164_v44  ;;  %vm3168_vm10 = vcmp.eq.f32.partialorder %v3164_v44, inf  ;;  %v3171_v37 = vand.u32 2147483648, %v3164_v44  ;;  %vm3170_vm11 = vcmp.eq.f32.partialorder %v3164_v44, 0.0 }
0x12cc   :  { %v8301_v19 = vpop.eup %8300 }
0x12cd   :  { %v8303_v52 = vpop.eup %8302  ;;  %v3174_v55 = vmul.f32 %v8301_v19, %v3165_v35  ;;  %v7752_v19 = vpack.c.bf16 %v3205_v46, %v3204_v45 }
0x12ce   :  { %v3167_v39 = vmul.f32 %v8303_v52, %v3164_v44 }
0x12cf   :  { %v3176_v34 = vsel %vm3175_vm8, %v3165_v35, %v3174_v55 }
0x12d0   :  { %v3179_v50 = vsel %vm3177_vm9, %v3178_v56, %v3176_v34  ;;  %v3169_v14 = vsel %vm3168_vm10, %v3164_v44, %v3167_v39 }
0x12d1   :  { %8304 = vrcp.f32 %v3179_v50  ;;  %v3172_v10 = vsel %vm3170_vm11, %v3171_v37, %v3169_v14 }
0x12d2   :  { %8306 = vrcp.f32 %v3172_v10 }
0x12d4   :  { %v3493_v35 = vpop.xlane.xlu0 %3492 }
0x12d5   :  { %v3490_v29 = vpop.xlane.xlu1 %3489 }
0x12d6   :  { %8308 = vrcp.f32 %v3490_v29 }
0x12d7   :  { %8310 = vrcp.f32 %v3493_v35 }
0x12d8   :  { %v8111_v50 = vpop.permute.xlu0 %8110 }
0x12d9   :  { %v8106_v52 = vpop.permute.xlu1 %8105  ;;  %v8112_v14 = vunpack.i.l.bf16 %v8111_v50 }
0x12da   :  { %v8108_v56 = vunpack.i.h.bf16 %v8106_v52  ;;  %v8107_v39 = vunpack.i.l.bf16 %v8106_v52 }
0x12db   :  { %v8305_v21 = vpop.eup %8304 }
0x12dc   :  { %v8307_v28 = vpop.eup %8306  ;;  %v3183_v6 = vmul.f32 %v8305_v21, %v9120_v41  ;;  %v7776_v34 = vpack.c.bf16 %v8108_v56, %v8107_v39 }
0x12dd   :  { %v3181_v31 = vmul.f32 %v8307_v28, %v9122_v47  ;;  %v8116_v10 = vpop.permute.xlu1 %8115 }
0x12de   :  { %v3191_v32 = vmul.f32 %v9149_v22, %v3183_v6 }
0x12df   :  { %v3190_v38 = vmul.f32 %v9149_v22, %v3181_v31 }
0x12e0   :  { %v3199_v16 = vadd.f32 %v9155_v30, %v3191_v32  ;;  %v8309_v47 = vpop.eup %8308 }
0x12e1   :  { %v3198_v42 = vadd.f32 %v9155_v30, %v3190_v38  ;;  %v3495_v55 = vmul.f32 %v8309_v47, %v9132_v9  ;;  %v8113_v9 = vunpack.i.h.bf16 %v8111_v50  ;;  %v8121_v28 = vpop.permute.xlu1 %8120 }
0x12e2   :  { %v9166_v44 = vmul.f32 %v3199_v16, %v8795_v63  ;;  %v8123_v6 = vunpack.i.h.bf16 %v8121_v28  ;;  %v8122_v29 = vunpack.i.l.bf16 %v8121_v28 }
0x12e3   :  { %v9163_v41 = vmul.f32 %v3198_v42, %v8787_v57 }
0x12e4   :  { %v7802_v31 = vpack.c.bf16 %v8123_v6, %v8122_v29 }
0x12e5   :  { %7268 = vmatprep.mubr.msk.f32.mxu0 %vm85_vm0, %v9163_v41 }
0x12e6   :  { %7269 = vmatmul.mubr.msk.f32.vlgmr.msra.gmra.mrb[32].mxu0 %vm85_vm0, %v9166_v44 }
0x12e7   :  { %7751 = vmatpush3.bf16.msra.mxu0 %v7748_v40  ;;  %7279 = vmatprep.mubr.msk.f32.mxu0 %vm85_vm0, %v8791_v61  ;;  %v8311_v40 = vpop.eup %8310 }
0x12e8   :  { %7753 = vmatprep.subr.bf16.mxu0 %v7752_v19  ;;  %v3497_v37 = vmul.f32 %v8311_v40, %v9130_v3  ;;  %v8117_v3 = vunpack.i.l.bf16 %v8116_v10 }
0x12eb   :  { %7755 = vmatpush3.bf16.msra.mxu0 %v7752_v19 }
0x12ec   :  { %7769 = vmatprep.subr.bf16.mxu0 %v9002_v53 }
0x12ee   :  { %7280 = vmatmul.mubr.msk.f32.vlgmr.msra.gmra.mrb[32].mxu0 %vm85_vm0, %v8798_v1 }
0x12ef   :  { %7771 = vmatpush3.bf16.msra.mxu0 %v9002_v53  ;;  %7301 = vmatprep.mubr.msk.f32.mxu0 %vm85_vm0, %v3495_v55  ;;  %v7782_v53 = vpack.c.bf16 %v8113_v9, %v8112_v14 }
0x12f0   :  { %7773 = vmatprep.subr.bf16.mxu0 %v9008_v62 }
0x12f3   :  { %7775 = vmatpush3.bf16.msra.mxu0 %v9008_v62  ;;  %v8118_v62 = vunpack.i.h.bf16 %v8116_v10 }
0x12f4   :  { %7778 = vmatprep.subr.msk.bf16.mxu0 %vm8581_vm2, %v7776_v34 }
0x12f5   :  { %v7796_v21 = vpack.c.bf16 %v8118_v62, %v8117_v3 }
0x12f6   :  { %7302 = vmatmul.mubr.msk.f32.vlgmr.msra.gmra.mrb[34].mxu0 %vm85_vm0, %v3497_v37 }
0x12f7   :  { %7312 = vmatprep.mubr.msk.f32.mxu0 %vm49_vm1, %v8893_v60 }
0x12fc   :  { %7781 = vmatpush3.bf16.xpose.msk.msra.mxu0 %vm8581_vm2, %v7776_v34 }
0x12fd   :  { %7784 = vmatprep.subr.msk.bf16.mxu0 %vm8581_vm2, %v7782_v53 }
0x1304   :  { %7787 = vmatpush3.bf16.xpose.msk.msra.mxu0 %vm8581_vm2, %v7782_v53 }
0x1305   :  { %7798 = vmatprep.subr.msk.bf16.mxu0 %vm8581_vm2, %v7796_v21 }
0x130b   :  { %7313 = vmatmul.mubr.msk.f32.vlgmr.msra.gmra.mrb[36].mxu0 %vm49_vm1, %v8901_v23 }
0x130c   :  { %7801 = vmatpush3.bf16.xpose.msk.msra.mxu0 %vm8581_vm2, %v7796_v21  ;;  %7344 = vmatprep.mubr.msk.f32.mxu0 %vm49_vm1, %v8905_v24 }
0x130d   :  { %7804 = vmatprep.subr.msk.bf16.mxu0 %vm8581_vm2, %v7802_v31 }
0x1314   :  { %7807 = vmatpush3.bf16.xpose.msk.msra.mxu0 %vm8581_vm2, %v7802_v31 }
0x131b   :  { %7345 = vmatmul.mubr.msk.f32.vlgmr.msra.gmra.mrb[38].mxu0 %vm49_vm1, %v8919_v36 }
0x13c1   :  { %v9208_v32 = vpop.f32.mrb[32].mxu0 }
0x13c2   :  { %v9210_v38 = vpop.f32.mrb[33].mxu0 }
0x13c9   :  { %v9212_v16 = vpop.f32.mrb[34].mxu0 }
0x13ca   :  { %v9214_v42 = vpop.f32.mrb[35].mxu0 }
0x13de   :  { %v7314_v45 = vpop.f32.mrb[36].mxu0 }
0x13df   :  { %v3667_v46 = vadd.f32 %v7314_v45, %v8952_v49  ;;  %v3661_v35 = vpop.f32.mrb[37].mxu0 }
0x13e0   :  { %v3662_v19 = vadd.f32 %v3661_v35, %v8954_v2 }
0x13e1   :  { %v3673_v47 = vsel %vm85_vm0, %v3667_v46, -inf }
0x13e2   :  { %3674 = vmax.xlane.f32.xlu1 %v3673_v47  ;;  %v3670_v52 = vsel %vm85_vm0, %v3662_v19, -inf }
0x13e3   :  { %3671 = vmax.xlane.f32.xlu0 %v3670_v52 }
0x13ee   :  { %v7346_v55 = vpop.f32.mrb[38].mxu0 }
0x13ef   :  { %v4033_v56 = vpop.f32.mrb[39].mxu0  ;;  %v4039_v47 = vadd.f32 %v7346_v55, %v8952_v49 }
0x13f0   :  { %v4034_v39 = vadd.f32 %v4033_v56, %v8954_v2 }
0x13f1   :  { %v4045_v56 = vsel %vm85_vm0, %v4039_v47, -inf }
0x13f2   :  { %v4042_v40 = vsel %vm85_vm0, %v4034_v39, -inf }
0x13f3   :  { %8125 = vrot.lane.b32.xlu1 %v9004_v54, %s8473_s16 }
0x1417   :  { %4043 = vmax.xlane.f32.xlu1 %v4042_v40 }
0x146f   :  { %v3675_v34 = vpop.xlane.xlu1 %3674 }
0x1470   :  { %v3677_v37 = vsub.f32 %v3667_v46, %v3675_v34  ;;  %v3672_v50 = vpop.xlane.xlu0 %3671 }
0x1471   :  { %v3676_v9 = vsub.f32 %v3662_v19, %v3672_v50 }
0x1472   :  { %v3680_v14 = vmul.f32 1.442695, %v3677_v37 }
0x1473   :  { %v3678_v53 = vmul.f32 1.442695, %v3676_v9  ;;  %v8126_v10 = vpop.permute.xlu1 %8125 }
0x1474   :  { %8312 = vpow2.f32 %v3680_v14  ;;  %v8128_v62 = vunpack.i.h.bf16 %v8126_v10  ;;  %v8127_v3 = vunpack.i.l.bf16 %v8126_v10 }
0x1475   :  { %8314 = vpow2.f32 %v3678_v53 }
0x1476   :  { %v7788_v21 = vpack.c.bf16 %v8128_v62, %v8127_v3 }
0x1478   :  { %7789 = vmatprep.subr.bf16.mxu1 %v7788_v21 }
0x1479   :  { %7791 = vmatpush3.bf16.msra.mxu1 %v7788_v21 }
0x147e   :  { %v8313_v28 = vpop.eup %8312 }
0x147f   :  { %v3685_v6 = vsel %vm85_vm0, %v8313_v28, 0.0  ;;  %v8315_v29 = vpop.eup %8314 }
0x1480   :  { %3686 = vadd.xlane.f32.xlu0 %v3685_v6  ;;  %v3682_v31 = vsel %vm85_vm0, %v8315_v29, 0.0 }
0x1484   :  { %3683 = vadd.xlane.f32.xlu0 %v3682_v31 }
0x149a   :  { %8130 = vrot.lane.b32.xlu0 %v9010_v0, %s8473_s16 }
0x14a4   :  { %v4044_v45 = vpop.xlane.xlu1 %4043 }
0x14a5   :  { %v4048_v46 = vsub.f32 %v4034_v39, %v4044_v45 }
0x14a7   :  { %v4050_v35 = vmul.f32 1.442695, %v4048_v46 }
0x14a9   :  { %8316 = vpow2.f32 %v4050_v35 }
0x14b3   :  { %v8317_v19 = vpop.eup %8316 }
0x14b4   :  { %v4054_v52 = vsel %vm85_vm0, %v8317_v19, 0.0 }
0x14b5   :  { %4055 = vadd.xlane.f32.xlu1 %v4054_v52 }
0x14b9   :  { %4046 = vmax.xlane.f32.xlu0 %v4045_v56 }
0x14c6   :  { %8135 = vrot.lane.b32.xlu1 %v9004_v54, %s8475_s28 }
0x14ca   :  { %8145 = vrot.lane.b32.xlu1 %v8929_v12, %s8476_s10 }
0x14ce   :  { %8150 = vrot.lane.b32.xlu1 %v8933_v7, %s8476_s10 }
0x150d   :  { %v3687_v39 = vpop.xlane.xlu0 %3686 }
0x150e   :  { %8318 = vrcp.f32 %v3687_v39 }
0x1511   :  { %v3684_v40 = vpop.xlane.xlu0 %3683 }
0x1512   :  { %8320 = vrcp.f32 %v3684_v40 }
0x1515   :  { %v8131_v55 = vpop.permute.xlu0 %8130 }
0x1516   :  { %v8133_v34 = vunpack.i.h.bf16 %v8131_v55  ;;  %v8132_v37 = vunpack.i.l.bf16 %v8131_v55 }
0x1518   :  { %v7792_v50 = vpack.c.bf16 %v8133_v34, %v8132_v37  ;;  %v8319_v9 = vpop.eup %8318 }
0x1519   :  { %v3691_v10 = vmul.f32 %v8319_v9, %v8313_v28 }
0x151a   :  { %7793 = vmatprep.subr.bf16.mxu1 %v7792_v50 }
0x151b   :  { %7795 = vmatpush3.bf16.msra.mxu1 %v7792_v50 }
0x151c   :  { %v8321_v14 = vpop.eup %8320  ;;  %7326 = vmatprep.subr.mxu1 %v9028_v5 }
0x151d   :  { %v3689_v53 = vmul.f32 %v8321_v14, %v8315_v29 }
0x151f   :  { %7323 = vmatprep.mubr.msk.f32.mxu1 %vm85_vm0, %v3689_v53 }
0x1520   :  { %7324 = vmatmul.mubr.msk.f32.vlgmr.msra.gmra.mrb[38].mxu1 %vm85_vm0, %v3691_v10 }
0x1521   :  { %7327 = vmatpush3.msra.mxu1 %v9028_v5 }
0x1522   :  { %7331 = vmatprep.subr.mxu1 %v9038_v13 }
0x1542   :  { %v4056_v28 = vpop.xlane.xlu1 %4055 }
0x1546   :  { %v4047_v12 = vpop.xlane.xlu0 %4046  ;;  %v8136_v6 = vpop.permute.xlu1 %8135 }
0x1547   :  { %v4049_v7 = vsub.f32 %v4039_v47, %v4047_v12  ;;  %v8138_v31 = vunpack.i.h.bf16 %v8136_v6  ;;  %v8137_v45 = vunpack.i.l.bf16 %v8136_v6 }
0x1549   :  { %v4052_v62 = vmul.f32 1.442695, %v4049_v7  ;;  %v7808_v35 = vpack.c.bf16 %v8138_v31, %v8137_v45 }
0x154a   :  { %v8146_v34 = vpop.permute.xlu1 %8145 }
0x154b   :  { %8322 = vpow2.f32 %v4052_v62  ;;  %v8148_v50 = vunpack.i.h.bf16 %v8146_v34 }
0x154c   :  { %8324 = vrcp.f32 %v4056_v28 }
0x1555   :  { %v8323_v3 = vpop.eup %8322 }
0x1556   :  { %v4057_v21 = vsel %vm85_vm0, %v8323_v3, 0.0  ;;  %v8325_v52 = vpop.eup %8324 }
0x1557   :  { %4058 = vadd.xlane.f32.xlu0 %v4057_v21  ;;  %v4061_v40 = vmul.f32 %v8325_v52, %v8317_v19 }
0x156d   :  { %8140 = vrot.lane.b32.xlu0 %v9010_v0, %s8475_s28 }
0x15e4   :  { %v4059_v29 = vpop.xlane.xlu0 %4058 }
0x15e5   :  { %8326 = vrcp.f32 %v4059_v29 }
0x15e8   :  { %v8141_v47 = vpop.permute.xlu0 %8140 }
0x15e9   :  { %v8143_v56 = vunpack.i.h.bf16 %v8141_v47  ;;  %v8142_v39 = vunpack.i.l.bf16 %v8141_v47 }
0x15eb   :  { %v7812_v55 = vpack.c.bf16 %v8143_v56, %v8142_v39 }
0x15ef   :  { %v8327_v37 = vpop.eup %8326 }
0x15f0   :  { %v4063_v9 = vmul.f32 %v8327_v37, %v8323_v3 }
0x15f3   :  { %v7325_v5 = vpop.f32.mrb[38].mxu1 }
0x15f4   :  { %v3780_v46 = vpop.f32.mrb[39].mxu1 }
0x15f5   :  { %7328 = vmatprep.mubr.msk.f32.mxu1 %vm49_vm1, %v3780_v46 }
0x15f6   :  { %7329 = vmatmul.mubr.msk.f32.vlgmr.msra.gmra.mrb[40].mxu1 %vm49_vm1, %v7325_v5 }
0x15f7   :  { %7332 = vmatpush3.msra.mxu1 %v9038_v13  ;;  %7333 = vmatprep.mubr.msk.f32.mxu1 %vm49_vm1, %v9214_v42  ;;  %v8147_v13 = vunpack.i.l.bf16 %v8146_v34 }
0x15f8   :  { %7809 = vmatprep.subr.bf16.mxu1 %v7808_v35 }
0x15f9   :  { %v7816_v42 = vpack.c.bf16 %v8148_v50, %v8147_v13 }
0x15fe   :  { %7334 = vmatmul.mubr.msk.f32.vlgmr.msra.gmra.mrb[40].mxu1 %vm49_vm1, %v9212_v16  ;;  %v8151_v16 = vpop.permute.xlu1 %8150 }
0x15ff   :  { %7811 = vmatpush3.bf16.msra.mxu1 %v7808_v35  ;;  %7355 = vmatprep.mubr.msk.f32.mxu1 %vm85_vm0, %v4061_v40  ;;  %v8153_v19 = vunpack.i.h.bf16 %v8151_v16  ;;  %v8152_v14 = vunpack.i.l.bf16 %v8151_v16 }
0x1600   :  { %7813 = vmatprep.subr.bf16.mxu1 %v7812_v55 }
0x1601   :  { %v7822_v12 = vpack.c.bf16 %v8153_v19, %v8152_v14 }
0x1603   :  { %7815 = vmatpush3.bf16.msra.mxu1 %v7812_v55 }
0x1604   :  { %7358 = vmatprep.subr.mxu1 %v9047_v43 }
0x1606   :  { %7356 = vmatmul.mubr.msk.f32.vlgmr.msra.gmra.mrb[42].mxu1 %vm85_vm0, %v4063_v9 }
0x1607   :  { %7359 = vmatpush3.msra.mxu1 %v9047_v43 }
0x1608   :  { %7818 = vmatprep.subr.msk.bf16.mxu1 %vm8581_vm2, %v7816_v42 }
0x16d9   :  { %v7357_v53 = vpop.f32.mrb[42].mxu1 }
0x16da   :  { %v4148_v10 = vpop.f32.mrb[43].mxu1 }
0x16db   :  { %7360 = vmatprep.mubr.msk.f32.mxu1 %vm49_vm1, %v4148_v10 }
0x16dc   :  { %7361 = vmatmul.mubr.msk.f32.vlgmr.msra.gmra.mrb[40].mxu1 %vm49_vm1, %v7357_v53 }
0x16dd   :  { %7821 = vmatpush3.bf16.xpose.msk.msra.mxu1 %vm8581_vm2, %v7816_v42  ;;  %7371 = vmatprep.mubr.msk.f32.mxu1 %vm49_vm1, %v9056_v58 }
0x16de   :  { %7824 = vmatprep.subr.msk.bf16.mxu1 %vm8581_vm2, %v7822_v12 }
0x16e5   :  { %7827 = vmatpush3.bf16.xpose.msk.msra.mxu1 %vm8581_vm2, %v7822_v12 }
0x16e6   :  { %7385 = vmatprep.subr.mxu1 %v9065_v27 }
0x16ec   :  { %7372 = vmatmul.mubr.msk.f32.vlgmr.msra.gmra.mrb[44].mxu1 %vm49_vm1, %v9070_v59 }
0x16ed   :  { %7386 = vmatpush3.msra.mxu1 %v9065_v27 }
0x16ee   :  { %7854 = vmatprep.subr.msk.bf16.mxu1 %vm8581_vm2, %v8938_v11 }
0x17bf   :  { %v7373_v43 = vpop.f32.mrb[44].mxu1 }
0x17c0   :  { %v4328_v7 = vadd.f32 %v7373_v43, %v8952_v49  ;;  %v4322_v62 = vpop.f32.mrb[45].mxu1 }
0x17c1   :  { %v4323_v3 = vadd.f32 %v4322_v62, %v8954_v2 }
0x17c2   :  { %v4334_v21 = vsel %vm85_vm0, %v4328_v7, -inf }
0x17c3   :  { %4335 = vmax.xlane.f32.xlu1 %v4334_v21  ;;  %v4331_v28 = vsel %vm85_vm0, %v4323_v3, -inf }
0x17c4   :  { %4332 = vmax.xlane.f32.xlu0 %v4331_v28 }
0x17d4   :  { %8155 = vrot.lane.b32.xlu1 %v9004_v54, %s8476_s10 }
0x1850   :  { %v4336_v27 = vpop.xlane.xlu1 %4335 }
0x1851   :  { %v4338_v6 = vsub.f32 %v4328_v7, %v4336_v27  ;;  %v4333_v29 = vpop.xlane.xlu0 %4332 }
0x1852   :  { %v4337_v31 = vsub.f32 %v4323_v3, %v4333_v29 }
0x1853   :  { %v4341_v45 = vmul.f32 1.442695, %v4338_v6 }
0x1854   :  { %v4339_v5 = vmul.f32 1.442695, %v4337_v31  ;;  %v8156_v46 = vpop.permute.xlu1 %8155 }
0x1855   :  { %8328 = vpow2.f32 %v4341_v45  ;;  %v8158_v35 = vunpack.i.h.bf16 %v8156_v46  ;;  %v8157_v47 = vunpack.i.l.bf16 %v8156_v46 }
0x1856   :  { %8330 = vpow2.f32 %v4339_v5 }
0x1857   :  { %v7828_v52 = vpack.c.bf16 %v8158_v35, %v8157_v47 }
0x1859   :  { %7829 = vmatprep.subr.bf16.mxu0 %v7828_v52 }
0x185a   :  { %7831 = vmatpush3.bf16.msra.mxu0 %v7828_v52 }
0x185f   :  { %v8329_v56 = vpop.eup %8328 }
0x1860   :  { %v4346_v39 = vsel %vm85_vm0, %v8329_v56, 0.0  ;;  %v8331_v40 = vpop.eup %8330 }
0x1861   :  { %4347 = vadd.xlane.f32.xlu0 %v4346_v39  ;;  %v4343_v54 = vsel %vm85_vm0, %v8331_v40, 0.0 }
0x1865   :  { %4344 = vadd.xlane.f32.xlu0 %v4343_v54 }
0x187b   :  { %8160 = vrot.lane.b32.xlu0 %v9010_v0, %s8476_s10 }
0x18ee   :  { %v4348_v55 = vpop.xlane.xlu0 %4347 }
0x18ef   :  { %8332 = vrcp.f32 %v4348_v55 }
0x18f2   :  { %v4345_v34 = vpop.xlane.xlu0 %4344 }
0x18f3   :  { %8334 = vrcp.f32 %v4345_v34 }
0x18f6   :  { %v8161_v37 = vpop.permute.xlu0 %8160 }
0x18f7   :  { %v8163_v50 = vunpack.i.h.bf16 %v8161_v37  ;;  %v8162_v13 = vunpack.i.l.bf16 %v8161_v37 }
0x18f9   :  { %v7832_v9 = vpack.c.bf16 %v8163_v50, %v8162_v13  ;;  %v8333_v42 = vpop.eup %8332 }
0x18fa   :  { %v4352_v14 = vmul.f32 %v8333_v42, %v8329_v56 }
0x18fb   :  { %7833 = vmatprep.subr.bf16.mxu0 %v7832_v9 }
0x18fc   :  { %7835 = vmatpush3.bf16.msra.mxu0 %v7832_v9 }
0x18fd   :  { %v8335_v16 = vpop.eup %8334 }
0x18fe   :  { %v4350_v19 = vmul.f32 %v8335_v16, %v8331_v40  ;;  %v4583_v16 = vld [vmem:[#allocation2 + $0x60] sm:$0xff] }
0x1900   :  { %7382 = vmatprep.mubr.msk.f32.mxu0 %vm85_vm0, %v4350_v19  ;;  %v4584_v19 = vld [vmem:[#allocation2 + $0xd8] sm:$0xff] }
0x1901   :  { %7383 = vmatmul.mubr.msk.f32.vlgmr.msra.gmra.mrb[40].mxu0 %vm85_vm0, %v4352_v14  ;;  %v7836_v14 = vpack.c.bf16 %v4584_v19, %v4583_v16  ;;  %v4582_v16 = vld [vmem:[#allocation2 + $0x1b0] sm:$0xff] }
0x1903   :  { %7837 = vmatprep.subr.bf16.mxu0 %v7836_v14 }
0x1904   :  { %7839 = vmatpush3.bf16.msra.mxu0 %v7836_v14 }
0x19d4   :  { %v7384_v53 = vpop.f32.mrb[40].mxu0 }
0x19d5   :  { %v4437_v0 = vpop.f32.mrb[41].mxu0 }
0x19d6   :  { %7387 = vmatprep.mubr.msk.f32.mxu1 %vm49_vm1, %v4437_v0  ;;  %v4586_v0 = vld [vmem:[#allocation2 + $0x1c8] sm:$0xff] }
0x19d7   :  { %7388 = vmatmul.mubr.msk.f32.vlgmr.msra.gmra.mrb[40].mxu1 %vm49_vm1, %v7384_v53  ;;  %v4585_v53 = vld [vmem:[#allocation2 + $0x150] sm:$0xff] }
0x19d8   :  { %7857 = vmatpush3.bf16.xpose.msk.msra.mxu1 %vm8581_vm2, %v8938_v11  ;;  %7420 = vmatprep.mubr.msk.f32.mxu1 %vm49_vm1, %v8850_v18 }
0x19d9   :  { %7860 = vmatprep.subr.msk.bf16.mxu1 %vm8581_vm2, %v8943_v17 }
0x19e0   :  { %7863 = vmatpush3.bf16.xpose.msk.msra.mxu1 %vm8581_vm2, %v8943_v17 }
0x19e7   :  { %7421 = vmatmul.mubr.msk.f32.vlgmr.msra.gmra.mrb[46].mxu1 %vm49_vm1, %v8852_v26 }
0x1aaa   :  { %v7389_v10 = vpop.f32.mrb[40].mxu1 }
0x1aab   :  { %v4530_v12 = vadd.f32 %v7389_v10, %v9108_v8  ;;  %v4518_v43 = vpop.f32.mrb[41].mxu1  ;;  %v7840_v10 = vpack.c.bf16 %v4586_v0, %v4585_v53 }
0x1aac   :  { %v4529_v11 = vadd.f32 %v9108_v8, %v4518_v43  ;;  %v4580_v43 = vld [vmem:[#allocation2 + $0xc0] sm:$0xff] }
0x1aad   :  { %v4532_v7 = vadd.f32 %v4530_v12, %v8798_v1  ;;  %7841 = vmatprep.subr.bf16.mxu0 %v7840_v10  ;;  %v4579_v12 = vld [vmem:[#allocation2 + $0x48] sm:$0xff] }
0x1aae   :  { %v4531_v18 = vadd.f32 %v4529_v11, %v8791_v61  ;;  %7843 = vmatpush3.bf16.msra.mxu0 %v7840_v10  ;;  %v7844_v11 = vpack.c.bf16 %v4580_v43, %v4579_v12 }
0x1aaf   :  { %v4536_v62 = vsel %vm85_vm0, %v4532_v7, 0.0 }
0x1ab0   :  { %4537 = vadd.xlane.f32.xlu0 %v4536_v62  ;;  %v4533_v3 = vsel %vm85_vm0, %v4531_v18, 0.0  ;;  %7845 = vmatprep.subr.bf16.mxu0 %v7844_v11 }
0x1ab1   :  { %4534 = vadd.xlane.f32.xlu1 %v4533_v3 }
0x1aba   :  { %v7422_v17 = vpop.f32.mrb[46].mxu1 }
0x1abb   :  { %v4852_v21 = vadd.f32 %v7422_v17, %v8952_v49  ;;  %v4846_v26 = vpop.f32.mrb[47].mxu1 }
0x1abc   :  { %v4847_v28 = vadd.f32 %v4846_v26, %v8954_v2 }
0x1abd   :  { %v4858_v27 = vsel %vm85_vm0, %v4852_v21, -inf }
0x1abe   :  { %4859 = vmax.xlane.f32.xlu0 %v4858_v27  ;;  %v4855_v8 = vsel %vm85_vm0, %v4847_v28, -inf }
0x1abf   :  { %4856 = vmax.xlane.f32.xlu1 %v4855_v8 }
0x1b3d   :  { %v4538_v6 = vpop.xlane.xlu0 %4537 }
0x1b3e   :  { %v4540_v29 = vmul.f32 0.03125, %v4538_v6  ;;  %v4535_v31 = vpop.xlane.xlu1 %4534 }
0x1b3f   :  { %v4539_v45 = vmul.f32 0.03125, %v4535_v31 }
0x1b40   :  { %v9312_v5 = vsub.f32 %v4532_v7, %v4540_v29 }
0x1b41   :  { %v9314_v46 = vsub.f32 %v4531_v18, %v4539_v45 }
0x1b42   :  { %v4544_v35 = vmul.f32 %v9312_v5, %v9312_v5 }
0x1b43   :  { %v4543_v47 = vmul.f32 %v9314_v46, %v9314_v46 }
0x1b44   :  { %v4548_v52 = vsel %vm85_vm0, %v4544_v35, 0.0 }
0x1b45   :  { %4549 = vadd.xlane.f32.xlu0 %v4548_v52  ;;  %v4545_v56 = vsel %vm85_vm0, %v4543_v47, 0.0 }
0x1b46   :  { %4546 = vadd.xlane.f32.xlu1 %v4545_v56 }
0x1b4b   :  { %v4860_v39 = vpop.xlane.xlu0 %4859 }
0x1b4c   :  { %v4862_v40 = vsub.f32 %v4852_v21, %v4860_v39  ;;  %v4857_v54 = vpop.xlane.xlu1 %4856 }
0x1b4d   :  { %v4861_v55 = vsub.f32 %v4847_v28, %v4857_v54 }
0x1b4e   :  { %v4865_v34 = vmul.f32 1.442695, %v4862_v40 }
0x1b4f   :  { %v4863_v37 = vmul.f32 1.442695, %v4861_v55 }
0x1b50   :  { %8336 = vpow2.f32 %v4865_v34 }
0x1b51   :  { %8338 = vpow2.f32 %v4863_v37 }
0x1b5a   :  { %v9322_v50 = vpop.eup %8336 }
0x1b5b   :  { %v9324_v13 = vpop.eup %8338  ;;  %v4870_v9 = vsel %vm85_vm0, %v9322_v50, 0.0 }
0x1b5c   :  { %4871 = vadd.xlane.f32.xlu0 %v4870_v9  ;;  %v4867_v42 = vsel %vm85_vm0, %v9324_v13, 0.0 }
0x1b5d   :  { %4868 = vadd.xlane.f32.xlu1 %v4867_v42  ;;  %v4581_v42 = vld [vmem:[#allocation2 + $0x138] sm:$0xff] }
0x1b5e   :  { %v7848_v53 = vpack.c.bf16 %v4582_v16, %v4581_v42 }
0x1b6e   :  { %8165 = vrot.lane.b32.xlu1 %v8941_v15, %s8473_s16 }
0x1b72   :  { %8170 = vrot.lane.b32.xlu0 %v8945_v20, %s8473_s16  ;;  %8175 = vrot.lane.b32.xlu1 %v8941_v15, %s8475_s28 }
0x1b76   :  { %8180 = vrot.lane.b32.xlu1 %v8945_v20, %s8475_s28 }
0x1bd2   :  { %v4550_v7 = vpop.xlane.xlu0 %4549 }
0x1bd3   :  { %v4552_v18 = vmul.f32 0.03125, %v4550_v7  ;;  %v4547_v62 = vpop.xlane.xlu1 %4546 }
0x1bd4   :  { %v4551_v3 = vmul.f32 0.03125, %v4547_v62 }
0x1bd5   :  { %v4554_v17 = vadd.f32 1e-05, %v4552_v18 }
0x1bd6   :  { %v4553_v21 = vadd.f32 1e-05, %v4551_v3 }
0x1bd7   :  { %8340 = vrsqrt.f32 %v4554_v17  ;;  %vm4564_vm12 = vcmp.eq.f32.partialorder %v4554_v17, inf  ;;  %v4567_v8 = vand.u32 2147483648, %v4554_v17  ;;  %vm4566_vm13 = vcmp.eq.f32.partialorder %v4554_v17, 0.0 }
0x1bd8   :  { %8342 = vrsqrt.f32 %v4553_v21  ;;  %vm4557_vm14 = vcmp.eq.f32.partialorder %v4553_v21, inf  ;;  %v4560_v31 = vand.u32 2147483648, %v4553_v21  ;;  %vm4559_vm15 = vcmp.eq.f32.partialorder %v4553_v21, 0.0 }
0x1be1   :  { %v8341_v26 = vpop.eup %8340 }
0x1be2   :  { %v8343_v28 = vpop.eup %8342  ;;  %v4563_v27 = vmul.f32 %v8341_v26, %v4554_v17 }
0x1be3   :  { %v4556_v6 = vmul.f32 %v8343_v28, %v4553_v21  ;;  %v6543_v28 = vld [vmem:[%s9568_s7 + $0xc] ss:$0 sm:$0xff] }
0x1be4   :  { %v4565_v29 = vsel %vm4564_vm12, %v4554_v17, %v4563_v27  ;;  %v3373_v27 = vadd.f32 %v6543_v28, %v9210_v38 }
0x1be5   :  { %v4568_v45 = vsel %vm4566_vm13, %v4567_v8, %v4565_v29  ;;  %v4558_v35 = vsel %vm4557_vm14, %v4553_v21, %v4556_v6 }
0x1be6   :  { %8344 = vrcp.f32 %v4568_v45  ;;  %v4561_v47 = vsel %vm4559_vm15, %v4560_v31, %v4558_v35  ;;  %v6544_v6 = vmul.f32 -1.442695, %v3373_v27 }
0x1be7   :  { %8346 = vrcp.f32 %v4561_v47 }
0x1be9   :  { %v4872_v14 = vpop.xlane.xlu0 %4871 }
0x1bea   :  { %v4869_v40 = vpop.xlane.xlu1 %4868 }
0x1beb   :  { %8348 = vrcp.f32 %v4869_v40 }
0x1bec   :  { %8350 = vrcp.f32 %v4872_v14 }
0x1bed   :  { %v8171_v7 = vpop.permute.xlu0 %8170 }
0x1bee   :  { %v8172_v18 = vunpack.i.l.bf16 %v8171_v7 }
0x1bf0   :  { %v8345_v52 = vpop.eup %8344 }
0x1bf1   :  { %v8347_v56 = vpop.eup %8346  ;;  %v4572_v39 = vmul.f32 %v8345_v52, %v9312_v5 }
0x1bf2   :  { %v4570_v54 = vmul.f32 %v8347_v56, %v9314_v46 }
0x1bf3   :  { %v4574_v55 = vmul.f32 %v9149_v22, %v4572_v39 }
0x1bf4   :  { %v4573_v34 = vmul.f32 %v9149_v22, %v4570_v54 }
0x1bf5   :  { %v4576_v37 = vadd.f32 %v9155_v30, %v4574_v55  ;;  %v8349_v22 = vpop.eup %8348 }
0x1bf6   :  { %v4575_v9 = vadd.f32 %v9155_v30, %v4573_v34  ;;  %v8166_v30 = vpop.permute.xlu1 %8165  ;;  %v4874_v46 = vmul.f32 %v8349_v22, %v9324_v13  ;;  %v8351_v12 = vpop.eup %8350  ;;  %v8173_v13 = vunpack.i.h.bf16 %v8171_v7 }
0x1bf7   :  { %v9348_v5 = vmul.f32 %v4576_v37, %v8795_v63  ;;  %v8168_v0 = vunpack.i.h.bf16 %v8166_v30  ;;  %v8167_v10 = vunpack.i.l.bf16 %v8166_v30 }
0x1bf8   :  { %v9345_v19 = vmul.f32 %v4575_v9, %v8787_v57 }
0x1bf9   :  { %v7872_v43 = vpack.c.bf16 %v8168_v0, %v8167_v10 }
0x1bfa   :  { %7398 = vmatprep.mubr.msk.f32.mxu0 %vm85_vm0, %v9345_v19  ;;  %v8176_v62 = vpop.permute.xlu1 %8175 }
0x1bfb   :  { %7399 = vmatmul.mubr.msk.f32.vlgmr.msra.gmra.mrb[42].mxu0 %vm85_vm0, %v9348_v5 }
0x1bfc   :  { %7847 = vmatpush3.bf16.msra.mxu0 %v7844_v11  ;;  %7409 = vmatprep.mubr.msk.f32.mxu0 %vm85_vm0, %v8791_v61  ;;  %v4876_v11 = vmul.f32 %v8351_v12, %v9322_v50  ;;  %v8177_v50 = vunpack.i.l.bf16 %v8176_v62 }
0x1bfd   :  { %7849 = vmatprep.subr.bf16.mxu0 %v7848_v53 }
0x1bfe   :  { %v8181_v17 = vpop.permute.xlu1 %8180 }
0x1bff   :  { %v8183_v21 = vunpack.i.h.bf16 %v8181_v17 }
0x1c00   :  { %7851 = vmatpush3.bf16.msra.mxu0 %v7848_v53 }
0x1c01   :  { %7865 = vmatprep.subr.bf16.mxu0 %v9020_v51 }
0x1c03   :  { %7410 = vmatmul.mubr.msk.f32.vlgmr.msra.gmra.mrb[42].mxu0 %vm85_vm0, %v8798_v1 }
0x1c04   :  { %7867 = vmatpush3.bf16.msra.mxu0 %v9020_v51  ;;  %7431 = vmatprep.mubr.msk.f32.mxu0 %vm85_vm0, %v4874_v46  ;;  %v7878_v51 = vpack.c.bf16 %v8173_v13, %v8172_v18 }
0x1c05   :  { %7869 = vmatprep.subr.bf16.mxu0 %v9030_v48 }
0x1c08   :  { %7871 = vmatpush3.bf16.msra.mxu0 %v9030_v48  ;;  %v8178_v48 = vunpack.i.h.bf16 %v8176_v62 }
0x1c09   :  { %7874 = vmatprep.subr.msk.bf16.mxu0 %vm8581_vm2, %v7872_v43 }
0x1c0a   :  { %v7892_v3 = vpack.c.bf16 %v8178_v48, %v8177_v50 }
0x1c0b   :  { %7432 = vmatmul.mubr.msk.f32.vlgmr.msra.gmra.mrb[44].mxu0 %vm85_vm0, %v4876_v11 }
0x1c0c   :  { %7442 = vmatprep.mubr.msk.f32.mxu0 %vm49_vm1, %v8893_v60  ;;  %v8182_v60 = vunpack.i.l.bf16 %v8181_v17 }
0x1c0e   :  { %v7898_v26 = vpack.c.bf16 %v8183_v21, %v8182_v60 }
0x1c11   :  { %7877 = vmatpush3.bf16.xpose.msk.msra.mxu0 %vm8581_vm2, %v7872_v43 }
0x1c12   :  { %7880 = vmatprep.subr.msk.bf16.mxu0 %vm8581_vm2, %v7878_v51 }
0x1c19   :  { %7883 = vmatpush3.bf16.xpose.msk.msra.mxu0 %vm8581_vm2, %v7878_v51 }
0x1c1a   :  { %7894 = vmatprep.subr.msk.bf16.mxu0 %vm8581_vm2, %v7892_v3 }
0x1c20   :  { %7443 = vmatmul.mubr.msk.f32.vlgmr.msra.gmra.mrb[46].mxu0 %vm49_vm1, %v8901_v23  ;;  %v3374_v23 = vadd.f32 %v9208_v32, %v6543_v28 }
0x1c21   :  { %7897 = vmatpush3.bf16.xpose.msk.msra.mxu0 %vm8581_vm2, %v7892_v3  ;;  %7474 = vmatprep.mubr.msk.f32.mxu0 %vm49_vm1, %v8905_v24  ;;  %v6590_v24 = vld [vmem:[%s9568_s7 + $0xd] ss:$0 sm:$0xff] }
0x1c22   :  { %7900 = vmatprep.subr.msk.bf16.mxu0 %vm8581_vm2, %v7898_v26  ;;  %v6545_v8 = vmul.f32 -1.442695, %v3374_v23 }
0x1c24   :  { %8352 = vpow2.f32 %v6545_v8 }
0x1c25   :  { %8354 = vpow2.f32 %v6544_v6 }
0x1c29   :  { %7903 = vmatpush3.bf16.xpose.msk.msra.mxu0 %vm8581_vm2, %v7898_v26 }
0x1c2e   :  { %v8353_v32 = vpop.eup %8352 }
0x1c2f   :  { %v8355_v56 = vpop.eup %8354  ;;  %v3382_v39 = vadd.f32 1.0, %v8353_v32 }
0x1c30   :  { %7475 = vmatmul.mubr.msk.f32.vlgmr.msra.gmra.mrb[48].mxu0 %vm49_vm1, %v8919_v36  ;;  %v3381_v40 = vadd.f32 1.0, %v8355_v56 }
0x1cd6   :  { %v7411_v29 = vpop.f32.mrb[42].mxu0 }
0x1cd7   :  { %v4751_v31 = vadd.f32 %v7411_v29, %v6590_v24  ;;  %v4734_v45 = vpop.f32.mrb[43].mxu0 }
0x1cd8   :  { %v4750_v36 = vadd.f32 %v6590_v24, %v4734_v45 }
0x1cd9   :  { %v6592_v35 = vmul.f32 -1.442695, %v4751_v31 }
0x1cda   :  { %v6591_v47 = vmul.f32 -1.442695, %v4750_v36 }
0x1cdb   :  { %8356 = vpow2.f32 %v6592_v35 }
0x1cdc   :  { %8358 = vpow2.f32 %v6591_v47 }
0x1cdd   :  { %8360 = vrcp.f32 %v3382_v39 }
0x1cde   :  { %v9398_v52 = vpop.f32.mrb[44].mxu0  ;;  %8362 = vrcp.f32 %v3381_v40 }
0x1cdf   :  { %v9400_v38 = vpop.f32.mrb[45].mxu0 }
0x1ce5   :  { %v8357_v54 = vpop.eup %8356 }
0x1ce6   :  { %v8359_v55 = vpop.eup %8358  ;;  %v4759_v34 = vadd.f32 1.0, %v8357_v54 }
0x1ce7   :  { %v4758_v37 = vadd.f32 1.0, %v8359_v55  ;;  %v8361_v9 = vpop.eup %8360 }
0x1ce8   :  { %8364 = vrcp.f32 %v4759_v34  ;;  %v8363_v42 = vpop.eup %8362  ;;  %v3388_v53 = vmul.f32 %v8361_v9, %v9166_v44  ;;  %v8416_v9 = vld [vmem:[#allocation2 + $0xb0] sm:$0xff] }
0x1ce9   :  { %8366 = vrcp.f32 %v4758_v37  ;;  %v3387_v10 = vmul.f32 %v8363_v42, %v9163_v41 }
0x1cf2   :  { %v8365_v16 = vpop.eup %8364 }
0x1cf3   :  { %v8367_v14 = vpop.eup %8366  ;;  %v4765_v22 = vmul.f32 %v8365_v16, %v9348_v5  ;;  %v7444_v30 = vpop.f32.mrb[46].mxu0 }
0x1cf4   :  { %v5046_v46 = vadd.f32 %v7444_v30, %v8952_v49  ;;  %v5040_v0 = vpop.f32.mrb[47].mxu0  ;;  %v4764_v12 = vmul.f32 %v8367_v14, %v9345_v19 }
0x1cf5   :  { %v5041_v43 = vadd.f32 %v5040_v0, %v8954_v2  ;;  %v9408_v11 = vadd.f32 %v4765_v22, %v3388_v53 }
0x1cf6   :  { %v5052_v7 = vsel %vm85_vm0, %v5046_v46, -inf  ;;  %v9411_v13 = vadd.f32 %v4764_v12, %v3387_v10 }
0x1cf7   :  { %5053 = vmax.xlane.f32.xlu1 %v5052_v7  ;;  %v5049_v44 = vsel %vm85_vm0, %v5041_v43, -inf }
0x1cf8   :  { %5050 = vmax.xlane.f32.xlu0 %v5049_v44 }
0x1d03   :  { %v7476_v5 = vpop.f32.mrb[48].mxu0 }
0x1d04   :  { %v5412_v18 = vpop.f32.mrb[49].mxu0  ;;  %v5418_v36 = vadd.f32 %v7476_v5, %v8952_v49 }
0x1d05   :  { %v5413_v41 = vadd.f32 %v5412_v18, %v8954_v2 }
0x1d06   :  { %v5424_v47 = vsel %vm85_vm0, %v5418_v36, -inf }
0x1d07   :  { %v5421_v19 = vsel %vm85_vm0, %v5413_v41, -inf }
0x1d08   :  { %8185 = vrot.lane.b32.xlu1 %v9022_v4, %s8473_s16 }
0x1d2c   :  { %5422 = vmax.xlane.f32.xlu1 %v5421_v19 }
0x1d84   :  { %v5054_v51 = vpop.xlane.xlu1 %5053 }
0x1d85   :  { %v5056_v62 = vsub.f32 %v5046_v46, %v5054_v51  ;;  %v5051_v48 = vpop.xlane.xlu0 %5050 }
0x1d86   :  { %v5055_v50 = vsub.f32 %v5041_v43, %v5051_v48 }
0x1d87   :  { %v5059_v3 = vmul.f32 1.442695, %v5056_v62 }
0x1d88   :  { %v5057_v17 = vmul.f32 1.442695, %v5055_v50  ;;  %v8186_v21 = vpop.permute.xlu1 %8185 }
0x1d89   :  { %8368 = vpow2.f32 %v5059_v3  ;;  %v8188_v60 = vunpack.i.h.bf16 %v8186_v21  ;;  %v8187_v26 = vunpack.i.l.bf16 %v8186_v21 }
0x1d8a   :  { %8370 = vpow2.f32 %v5057_v17 }
0x1d8b   :  { %v7884_v28 = vpack.c.bf16 %v8188_v60, %v8187_v26 }
0x1d8d   :  { %7885 = vmatprep.subr.bf16.mxu1 %v7884_v28 }
0x1d8e   :  { %7887 = vmatpush3.bf16.msra.mxu1 %v7884_v28 }
0x1d93   :  { %v8369_v23 = vpop.eup %8368 }
0x1d94   :  { %v5064_v27 = vsel %vm85_vm0, %v8369_v23, 0.0  ;;  %v8371_v8 = vpop.eup %8370 }
0x1d95   :  { %5065 = vadd.xlane.f32.xlu0 %v5064_v27  ;;  %v5061_v6 = vsel %vm85_vm0, %v8371_v8, 0.0 }
0x1d99   :  { %5062 = vadd.xlane.f32.xlu0 %v5061_v6 }
0x1daf   :  { %8190 = vrot.lane.b32.xlu0 %v9032_v33, %s8473_s16 }
0x1db9   :  { %v5423_v24 = vpop.xlane.xlu1 %5422 }
0x1dba   :  { %v5427_v29 = vsub.f32 %v5413_v41, %v5423_v24  ;;  %v8419_v24 = vld [vmem:[#allocation2 + $0x1a0] sm:$0xff] }
0x1dbc   :  { %v5429_v31 = vmul.f32 1.442695, %v5427_v29 }
0x1dbe   :  { %8372 = vpow2.f32 %v5429_v31 }
0x1dc8   :  { %v8373_v45 = vpop.eup %8372 }
0x1dc9   :  { %v5433_v35 = vsel %vm85_vm0, %v8373_v45, 0.0 }
0x1dca   :  { %5434 = vadd.xlane.f32.xlu1 %v5433_v35 }
0x1dce   :  { %5425 = vmax.xlane.f32.xlu0 %v5424_v47 }
0x1ddb   :  { %8195 = vrot.lane.b32.xlu1 %v9022_v4, %s8475_s28 }
0x1ddf   :  { %8205 = vrot.lane.b32.xlu1 %v8941_v15, %s8476_s10  ;;  %v8417_v15 = vld [vmem:[#allocation2 + $0x38] sm:$0xff] }
0x1de3   :  { %8210 = vrot.lane.b32.xlu1 %v8945_v20, %s8476_s10 }
0x1e22   :  { %v5066_v32 = vpop.xlane.xlu0 %5065 }
0x1e23   :  { %8374 = vrcp.f32 %v5066_v32 }
0x1e26   :  { %v5063_v56 = vpop.xlane.xlu0 %5062 }
0x1e27   :  { %8376 = vrcp.f32 %v5063_v56 }
0x1e2a   :  { %v8191_v39 = vpop.permute.xlu0 %8190 }
0x1e2b   :  { %v8193_v40 = vunpack.i.h.bf16 %v8191_v39  ;;  %v8192_v54 = vunpack.i.l.bf16 %v8191_v39 }
0x1e2d   :  { %v7888_v55 = vpack.c.bf16 %v8193_v40, %v8192_v54  ;;  %v8375_v34 = vpop.eup %8374 }
0x1e2e   :  { %v5070_v16 = vmul.f32 %v8375_v34, %v8369_v23 }
0x1e2f   :  { %7889 = vmatprep.subr.bf16.mxu1 %v7888_v55 }
0x1e30   :  { %7891 = vmatpush3.bf16.msra.mxu1 %v7888_v55 }
0x1e31   :  { %v8377_v37 = vpop.eup %8376  ;;  %7456 = vmatprep.subr.mxu1 %v8416_v9 }
0x1e32   :  { %v5068_v42 = vmul.f32 %v8377_v37, %v8371_v8 }
0x1e34   :  { %7453 = vmatprep.mubr.msk.f32.mxu1 %vm85_vm0, %v5068_v42 }
0x1e35   :  { %7454 = vmatmul.mubr.msk.f32.vlgmr.msra.gmra.mrb[48].mxu1 %vm85_vm0, %v5070_v16 }
0x1e36   :  { %7457 = vmatpush3.msra.mxu1 %v8416_v9 }
0x1e37   :  { %7461 = vmatprep.subr.mxu1 %v8417_v15 }
0x1e57   :  { %v5435_v46 = vpop.xlane.xlu1 %5434 }
0x1e5b   :  { %v5426_v20 = vpop.xlane.xlu0 %5425  ;;  %v8196_v0 = vpop.permute.xlu1 %8195 }
0x1e5c   :  { %v5428_v14 = vsub.f32 %v5418_v36, %v5426_v20  ;;  %v8198_v12 = vunpack.i.h.bf16 %v8196_v0  ;;  %v8197_v43 = vunpack.i.l.bf16 %v8196_v0 }
0x1e5e   :  { %v5431_v53 = vmul.f32 1.442695, %v5428_v14  ;;  %v7904_v5 = vpack.c.bf16 %v8198_v12, %v8197_v43  ;;  %v8420_v12 = vld [vmem:[%s9568_s7 + $0x9] ss:$0 sm:$0xff] }
0x1e5f   :  { %v8206_v50 = vpop.permute.xlu1 %8205 }
0x1e60   :  { %8378 = vpow2.f32 %v5431_v53  ;;  %v8208_v17 = vunpack.i.h.bf16 %v8206_v50  ;;  %v8207_v21 = vunpack.i.l.bf16 %v8206_v50 }
0x1e61   :  { %8380 = vrcp.f32 %v5435_v46 }
0x1e62   :  { %v7912_v26 = vpack.c.bf16 %v8208_v17, %v8207_v21 }
0x1e6a   :  { %v8379_v22 = vpop.eup %8378 }
0x1e6b   :  { %v5436_v30 = vsel %vm85_vm0, %v8379_v22, 0.0  ;;  %v8381_v41 = vpop.eup %8380 }
0x1e6c   :  { %5437 = vadd.xlane.f32.xlu0 %v5436_v30  ;;  %v5440_v62 = vmul.f32 %v8381_v41, %v8373_v45 }
0x1e82   :  { %8200 = vrot.lane.b32.xlu0 %v9032_v33, %s8475_s28 }
0x1ef9   :  { %v5438_v10 = vpop.xlane.xlu0 %5437 }
0x1efa   :  { %8382 = vrcp.f32 %v5438_v10 }
0x1efd   :  { %v8201_v18 = vpop.permute.xlu0 %8200 }
0x1efe   :  { %v8203_v19 = vunpack.i.h.bf16 %v8201_v18  ;;  %v8202_v51 = vunpack.i.l.bf16 %v8201_v18 }
0x1f00   :  { %v7908_v48 = vpack.c.bf16 %v8203_v19, %v8202_v51 }
0x1f04   :  { %v8383_v3 = vpop.eup %8382 }
0x1f05   :  { %v5442_v60 = vmul.f32 %v8383_v3, %v8379_v22 }
0x1f08   :  { %v7455_v7 = vpop.f32.mrb[48].mxu1 }
0x1f09   :  { %v5159_v44 = vpop.f32.mrb[49].mxu1 }
0x1f0a   :  { %7458 = vmatprep.mubr.msk.f32.mxu1 %vm49_vm1, %v5159_v44 }
0x1f0b   :  { %7459 = vmatmul.mubr.msk.f32.vlgmr.msra.gmra.mrb[50].mxu1 %vm49_vm1, %v7455_v7 }
0x1f0c   :  { %7462 = vmatpush3.msra.mxu1 %v8417_v15  ;;  %7463 = vmatprep.mubr.msk.f32.mxu1 %vm49_vm1, %v9400_v38  ;;  %v8418_v38 = vld [vmem:[#allocation2 + $0x128] sm:$0xff] }
0x1f0d   :  { %7905 = vmatprep.subr.bf16.mxu1 %v7904_v5 }
0x1f13   :  { %7464 = vmatmul.mubr.msk.f32.vlgmr.msra.gmra.mrb[50].mxu1 %vm49_vm1, %v9398_v52  ;;  %v8211_v52 = vpop.permute.xlu1 %8210 }
0x1f14   :  { %7907 = vmatpush3.bf16.msra.mxu1 %v7904_v5  ;;  %7485 = vmatprep.mubr.msk.f32.mxu1 %vm85_vm0, %v5440_v62  ;;  %v8213_v28 = vunpack.i.h.bf16 %v8211_v52  ;;  %v8212_v23 = vunpack.i.l.bf16 %v8211_v52  ;;  %v5962_v52 = vld [vmem:[#allocation2 + $0x68] sm:$0xff] }
0x1f15   :  { %7909 = vmatprep.subr.bf16.mxu1 %v7908_v48 }
0x1f16   :  { %v7918_v6 = vpack.c.bf16 %v8213_v28, %v8212_v23  ;;  %v5963_v28 = vld [vmem:[#allocation2 + $0xe0] sm:$0xff]  ;;  %v5964_v23 = vld [vmem:[#allocation2 + $0x158] sm:$0xff] }
0x1f18   :  { %7911 = vmatpush3.bf16.msra.mxu1 %v7908_v48 }
0x1f19   :  { %7488 = vmatprep.subr.mxu1 %v8418_v38 }
0x1f1b   :  { %7486 = vmatmul.mubr.msk.f32.vlgmr.msra.gmra.mrb[52].mxu1 %vm85_vm0, %v5442_v60 }
0x1f1c   :  { %7489 = vmatpush3.msra.mxu1 %v8418_v38 }
0x1f1d   :  { %7914 = vmatprep.subr.msk.bf16.mxu1 %vm8581_vm2, %v7912_v26 }
0x1fee   :  { %v7487_v27 = vpop.f32.mrb[52].mxu1 }
0x1fef   :  { %v5527_v8 = vpop.f32.mrb[53].mxu1 }
0x1ff0   :  { %7490 = vmatprep.mubr.msk.f32.mxu1 %vm49_vm1, %v5527_v8  ;;  %v5965_v8 = vld [vmem:[#allocation2 + $0x1d0] sm:$0xff] }
0x1ff1   :  { %7491 = vmatmul.mubr.msk.f32.vlgmr.msra.gmra.mrb[50].mxu1 %vm49_vm1, %v7487_v27  ;;  %v7932_v27 = vpack.c.bf16 %v5963_v28, %v5962_v52 }
0x1ff2   :  { %7917 = vmatpush3.bf16.xpose.msk.msra.mxu1 %vm8581_vm2, %v7912_v26  ;;  %7501 = vmatprep.mubr.msk.f32.mxu1 %vm49_vm1, %v9056_v58 }
0x1ff3   :  { %7920 = vmatprep.subr.msk.bf16.mxu1 %vm8581_vm2, %v7918_v6 }
0x1ffa   :  { %7923 = vmatpush3.bf16.xpose.msk.msra.mxu1 %vm8581_vm2, %v7918_v6  ;;  %v7936_v6 = vpack.c.bf16 %v5965_v8, %v5964_v23 }
0x1ffb   :  { %7515 = vmatprep.subr.mxu1 %v8419_v24 }
0x2001   :  { %7502 = vmatmul.mubr.msk.f32.vlgmr.msra.gmra.mrb[54].mxu1 %vm49_vm1, %v9070_v59 }
0x2002   :  { %7516 = vmatpush3.msra.mxu1 %v8419_v24  ;;  %v5958_v24 = vld [vmem:[#allocation2 + $0x50] sm:$0xff] }
0x20d4   :  { %v7503_v29 = vpop.f32.mrb[54].mxu1 }
0x20d5   :  { %v5707_v31 = vadd.f32 %v7503_v29, %v8952_v49  ;;  %v5701_v45 = vpop.f32.mrb[55].mxu1  ;;  %v5959_v29 = vld [vmem:[#allocation2 + $0xc8] sm:$0xff] }
0x20d6   :  { %v5702_v36 = vadd.f32 %v5701_v45, %v8954_v2 }
0x20d7   :  { %v5713_v58 = vsel %vm85_vm0, %v5707_v31, -inf }
0x20d8   :  { %5714 = vmax.xlane.f32.xlu1 %v5713_v58  ;;  %v5710_v35 = vsel %vm85_vm0, %v5702_v36, -inf }
0x20d9   :  { %5711 = vmax.xlane.f32.xlu0 %v5710_v35 }
0x20e9   :  { %8215 = vrot.lane.b32.xlu1 %v9022_v4, %s8476_s10 }
0x2165   :  { %v5715_v25 = vpop.xlane.xlu1 %5714 }
0x2166   :  { %v5717_v47 = vsub.f32 %v5707_v31, %v5715_v25  ;;  %v5712_v32 = vpop.xlane.xlu0 %5711  ;;  %v7940_v31 = vpack.c.bf16 %v5959_v29, %v5958_v24 }
0x2167   :  { %v5716_v59 = vsub.f32 %v5702_v36, %v5712_v32 }
0x2168   :  { %v5720_v56 = vmul.f32 1.442695, %v5717_v47 }
0x2169   :  { %v5718_v39 = vmul.f32 1.442695, %v5716_v59  ;;  %v8216_v40 = vpop.permute.xlu1 %8215 }
0x216a   :  { %8384 = vpow2.f32 %v5720_v56  ;;  %v8218_v49 = vunpack.i.h.bf16 %v8216_v40  ;;  %v8217_v54 = vunpack.i.l.bf16 %v8216_v40 }
0x216b   :  { %8386 = vpow2.f32 %v5718_v39 }
0x216c   :  { %v7924_v2 = vpack.c.bf16 %v8218_v49, %v8217_v54 }
0x216e   :  { %7925 = vmatprep.subr.bf16.mxu0 %v7924_v2 }
0x216f   :  { %7927 = vmatpush3.bf16.msra.mxu0 %v7924_v2 }
0x2174   :  { %v8385_v55 = vpop.eup %8384 }
0x2175   :  { %v5725_v34 = vsel %vm85_vm0, %v8385_v55, 0.0  ;;  %v8387_v37 = vpop.eup %8386 }
0x2176   :  { %5726 = vadd.xlane.f32.xlu0 %v5725_v34  ;;  %v5722_v4 = vsel %vm85_vm0, %v8387_v37, 0.0 }
0x217a   :  { %5723 = vadd.xlane.f32.xlu0 %v5722_v4 }
0x2190   :  { %8220 = vrot.lane.b32.xlu0 %v9032_v33, %s8476_s10 }
0x2203   :  { %v5727_v9 = vpop.xlane.xlu0 %5726 }
0x2204   :  { %8388 = vrcp.f32 %v5727_v9 }
0x2207   :  { %v5724_v42 = vpop.xlane.xlu0 %5723 }
0x2208   :  { %8390 = vrcp.f32 %v5724_v42 }
0x220b   :  { %v8221_v16 = vpop.permute.xlu0 %8220 }
0x220c   :  { %v8223_v15 = vunpack.i.h.bf16 %v8221_v16  ;;  %v8222_v20 = vunpack.i.l.bf16 %v8221_v16  ;;  %v8421_v16 = vld [vmem:[%s9568_s7 + $0xa] ss:$0 sm:$0xff] }
0x220e   :  { %v7928_v14 = vpack.c.bf16 %v8223_v15, %v8222_v20  ;;  %v8389_v53 = vpop.eup %8388 }
0x220f   :  { %v5731_v46 = vmul.f32 %v8389_v53, %v8385_v55 }
0x2210   :  { %7929 = vmatprep.subr.bf16.mxu0 %v7928_v14 }
0x2211   :  { %7931 = vmatpush3.bf16.msra.mxu0 %v7928_v14  ;;  %v8422_v14 = vld [vmem:[%s9568_s7 + $0xb] ss:$0 sm:$0xff] }
0x2212   :  { %v8391_v22 = vpop.eup %8390  ;;  %7933 = vmatprep.subr.bf16.mxu0 %v7932_v27 }
0x2213   :  { %v5729_v30 = vmul.f32 %v8391_v22, %v8387_v37 }
0x2215   :  { %7512 = vmatprep.mubr.msk.f32.mxu0 %vm85_vm0, %v5729_v30  ;;  %v5960_v30 = vld [vmem:[#allocation2 + $0x140] sm:$0xff] }
0x2216   :  { %7513 = vmatmul.mubr.msk.f32.vlgmr.msra.gmra.mrb[50].mxu0 %vm85_vm0, %v5731_v46  ;;  %v5961_v46 = vld [vmem:[#allocation2 + $0x1b8] sm:$0xff] }
0x2217   :  { %7935 = vmatpush3.bf16.msra.mxu0 %v7932_v27 }
0x2218   :  { %7937 = vmatprep.subr.bf16.mxu0 %v7936_v6 }
0x221b   :  { %7939 = vmatpush3.bf16.msra.mxu0 %v7936_v6 }
0x221c   :  { %7941 = vmatprep.subr.bf16.mxu0 %v7940_v31 }
0x22e9   :  { %v7514_v0 = vpop.f32.mrb[50].mxu0 }
0x22ea   :  { %v5816_v33 = vpop.f32.mrb[51].mxu0 }
0x22eb   :  { %7517 = vmatprep.mubr.msk.f32.mxu1 %vm49_vm1, %v5816_v33 }
0x22ec   :  { %7518 = vmatmul.mubr.msk.f32.vlgmr.msra.gmra.mrb[50].mxu1 %vm49_vm1, %v7514_v0 }
0x23bf   :  { %v7519_v10 = vpop.f32.mrb[50].mxu1 }
0x23c0   :  { %v5909_v43 = vadd.f32 %v8420_v12, %v7519_v10  ;;  %v5897_v7 = vpop.f32.mrb[51].mxu1  ;;  %v7944_v10 = vpack.c.bf16 %v5961_v46, %v5960_v30 }
0x23c1   :  { %v5908_v44 = vadd.f32 %v8420_v12, %v5897_v7  ;;  %v6151_v12 = vld [vmem:[#allocation2 + $0x70] sm:$0xff] }
0x23c2   :  { %v5911_v5 = vadd.f32 %v5909_v43, %v8798_v1  ;;  %v6152_v43 = vld [vmem:[#allocation2 + $0xe8] sm:$0xff] }
0x23c3   :  { %v5910_v18 = vadd.f32 %v5908_v44, %v8791_v61  ;;  %v7948_v7 = vpack.c.bf16 %v6152_v43, %v6151_v12  ;;  %v6153_v44 = vld [vmem:[#allocation2 + $0x160] sm:$0xff] }
0x23c4   :  { %v5915_v41 = vsel %vm85_vm0, %v5911_v5, 0.0 }
0x23c5   :  { %5916 = vadd.xlane.f32.xlu0 %v5915_v41  ;;  %v5912_v19 = vsel %vm85_vm0, %v5910_v18, 0.0  ;;  %7949 = vmatprep.subr.bf16.mxu1 %v7948_v7  ;;  %v6245_v41 = vld [vmem:[%s9567_s6] sm:$0xff] }
0x23c6   :  { %5913 = vadd.xlane.f32.xlu1 %v5912_v19  ;;  %7951 = vmatpush3.bf16.msra.mxu1 %v7948_v7 }
0x2452   :  { %v5917_v51 = vpop.xlane.xlu0 %5916 }
0x2453   :  { %v5919_v62 = vmul.f32 0.03125, %v5917_v51  ;;  %v5914_v48 = vpop.xlane.xlu1 %5913  ;;  %v6248_v51 = vld [vmem:[%s9567_s6 + $0x18] sm:$0xff] }
0x2454   :  { %v5918_v50 = vmul.f32 0.03125, %v5914_v48  ;;  %v6249_v48 = vld [vmem:[%s9567_s6 + $0x20] sm:$0xff] }
0x2455   :  { %v5921_v3 = vsub.f32 %v5911_v5, %v5919_v62  ;;  %v6154_v5 = vld [vmem:[#allocation2 + $0x1d8] sm:$0xff] }
0x2456   :  { %v5920_v17 = vsub.f32 %v5910_v18, %v5918_v50  ;;  %v7952_v18 = vpack.c.bf16 %v6154_v5, %v6153_v44  ;;  %v6250_v50 = vld [vmem:[%s9567_s6 + $0x28] sm:$0xff] }
0x2457   :  { %v5923_v21 = vmul.f32 %v5921_v3, %v5921_v3 }
0x2458   :  { %v5922_v60 = vmul.f32 %v5920_v17, %v5920_v17  ;;  %7953 = vmatprep.subr.bf16.mxu1 %v7952_v18 }
0x2459   :  { %v5927_v38 = vsel %vm85_vm0, %v5923_v21, 0.0  ;;  %7955 = vmatpush3.bf16.msra.mxu1 %v7952_v18 }
0x245a   :  { %5928 = vadd.xlane.f32.xlu0 %v5927_v38  ;;  %v5924_v26 = vsel %vm85_vm0, %v5922_v60, 0.0 }
0x245b   :  { %5925 = vadd.xlane.f32.xlu1 %v5924_v26 }
0x24e7   :  { %v5929_v45 = vpop.xlane.xlu0 %5928 }
0x24e8   :  { %v5931_v36 = vmul.f32 0.03125, %v5929_v45  ;;  %v5926_v58 = vpop.xlane.xlu1 %5925 }
0x24e9   :  { %v5930_v35 = vmul.f32 0.03125, %v5926_v58 }
0x24ea   :  { %v5933_v25 = vadd.f32 1e-05, %v5931_v36 }
0x24eb   :  { %v5932_v47 = vadd.f32 1e-05, %v5930_v35 }
0x24ec   :  { %8392 = vrsqrt.f32 %v5933_v25  ;;  %vm5943_vm1 = vcmp.eq.f32.partialorder %v5933_v25, inf  ;;  %v5946_v39 = vand.u32 2147483648, %v5933_v25  ;;  %vm5945_vm2 = vcmp.eq.f32.partialorder %v5933_v25, 0.0 }
0x24ed   :  { %8394 = vrsqrt.f32 %v5932_v47  ;;  %vm5936_vm3 = vcmp.eq.f32.partialorder %v5932_v47, inf  ;;  %v5939_v54 = vand.u32 2147483648, %v5932_v47  ;;  %vm5938_vm4 = vcmp.eq.f32.partialorder %v5932_v47, 0.0 }
0x24f6   :  { %v8393_v32 = vpop.eup %8392 }
0x24f7   :  { %v8395_v59 = vpop.eup %8394  ;;  %v5942_v56 = vmul.f32 %v8393_v32, %v5933_v25 }
0x24f8   :  { %v5935_v40 = vmul.f32 %v8395_v59, %v5932_v47  ;;  %v6251_v59 = vld [vmem:[%s9567_s6 + $0x30] sm:$0xff] }
0x24f9   :  { %v5944_v49 = vsel %vm5943_vm1, %v5933_v25, %v5942_v56 }
0x24fa   :  { %v5947_v2 = vsel %vm5945_vm2, %v5946_v39, %v5944_v49  ;;  %v5937_v55 = vsel %vm5936_vm3, %v5932_v47, %v5935_v40 }
0x24fb   :  { %8396 = vrcp.f32 %v5947_v2  ;;  %v5940_v34 = vsel %vm5938_vm4, %v5939_v54, %v5937_v55 }
0x24fc   :  { %8398 = vrcp.f32 %v5940_v34  ;;  %v6643_v34 = vld [vmem:[%s9568_s7 + $0x10] ss:$0 sm:$0xff] }
0x2505   :  { %v8397_v37 = vpop.eup %8396 }
0x2506   :  { %v8399_v4 = vpop.eup %8398  ;;  %v5951_v9 = vmul.f32 %v8397_v37, %v5921_v3  ;;  %v7964_v3 = vpack.c.bf16 %v6250_v50, %v6249_v48 }
0x2507   :  { %v5949_v42 = vmul.f32 %v8399_v4, %v5920_v17  ;;  %v6637_v17 = vld [vmem:[%s9568_s7 + $0xe] ss:$0 sm:$0xff] }
0x2508   :  { %v5953_v15 = vmul.f32 %v8421_v16, %v5951_v9 }
0x2509   :  { %v5952_v20 = vmul.f32 %v8421_v16, %v5949_v42 }
0x250a   :  { %v5955_v53 = vadd.f32 %v8422_v14, %v5953_v15 }
0x250b   :  { %v5954_v22 = vadd.f32 %v8422_v14, %v5952_v20 }
0x250c   :  { %v5957_v33 = vmul.f32 %v5955_v53, %v8795_v63 }
0x250d   :  { %v5956_v0 = vmul.f32 %v5954_v22, %v8787_v57 }
0x250f   :  { %7528 = vmatprep.mubr.msk.f32.mxu0 %vm85_vm0, %v5956_v0 }
0x2510   :  { %7529 = vmatmul.mubr.msk.f32.vlgmr.msra.gmra.mrb[52].mxu0 %vm85_vm0, %v5957_v33 }
0x2511   :  { %7943 = vmatpush3.bf16.msra.mxu0 %v7940_v31  ;;  %7539 = vmatprep.mubr.msk.f32.mxu0 %vm85_vm0, %v8791_v61  ;;  %v6246_v61 = vld [vmem:[%s9567_s6 + $0x8] sm:$0xff] }
0x2512   :  { %7945 = vmatprep.subr.bf16.mxu0 %v7944_v10  ;;  %v7956_v19 = vpack.c.bf16 %v6246_v61, %v6245_v41 }
0x2515   :  { %7947 = vmatpush3.bf16.msra.mxu0 %v7944_v10 }
0x2516   :  { %7957 = vmatprep.subr.bf16.mxu0 %v7956_v19 }
0x2518   :  { %7540 = vmatmul.mubr.msk.f32.vlgmr.msra.gmra.mrb[52].mxu0 %vm85_vm0, %v8798_v1  ;;  %v6247_v1 = vld [vmem:[%s9567_s6 + $0x10] sm:$0xff] }
0x2519   :  { %v7960_v62 = vpack.c.bf16 %v6248_v51, %v6247_v1  ;;  %7959 = vmatpush3.bf16.msra.mxu0 %v7956_v19 }
0x251b   :  { %7961 = vmatprep.subr.bf16.mxu0 %v7960_v62 }
0x251d   :  { %7963 = vmatpush3.bf16.msra.mxu0 %v7960_v62 }
0x251e   :  { %7965 = vmatprep.subr.bf16.mxu0 %v7964_v3 }
0x2521   :  { %7967 = vmatpush3.bf16.msra.mxu0 %v7964_v3 }
0x25eb   :  { %v7541_v21 = vpop.f32.mrb[52].mxu0 }
0x25ec   :  { %v6130_v60 = vadd.f32 %v7541_v21, %v6637_v17  ;;  %v6113_v38 = vpop.f32.mrb[53].mxu0 }
0x25ed   :  { %v6129_v26 = vadd.f32 %v6637_v17, %v6113_v38 }
0x25ee   :  { %v6639_v52 = vmul.f32 -1.442695, %v6130_v60 }
0x25ef   :  { %v6638_v28 = vmul.f32 -1.442695, %v6129_v26 }
0x25f0   :  { %8400 = vpow2.f32 %v6639_v52  ;;  %v6646_v52 = vld [vmem:[%s9568_s7 + $0x11] ss:$0 sm:$0xff] }
0x25f1   :  { %8402 = vpow2.f32 %v6638_v28 }
0x25fa   :  { %v8401_v23 = vpop.eup %8400 }
0x25fb   :  { %v8403_v27 = vpop.eup %8402  ;;  %v6138_v8 = vadd.f32 1.0, %v8401_v23 }
0x25fc   :  { %v6137_v6 = vadd.f32 1.0, %v8403_v27  ;;  %v6647_v27 = vld [vmem:[%s9568_s7 + $0x12] ss:$0 sm:$0xff] }
0x25fd   :  { %8404 = vrcp.f32 %v6138_v8 }
0x25fe   :  { %8406 = vrcp.f32 %v6137_v6 }
0x2607   :  { %v8405_v24 = vpop.eup %8404 }
0x2608   :  { %v8407_v29 = vpop.eup %8406  ;;  %v6144_v31 = vmul.f32 %v8405_v24, %v5957_v33 }
0x2609   :  { %v6143_v45 = vmul.f32 %v8407_v29, %v5956_v0 }
0x260a   :  { %v6146_v36 = vadd.f32 %v6144_v31, %v9408_v11  ;;  %v6252_v11 = vld [vmem:[%s9567_s6 + $0x38] sm:$0xff] }
0x260b   :  { %v6145_v58 = vadd.f32 %v6143_v45, %v9411_v13  ;;  %v7968_v56 = vpack.c.bf16 %v6252_v11, %v6251_v59  ;;  %v6640_v13 = vld [vmem:[%s9568_s7 + $0xf] ss:$0 sm:$0xff] }
0x260c   :  { %v6148_v35 = vmul.f32 0.57735026, %v6146_v36 }
0x260d   :  { %v6147_v25 = vmul.f32 0.57735026, %v6145_v58  ;;  %7969 = vmatprep.subr.bf16.mxu0 %v7968_v56 }
0x260e   :  { %v6150_v32 = vmul.f32 %v6148_v35, %v8795_v63  ;;  %7971 = vmatpush3.bf16.msra.mxu0 %v7968_v56 }
0x260f   :  { %v6149_v47 = vmul.f32 %v6147_v25, %v8787_v57 }
0x2611   :  { %7550 = vmatprep.mubr.msk.f32.mxu1 %vm85_vm0, %v6149_v47 }
0x2612   :  { %7551 = vmatmul.mubr.msk.f32.vlgmr.msra.gmra.mrb[56].mxu1 %vm85_vm0, %v6150_v32 }
0x26e5   :  { %v7552_v39 = vpop.f32.mrb[56].mxu1 }
0x26e6   :  { %v6240_v40 = vadd.f32 %v7552_v39, %v6640_v13  ;;  %v6234_v49 = vpop.f32.mrb[57].mxu1 }
0x26e7   :  { %v6235_v54 = vadd.f32 %v6640_v13, %v6234_v49 }
0x26e8   :  { %v6244_v55 = vmax.f32 %v6240_v40, 0.0 }
0x26e9   :  { %v6243_v2 = vmax.f32 %v6235_v54, 0.0 }
0x26eb   :  { %7569 = vmatprep.mubr.msk.f32.mxu0 %vm6260_vm5, %v6243_v2 }
0x26ec   :  { %7570 = vmatmul.mubr.msk.f32.vlgmr.msra.gmra.mrb[54].mxu0 %vm6260_vm5, %v6244_v55 }
0x27bf   :  { %v7571_v37 = vpop.f32.mrb[54].mxu0 }
0x27c0   :  { %v6339_v4 = vadd.f32 %v7571_v37, %v6643_v34  ;;  %v6333_v9 = vpop.f32.mrb[55].mxu0 }
0x27c1   :  { %v6334_v42 = vadd.f32 %v6643_v34, %v6333_v9 }
0x27c2   :  { %v6343_v16 = vadd.f32 %v6339_v4, %v6150_v32 }
0x27c3   :  { %v6342_v15 = vadd.f32 %v6334_v42, %v6149_v47 }
0x27c4   :  { %v6349_v20 = vsel %vm85_vm0, %v6343_v16, 0.0 }
0x27c5   :  { %6350 = vadd.xlane.f32.xlu0 %v6349_v20  ;;  %v6346_v14 = vsel %vm85_vm0, %v6342_v15, 0.0 }
0x27c6   :  { %6347 = vadd.xlane.f32.xlu1 %v6346_v14 }
0x2852   :  { %v6351_v53 = vpop.xlane.xlu0 %6350 }
0x2853   :  { %v6353_v22 = vmul.f32 0.03125, %v6351_v53  ;;  %v6348_v30 = vpop.xlane.xlu1 %6347 }
0x2854   :  { %v6352_v46 = vmul.f32 0.03125, %v6348_v30 }
0x2855   :  { %v6355_v0 = vsub.f32 %v6343_v16, %v6353_v22 }
0x2856   :  { %v6354_v33 = vsub.f32 %v6342_v15, %v6352_v46 }
0x2857   :  { %v6357_v10 = vmul.f32 %v6355_v0, %v6355_v0 }
0x2858   :  { %v6356_v12 = vmul.f32 %v6354_v33, %v6354_v33 }
0x2859   :  { %v6361_v43 = vsel %vm85_vm0, %v6357_v10, 0.0 }
0x285a   :  { %6362 = vadd.xlane.f32.xlu0 %v6361_v43  ;;  %v6358_v7 = vsel %vm85_vm0, %v6356_v12, 0.0 }
0x285b   :  { %6359 = vadd.xlane.f32.xlu1 %v6358_v7 }
0x28e7   :  { %v6363_v44 = vpop.xlane.xlu0 %6362 }
0x28e8   :  { %v6365_v5 = vmul.f32 0.03125, %v6363_v44  ;;  %v6360_v18 = vpop.xlane.xlu1 %6359 }
0x28e9   :  { %v6364_v41 = vmul.f32 0.03125, %v6360_v18 }
0x28ea   :  { %v6367_v61 = vadd.f32 1e-05, %v6365_v5 }
0x28eb   :  { %v6366_v1 = vadd.f32 1e-05, %v6364_v41 }
0x28ec   :  { %8408 = vrsqrt.f32 %v6367_v61  ;;  %vm6377_vm6 = vcmp.eq.f32.partialorder %v6367_v61, inf  ;;  %v6380_v48 = vand.u32 2147483648, %v6367_v61  ;;  %vm6379_vm7 = vcmp.eq.f32.partialorder %v6367_v61, 0.0 }
0x28ed   :  { %8410 = vrsqrt.f32 %v6366_v1  ;;  %vm6370_vm8 = vcmp.eq.f32.partialorder %v6366_v1, inf  ;;  %v6373_v17 = vand.u32 2147483648, %v6366_v1  ;;  %vm6372_vm9 = vcmp.eq.f32.partialorder %v6366_v1, 0.0 }
0x28f6   :  { %v8409_v19 = vpop.eup %8408 }
0x28f7   :  { %v8411_v51 = vpop.eup %8410  ;;  %v6376_v62 = vmul.f32 %v8409_v19, %v6367_v61 }
0x28f8   :  { %v6369_v50 = vmul.f32 %v8411_v51, %v6366_v1 }
0x28f9   :  { %v6378_v3 = vsel %vm6377_vm6, %v6367_v61, %v6376_v62 }
0x28fa   :  { %v6381_v21 = vsel %vm6379_vm7, %v6380_v48, %v6378_v3  ;;  %v6371_v60 = vsel %vm6370_vm8, %v6366_v1, %v6369_v50 }
0x28fb   :  { %8412 = vrcp.f32 %v6381_v21  ;;  %v6374_v38 = vsel %vm6372_vm9, %v6373_v17, %v6371_v60 }
0x28fc   :  { %8414 = vrcp.f32 %v6374_v38 }
0x2905   :  { %v8413_v26 = vpop.eup %8412 }
0x2906   :  { %v8415_v28 = vpop.eup %8414  ;;  %v6385_v23 = vmul.f32 %v8413_v26, %v6355_v0 }
0x2907   :  { %v6383_v8 = vmul.f32 %v8415_v28, %v6354_v33 }
0x2908   :  { %v6393_v6 = vmul.f32 %v6646_v52, %v6385_v23 }
0x2909   :  { %v6392_v24 = vmul.f32 %v6646_v52, %v6383_v8 }
0x290a   :  { %v6401_v29 = vadd.f32 %v6647_v27, %v6393_v6 }
0x290b   :  { %v6400_v31 = vadd.f32 %v6647_v27, %v6392_v24 }
0x290c   :  { %v6403_v45 = vmul.f32 %v6401_v29, %v8795_v63 }
0x290d   :  { %v6402_v36 = vmul.f32 %v6400_v31, %v8787_v57 }
0x290e   :  { %6405 = vst.msk [vmem:[#allocation5 + $0x8] sm:$0xff] %vm85_vm0, %v6403_v45 }
0x290f   :  { %6404 = vst.msk [vmem:[#allocation5] sm:$0xff] %vm85_vm0, %v6402_v36 }
0x2910   :  { %8456 = shalt.err (!%p8453_p12)
}
0x2911   :  { %s8457_s0 = scalar_lea.hbm %s9569_s8, 256 }
0x2912   :  { %p8458_p13 = scmp.ne.s32.totalorder %s9569_s8, %s8457_s0  ;;  %p8461_p0 = scmp.lt.u32.totalorder %s8457_s0, %s9569_s8 }
0x2914   :  { %p8463_p1 = pnand %p8461_p0, %p8458_p13 }
0x2916   :  { %8466 = shalt.err (!%p8463_p1)
}
0x2917   :  { %s8480_s29 = smov 128  }
0x2918   :  { %6417 = dma.vmem_to_hbm [thread:$0]  %s6412_s21, 256, %s9569_s8, [#allocation4], %s8480_s29, %s8480_s29, %s8474_s27  }
0x2919   :  { %8469 = dma.done.wait [#allocation4], 256  }
0x291a   :  { %8470 = vsyncadd [#allocation4], 4294967040 }
0x291b   :  { %6421 = vsyncpa [#allocation3], 1 }
0x291c   :  { %6422 = vsyncpa [#allocation4], 1 }

</bundles_post_ra>
